<compile_context>
chip_gen: v6e
topology: v6e:2x2x1
jax: 0.10.0
libtpu: 0.0.40
codegen_flags: <defaults>
</compile_context>

<pallas_src>
import functools

import numpy as np
import jax
import jax.numpy as jnp
from jax.experimental import pallas as pl
from jax.experimental.pallas import tpu as pltpu


def _round_up(n, m):
    return ((n + m - 1) // m) * m


# ----------------------------------------------------------------------------
# Pallas kernel 1: single-shot GEMM with fused bias (+ optional ReLU) epilogue
# ----------------------------------------------------------------------------
def _gemm_bias_act_kernel(x_ref, w_ref, b_ref, o_ref, *, relu):
    acc = jnp.dot(x_ref[...], w_ref[...], preferred_element_type=jnp.float32)
    y = acc + b_ref[...]
    if relu:
        y = jnp.maximum(y, 0.0)
    o_ref[...] = y.astype(o_ref.dtype)


def pallas_gemm_bias_act(x, w, bias, *, relu=False, out_dtype=jnp.float32):
    """out[M,N] = act(x[M,K] @ w[K,N] + bias[N]); bf16 operands, fp32 accumulation."""
    M, K = x.shape
    K2, N = w.shape
    assert K == K2, (K, K2)

    Mp, Kp, Np = _round_up(M, 8), _round_up(K, 128), _round_up(N, 128)
    xp = jnp.pad(x.astype(jnp.bfloat16), ((0, Mp - M), (0, Kp - K)))
    wp = jnp.pad(w.astype(jnp.bfloat16), ((0, Kp - K), (0, Np - N)))
    bp = jnp.pad(bias.astype(jnp.float32).reshape(1, N), ((0, 0), (0, Np - N)))

    # Everything in this model fits VMEM whole; only split M when it is large.
    tm = 256 if (Mp > 256 and Mp % 256 == 0) else Mp
    grid = (Mp // tm,)

    out = pl.pallas_call(
        functools.partial(_gemm_bias_act_kernel, relu=relu),
        out_shape=jax.ShapeDtypeStruct((Mp, Np), out_dtype),
        grid_spec=pltpu.PrefetchScalarGridSpec(
            num_scalar_prefetch=0,
            grid=grid,
            in_specs=[
                pl.BlockSpec((tm, Kp), lambda i: (i, 0)),
                pl.BlockSpec((Kp, Np), lambda i: (0, 0)),
                pl.BlockSpec((1, Np), lambda i: (0, 0)),
            ],
            out_specs=pl.BlockSpec((tm, Np), lambda i: (i, 0)),
        ),
        compiler_params=pltpu.CompilerParams(dimension_semantics=("parallel",)),
    )(xp, wp, bp)

    if Mp != M or Np != N:
        out = out[:M, :N]
    return out


# ----------------------------------------------------------------------------
# Pallas kernel 2: three chained GEMMs (ASPP -> projection -> heads) in one call
# ----------------------------------------------------------------------------
def _fused_mlp3_kernel(x_ref, w1_ref, b1_ref, w2_ref, b2_ref, w3_ref, b3_ref, o_ref):
    h = jnp.dot(x_ref[...], w1_ref[...], preferred_element_type=jnp.float32) + b1_ref[...]
    h = jnp.maximum(h, 0.0).astype(jnp.bfloat16)
    h = jnp.dot(h, w2_ref[...], preferred_element_type=jnp.float32) + b2_ref[...]
    h = jnp.maximum(h, 0.0).astype(jnp.bfloat16)
    y = jnp.dot(h, w3_ref[...], preferred_element_type=jnp.float32) + b3_ref[...]
    o_ref[...] = y


def pallas_fused_mlp3(x, w1, b1, w2, b2, w3, b3):
    """relu(x@W1+b1) -> relu(.@W2+b2) -> .@W3+b3, all inside one Pallas kernel.

    Zero-padded lanes stay zero through ReLU (bias pads are 0) and the padded
    K-rows of the following weight are zero, so padding is exact."""
    M, K1 = x.shape
    N1, N2, N3 = w1.shape[1], w2.shape[1], w3.shape[1]
    assert w1.shape[0] == K1 and w2.shape[0] == N1 and w3.shape[0] == N2

    Mp = _round_up(M, 8)
    K1p, N1p = _round_up(K1, 128), _round_up(N1, 128)
    N2p, N3p = _round_up(N2, 128), _round_up(N3, 128)

    xp = jnp.pad(x.astype(jnp.bfloat16), ((0, Mp - M), (0, K1p - K1)))
    w1p = jnp.pad(w1.astype(jnp.bfloat16), ((0, K1p - K1), (0, N1p - N1)))
    b1p = jnp.pad(b1.astype(jnp.float32).reshape(1, N1), ((0, 0), (0, N1p - N1)))
    w2p = jnp.pad(w2.astype(jnp.bfloat16), ((0, N1p - N1), (0, N2p - N2)))
    b2p = jnp.pad(b2.astype(jnp.float32).reshape(1, N2), ((0, 0), (0, N2p - N2)))
    w3p = jnp.pad(w3.astype(jnp.bfloat16), ((0, N2p - N2), (0, N3p - N3)))
    b3p = jnp.pad(b3.astype(jnp.float32).reshape(1, N3), ((0, 0), (0, N3p - N3)))

    tm = 256 if (Mp > 256 and Mp % 256 == 0) else Mp
    grid = (Mp // tm,)

    out = pl.pallas_call(
        _fused_mlp3_kernel,
        out_shape=jax.ShapeDtypeStruct((Mp, N3p), jnp.float32),
        grid_spec=pltpu.PrefetchScalarGridSpec(
            num_scalar_prefetch=0,
            grid=grid,
            in_specs=[
                pl.BlockSpec((tm, K1p), lambda i: (i, 0)),
                pl.BlockSpec((K1p, N1p), lambda i: (0, 0)),
                pl.BlockSpec((1, N1p), lambda i: (0, 0)),
                pl.BlockSpec((N1p, N2p), lambda i: (0, 0)),
                pl.BlockSpec((1, N2p), lambda i: (0, 0)),
                pl.BlockSpec((N2p, N3p), lambda i: (0, 0)),
                pl.BlockSpec((1, N3p), lambda i: (0, 0)),
            ],
            out_specs=pl.BlockSpec((tm, N3p), lambda i: (i, 0)),
        ),
        compiler_params=pltpu.CompilerParams(dimension_semantics=("parallel",)),
    )(xp, w1p, b1p, w2p, b2p, w3p, b3p)
    return out[:M, :N3]


# ----------------------------------------------------------------------------
# Conv helpers (NHWC) built on top of the Pallas GEMM
# ----------------------------------------------------------------------------
def _fold_wss(w, scale, shift):
    """PyTorch (Cout,Cin,kh,kw) weight + folded-BN scale/shift ->
       (kh*kw*Cin, Cout) GEMM weight with scale folded in, plus shift as bias."""
    Cout, Cin, kh, kw = w.shape
    w2 = w.transpose(2, 3, 1, 0).reshape(kh * kw * Cin, Cout)
    return w2 * scale[None, :], shift


def _extract_patches_nhwc(x, kh, kw, stride, padding, dilation):
    """im2col. x: (N,H,W,C) -> (N*Ho*Wo, kh*kw*C); feature order (kh, kw, C)."""
    N, H, W, C = x.shape
    xp = jnp.pad(x, ((0, 0), (padding, padding), (padding, padding), (0, 0)))
    Hp, Wp = H + 2 * padding, W + 2 * padding
    eff_kh = (kh - 1) * dilation + 1
    eff_kw = (kw - 1) * dilation + 1
    Ho = (Hp - eff_kh) // stride + 1
    Wo = (Wp - eff_kw) // stride + 1
    cols = []
    for i in range(kh):
        for j in range(kw):
            sl = xp[:,
                    i * dilation: i * dilation + stride * (Ho - 1) + 1: stride,
                    j * dilation: j * dilation + stride * (Wo - 1) + 1: stride,
                    :]
            cols.append(sl)                                   # (N, Ho, Wo, C)
    patches = jnp.concatenate(cols, axis=-1)                  # (N, Ho, Wo, kh*kw*C)
    return patches.reshape(N * Ho * Wo, kh * kw * C), (N, Ho, Wo)


def conv2d(x, w, scale, shift, *, stride=1, padding=0, dilation=1, relu=True,
           out_dtype=jnp.bfloat16):
    """Conv + folded BN + ReLU as one Pallas GEMM. x: NHWC."""
    Cout, Cin, kh, kw = w.shape
    w2, b = _fold_wss(w, scale, shift)
    if kh == 1 and kw == 1 and stride == 1 and padding == 0:
        N, Ho, Wo, C = x.shape
        patches = x.reshape(N * Ho * Wo, C)
    else:
        patches, (N, Ho, Wo) = _extract_patches_nhwc(x, kh, kw, stride, padding, dilation)
    y = pallas_gemm_bias_act(patches, w2, b, relu=relu, out_dtype=out_dtype)
    return y.reshape(N, Ho, Wo, Cout)


# ----------------------------------------------------------------------------
# Bilinear resize (align_corners=False) as two dense interpolation matmuls
# ----------------------------------------------------------------------------
def _interp_matrix(out_size, in_size):
    i = np.arange(out_size, dtype=np.float64)
    src = (i + 0.5) * (float(in_size) / float(out_size)) - 0.5
    src = np.maximum(src, 0.0)
    x0 = np.minimum(np.floor(src).astype(np.int64), in_size - 1)
    x1 = np.minimum(x0 + 1, in_size - 1)
    lam = (src - x0).astype(np.float32)
    A = np.zeros((out_size, in_size), np.float32)
    A[np.arange(out_size), x0] += 1.0 - lam
    A[np.arange(out_size), x1] += lam
    return jnp.asarray(A)


def bilinear_resize_nhwc(x, out_h, out_w):
    """F.interpolate(mode='bilinear', align_corners=False) on NHWC."""
    N, H, W, C = x.shape
    Ah = _interp_matrix(out_h, H)                              # (out_h, H)
    Aw = _interp_matrix(out_w, W)                              # (out_w, W)
    y = jnp.einsum("oh,nhwc->nowc", Ah, x.astype(jnp.float32))
    y = jnp.einsum("pw,nowc->nopc", Aw, y)
    return y


# ----------------------------------------------------------------------------
# Deterministic parameter construction (synthetic; BN folded into scale/shift)
# ----------------------------------------------------------------------------
def _conv_params(key, cout, cin, kh, kw, *, bn=True):
    k1, k2, k3 = jax.random.split(key, 3)
    fan_in = cin * kh * kw
    w = jax.random.normal(k1, (cout, cin, kh, kw), jnp.float32) * (2.0 / fan_in) ** 0.5
    if bn:
        scale = 1.0 + 0.1 * jax.random.normal(k2, (cout,), jnp.float32)  # gamma/sqrt(var+eps)
        shift = 0.1 * jax.random.normal(k3, (cout,), jnp.float32)        # beta - mean*scale
    else:
        scale = jnp.ones((cout,), jnp.float32)
        shift = 0.01 * jax.random.normal(k3, (cout,), jnp.float32)       # conv bias
    return (w, scale, shift)


CH_BOTTLENECK, CH_4X, CH_ASPP = 64, 32, 32


def make_params(key, outputs_desc):
    ch_out = sum(outputs_desc.values())
    keys = jax.random.split(key, 32)
    ki = iter(range(32))

    def nk():
        return keys[next(ki)]

    def aspp_params():
        return {
            "b0": _conv_params(nk(), CH_ASPP, CH_BOTTLENECK, 1, 1),
            "b1": _conv_params(nk(), CH_ASPP, CH_BOTTLENECK, 3, 3),
            "b2": _conv_params(nk(), CH_ASPP, CH_BOTTLENECK, 3, 3),
            "b3": _conv_params(nk(), CH_ASPP, CH_BOTTLENECK, 3, 3),
            "pool": _conv_params(nk(), CH_ASPP, CH_BOTTLENECK, 1, 1),
            "proj": _conv_params(nk(), CH_ASPP, 5 * CH_ASPP, 1, 1),
        }

    params = {
        "enc1": _conv_params(nk(), 16, 3, 3, 3),
        "enc2": _conv_params(nk(), CH_4X, 16, 3, 3),
        "enc3": _conv_params(nk(), 48, CH_4X, 3, 3),
        "enc4": _conv_params(nk(), CH_BOTTLENECK, 48, 3, 3),
        "aspp_semseg": aspp_params(),
        "aspp_depth": aspp_params(),
        "dec_semseg": {"head": _conv_params(nk(), ch_out - 1, CH_ASPP, 1, 1, bn=False)},
        "dec_depth": {"head": _conv_params(nk(), 1, CH_ASPP, 1, 1, bn=False)},
    }
    return params


# ----------------------------------------------------------------------------
# Fused ASPP(+pool) -> projection -> decoder-head weights (both branches)
# ----------------------------------------------------------------------------
def _build_fused_aspp_dec_weights(params, ch_sem):
    ps, pd = params["aspp_semseg"], params["aspp_depth"]
    ca, cb = CH_ASPP, CH_BOTTLENECK

    # Stage 1: shared-input multi-branch GEMM.
    #   K layout: [center x (cb) | d1 patches (9cb) | d2 (9cb) | d3 (9cb) | mean (cb)]
    #   N layout: [sem b0,b1,b2,b3,pool (5ca) | dep b0,b1,b2,b3,pool (5ca)]
    K1 = 29 * cb
    N1 = 10 * ca
    row_off = {"b0": 0, "b1": cb, "b2": 10 * cb, "b3": 19 * cb, "pool": 28 * cb}
    W1 = jnp.zeros((K1, N1), jnp.float32)
    b1 = jnp.zeros((N1,), jnp.float32)
    for ti, p in enumerate((ps, pd)):
        for bi, name in enumerate(("b0", "b1", "b2", "b3", "pool")):
            wf, sh = _fold_wss(*p[name])
            r = row_off[name]
            c = ti * 5 * ca + bi * ca
            W1 = W1.at[r:r + wf.shape[0], c:c + ca].set(wf)
            b1 = b1.at[c:c + ca].set(sh)

    # Stage 2: block-diagonal ASPP 1x1 projections (sem | dep).
    wps, shs = _fold_wss(*ps["proj"])
    wpd, shd = _fold_wss(*pd["proj"])
    W2 = jnp.zeros((N1, 2 * ca), jnp.float32)
    W2 = W2.at[:5 * ca, :ca].set(wps)
    W2 = W2.at[5 * ca:, ca:].set(wpd)
    b2 = jnp.concatenate([shs, shd], axis=0)

    # Stage 3: block-diagonal decoder 1x1 heads (sem -> ch_sem, dep -> 1), no ReLU.
    whs, bhs = _fold_wss(*params["dec_semseg"]["head"])
    whd, bhd = _fold_wss(*params["dec_depth"]["head"])
    W3 = jnp.zeros((2 * ca, ch_sem + 1), jnp.float32)
    W3 = W3.at[:ca, :ch_sem].set(whs)
    W3 = W3.at[ca:, ch_sem:].set(whd)
    b3 = jnp.concatenate([bhs, bhd], axis=0)

    return (W1, b1), (W2, b2), (W3, b3)


def _build_aspp_patches(feat):
    """Shared input matrix for the fused ASPP GEMM (center | d1 | d2 | d3 | mean)."""
    N, H, W, C = feat.shape
    M = N * H * W
    cols = [feat.reshape(M, C)]
    for d in (1, 2, 3):
        p, _ = _extract_patches_nhwc(feat, 3, 3, stride=1, padding=d, dilation=d)
        cols.append(p)
    mean = jnp.mean(feat.astype(jnp.float32), axis=(1, 2))      # (N, C) image pooling
    mean = jnp.broadcast_to(mean[:, None, :], (N, H * W, C)).reshape(M, C)
    cols.append(mean.astype(feat.dtype))
    return jnp.concatenate(cols, axis=1), (N, H, W)


# ----------------------------------------------------------------------------
# ModelBranched.forward (semseg & depth branches fused into shared kernels)
# ----------------------------------------------------------------------------
def model_branched_forward(x_nchw, params, outputs_desc):
    ch_out = sum(outputs_desc.values())
    ch_sem = ch_out - 1
    input_resolution = (x_nchw.shape[2], x_nchw.shape[3])

    x = jnp.transpose(x_nchw, (0, 2, 3, 1)).astype(jnp.bfloat16)   # NHWC

    # Encoder (output stride 16)
    f2 = conv2d(x, *params["enc1"], stride=2, padding=1, relu=True)
    f4 = conv2d(f2, *params["enc2"], stride=2, padding=1, relu=True)
    f8 = conv2d(f4, *params["enc3"], stride=2, padding=1, relu=True)
    f16 = conv2d(f8, *params["enc4"], stride=2, padding=1, relu=True)
    features = {4: f4, 16: f16}

    lowest_scale = max(features.keys())
    feat = features[lowest_scale]                               # (N, Hb, Wb, 64)

    # --- ASPP (all 5 branches x 2 tasks) + projections + decoder heads: 1 kernel ---
    (W1, b1), (W2, b2), (W3, b3) = _build_fused_aspp_dec_weights(params, ch_sem)
    patches, (N, Hb, Wb) = _build_aspp_patches(feat)
    preds_16 = pallas_fused_mlp3(patches, W1, b1, W2, b2, W3, b3)   # (M, ch_sem+1)
    preds_16 = preds_16.reshape(N, Hb, Wb, ch_sem + 1)

    # The 1x1 heads commute with bilinear interpolation (weights sum to 1), so they
    # were applied at 1/16 above; now upsample 1/16 -> 1/4 (decoder) -> 1/1 (final).
    h4, w4 = features[4].shape[1], features[4].shape[2]
    preds_4x = bilinear_resize_nhwc(preds_16, h4, w4)
    preds_1x = bilinear_resize_nhwc(preds_4x, *input_resolution)    # (N,H,W, ch_sem+1)

    pred1x_sem = jnp.transpose(preds_1x[..., :ch_sem], (0, 3, 1, 2))   # NCHW
    pred1x_dep = jnp.transpose(preds_1x[..., ch_sem:], (0, 3, 1, 2))   # NCHW

    out = {}
    offset = 0
    for task, num_ch in outputs_desc.items():
        if task == "semseg":
            out[task] = pred1x_sem[:, offset:offset + num_ch, :, :]
            offset += num_ch
        elif task == "depth":
            out[task] = pred1x_dep[:, :, :, :]
            offset += num_ch
        else:
            print("mod erreur, should be either MOD_SEMSEG or MOD_DEPTH")
    return out


# ----------------------------------------------------------------------------
if __name__ == "__main__":
    outputs_desc = {"semseg": 4, "depth": 1}

    key = jax.random.PRNGKey(0)
    kx, kp = jax.random.split(key)
    x = jax.random.normal(kx, (2, 3, 32, 32), jnp.float32)     # NCHW, divisible by 16
    params = make_params(kp, outputs_desc)

    fwd = jax.jit(lambda xx, pp: model_branched_forward(xx, pp, outputs_desc))
    out = fwd(x, params)
    out = jax.block_until_ready(out)

    assert out["semseg"].shape == (2, 4, 32, 32), out["semseg"].shape
    assert out["depth"].shape == (2, 1, 32, 32), out["depth"].shape
    assert bool(jnp.all(jnp.isfinite(out["semseg"]))) and bool(jnp.all(jnp.isfinite(out["depth"])))
    print("KERNEL_OK")
</pallas_src>

<mosaic_0001>
module attributes {stable_mosaic.version = 11 : i64} {
  func.func @_gemm_bias_act_kernel(%arg0: i32, %arg1: memref<256x128xbf16, #tpu.memory_space<vmem>>, %arg2: memref<128x128xbf16, #tpu.memory_space<vmem>>, %arg3: memref<1x128xf32, #tpu.memory_space<vmem>>, %arg4: memref<256x128xbf16, #tpu.memory_space<vmem>>) attributes {dimension_semantics = [#tpu.dimension_semantics<parallel>], iteration_bounds = array<i64: 2>, scalar_prefetch = 0 : i64, scratch_operands = 0 : i64, tpu.core_type = #tpu.core_type<tc>, window_params = [{transform_indices = @transform_0, window_bounds = array<i64: 256, 128>}, {pipeline_mode = #tpu.pipeline_mode<synchronous>, transform_indices = @transform_1, window_bounds = array<i64: 128, 128>}, {pipeline_mode = #tpu.pipeline_mode<synchronous>, transform_indices = @transform_2, window_bounds = array<i64: 1, 128>}, {transform_indices = @transform_3, window_bounds = array<i64: 256, 128>}]} {
    %c0 = arith.constant 0 : index
    %c0_0 = arith.constant 0 : index
    %0 = vector.load %arg1[%c0, %c0_0] : memref<256x128xbf16, #tpu.memory_space<vmem>>, vector<256x128xbf16>
    %c0_1 = arith.constant 0 : index
    %c0_2 = arith.constant 0 : index
    %1 = vector.load %arg2[%c0_1, %c0_2] : memref<128x128xbf16, #tpu.memory_space<vmem>>, vector<128x128xbf16>
    %cst = arith.constant dense<0.000000e+00> : vector<256x128xf32>
    %2 = tpu.matmul %0, %1, %cst {dimension_numbers = #tpu.dot_dimension_numbers<[1], [0], [0], [1], [0, 0, 1, 1], [], []>} : vector<256x128xbf16>, vector<128x128xbf16>, vector<256x128xf32> -> vector<256x128xf32>
    %c0_3 = arith.constant 0 : index
    %c0_4 = arith.constant 0 : index
    %3 = vector.load %arg3[%c0_3, %c0_4] : memref<1x128xf32, #tpu.memory_space<vmem>>, vector<1x128xf32>
    %4 = vector.broadcast %3 : vector<1x128xf32> to vector<256x128xf32>
    %5 = arith.addf %2, %4 : vector<256x128xf32>
    %cst_5 = arith.constant 0.000000e+00 : f32
    %6 = vector.broadcast %cst_5 : f32 to vector<256x128xf32>
    %7 = arith.maximumf %5, %6 : vector<256x128xf32>
    %8 = arith.truncf %7 : vector<256x128xf32> to vector<256x128xbf16>
    %c0_6 = arith.constant 0 : index
    %c0_7 = arith.constant 0 : index
    %9 = vector.load %arg4[%c0_6, %c0_7] : memref<256x128xbf16, #tpu.memory_space<vmem>>, vector<256x128xbf16>
    tpu.vector_store %arg4[%c0_6, %c0_7], %8 {strides = array<i32>} : memref<256x128xbf16, #tpu.memory_space<vmem>>, vector<256x128xbf16>,
    return
  }
  func.func @transform_0(%arg0: i32) -> (i32, i32) {
    %c0_i32 = arith.constant 0 : i32
    %c0_i32_0 = arith.constant 0 : i32
    return %arg0, %c0_i32 : i32, i32
  }
  func.func @transform_1(%arg0: i32) -> (i32, i32) {
    %c0_i32 = arith.constant 0 : i32
    %c0_i32_0 = arith.constant 0 : i32
    %c0_i32_1 = arith.constant 0 : i32
    return %c0_i32, %c0_i32_0 : i32, i32
  }
  func.func @transform_2(%arg0: i32) -> (i32, i32) {
    %c0_i32 = arith.constant 0 : i32
    %c0_i32_0 = arith.constant 0 : i32
    %c0_i32_1 = arith.constant 0 : i32
    return %c0_i32, %c0_i32_0 : i32, i32
  }
  func.func @transform_3(%arg0: i32) -> (i32, i32) {
    %c0_i32 = arith.constant 0 : i32
    %c0_i32_0 = arith.constant 0 : i32
    return %arg0, %c0_i32 : i32, i32
  }
}

module attributes {stable_mosaic.version = 11 : i64} {
  func.func @_gemm_bias_act_kernel(%arg0: i32, %arg1: memref<128x256xbf16, #tpu.memory_space<vmem>>, %arg2: memref<256x128xbf16, #tpu.memory_space<vmem>>, %arg3: memref<1x128xf32, #tpu.memory_space<vmem>>, %arg4: memref<128x128xbf16, #tpu.memory_space<vmem>>) attributes {dimension_semantics = [#tpu.dimension_semantics<parallel>], iteration_bounds = array<i64: 1>, scalar_prefetch = 0 : i64, scratch_operands = 0 : i64, tpu.core_type = #tpu.core_type<tc>, window_params = [{transform_indices = @transform_0, window_bounds = array<i64: 128, 256>}, {pipeline_mode = #tpu.pipeline_mode<synchronous>, transform_indices = @transform_1, window_bounds = array<i64: 256, 128>}, {pipeline_mode = #tpu.pipeline_mode<synchronous>, transform_indices = @transform_2, window_bounds = array<i64: 1, 128>}, {transform_indices = @transform_3, window_bounds = array<i64: 128, 128>}]} {
    %c0 = arith.constant 0 : index
    %c0_0 = arith.constant 0 : index
    %0 = vector.load %arg1[%c0, %c0_0] : memref<128x256xbf16, #tpu.memory_space<vmem>>, vector<128x256xbf16>
    %c0_1 = arith.constant 0 : index
    %c0_2 = arith.constant 0 : index
    %1 = vector.load %arg2[%c0_1, %c0_2] : memref<256x128xbf16, #tpu.memory_space<vmem>>, vector<256x128xbf16>
    %cst = arith.constant dense<0.000000e+00> : vector<128x128xf32>
    %2 = tpu.matmul %0, %1, %cst {dimension_numbers = #tpu.dot_dimension_numbers<[1], [0], [0], [1], [0, 0, 1, 1], [], []>} : vector<128x256xbf16>, vector<256x128xbf16>, vector<128x128xf32> -> vector<128x128xf32>
    %c0_3 = arith.constant 0 : index
    %c0_4 = arith.constant 0 : index
    %3 = vector.load %arg3[%c0_3, %c0_4] : memref<1x128xf32, #tpu.memory_space<vmem>>, vector<1x128xf32>
    %4 = vector.broadcast %3 : vector<1x128xf32> to vector<128x128xf32>
    %5 = arith.addf %2, %4 : vector<128x128xf32>
    %cst_5 = arith.constant 0.000000e+00 : f32
    %6 = vector.broadcast %cst_5 : f32 to vector<128x128xf32>
    %7 = arith.maximumf %5, %6 : vector<128x128xf32>
    %8 = arith.truncf %7 : vector<128x128xf32> to vector<128x128xbf16>
    %c0_6 = arith.constant 0 : index
    %c0_7 = arith.constant 0 : index
    %9 = vector.load %arg4[%c0_6, %c0_7] : memref<128x128xbf16, #tpu.memory_space<vmem>>, vector<128x128xbf16>
    tpu.vector_store %arg4[%c0_6, %c0_7], %8 {strides = array<i32>} : memref<128x128xbf16, #tpu.memory_space<vmem>>, vector<128x128xbf16>,
    return
  }
  func.func @transform_0(%arg0: i32) -> (i32, i32) {
    %c0_i32 = arith.constant 0 : i32
    %c0_i32_0 = arith.constant 0 : i32
    return %arg0, %c0_i32 : i32, i32
  }
  func.func @transform_1(%arg0: i32) -> (i32, i32) {
    %c0_i32 = arith.constant 0 : i32
    %c0_i32_0 = arith.constant 0 : i32
    %c0_i32_1 = arith.constant 0 : i32
    return %c0_i32, %c0_i32_0 : i32, i32
  }
  func.func @transform_2(%arg0: i32) -> (i32, i32) {
    %c0_i32 = arith.constant 0 : i32
    %c0_i32_0 = arith.constant 0 : i32
    %c0_i32_1 = arith.constant 0 : i32
    return %c0_i32, %c0_i32_0 : i32, i32
  }
  func.func @transform_3(%arg0: i32) -> (i32, i32) {
    %c0_i32 = arith.constant 0 : i32
    %c0_i32_0 = arith.constant 0 : i32
    return %arg0, %c0_i32 : i32, i32
  }
}

module attributes {stable_mosaic.version = 11 : i64} {
  func.func @_gemm_bias_act_kernel(%arg0: i32, %arg1: memref<32x384xbf16, #tpu.memory_space<vmem>>, %arg2: memref<384x128xbf16, #tpu.memory_space<vmem>>, %arg3: memref<1x128xf32, #tpu.memory_space<vmem>>, %arg4: memref<32x128xbf16, #tpu.memory_space<vmem>>) attributes {dimension_semantics = [#tpu.dimension_semantics<parallel>], iteration_bounds = array<i64: 1>, scalar_prefetch = 0 : i64, scratch_operands = 0 : i64, tpu.core_type = #tpu.core_type<tc>, window_params = [{transform_indices = @transform_0, window_bounds = array<i64: 32, 384>}, {pipeline_mode = #tpu.pipeline_mode<synchronous>, transform_indices = @transform_1, window_bounds = array<i64: 384, 128>}, {pipeline_mode = #tpu.pipeline_mode<synchronous>, transform_indices = @transform_2, window_bounds = array<i64: 1, 128>}, {transform_indices = @transform_3, window_bounds = array<i64: 32, 128>}]} {
    %c0 = arith.constant 0 : index
    %c0_0 = arith.constant 0 : index
    %0 = vector.load %arg1[%c0, %c0_0] : memref<32x384xbf16, #tpu.memory_space<vmem>>, vector<32x384xbf16>
    %c0_1 = arith.constant 0 : index
    %c0_2 = arith.constant 0 : index
    %1 = vector.load %arg2[%c0_1, %c0_2] : memref<384x128xbf16, #tpu.memory_space<vmem>>, vector<384x128xbf16>
    %cst = arith.constant dense<0.000000e+00> : vector<32x128xf32>
    %2 = tpu.matmul %0, %1, %cst {dimension_numbers = #tpu.dot_dimension_numbers<[1], [0], [0], [1], [0, 0, 1, 1], [], []>} : vector<32x384xbf16>, vector<384x128xbf16>, vector<32x128xf32> -> vector<32x128xf32>
    %c0_3 = arith.constant 0 : index
    %c0_4 = arith.constant 0 : index
    %3 = vector.load %arg3[%c0_3, %c0_4] : memref<1x128xf32, #tpu.memory_space<vmem>>, vector<1x128xf32>
    %4 = vector.broadcast %3 : vector<1x128xf32> to vector<32x128xf32>
    %5 = arith.addf %2, %4 : vector<32x128xf32>
    %cst_5 = arith.constant 0.000000e+00 : f32
    %6 = vector.broadcast %cst_5 : f32 to vector<32x128xf32>
    %7 = arith.maximumf %5, %6 : vector<32x128xf32>
    %8 = arith.truncf %7 : vector<32x128xf32> to vector<32x128xbf16>
    %c0_6 = arith.constant 0 : index
    %c0_7 = arith.constant 0 : index
    %9 = vector.load %arg4[%c0_6, %c0_7] : memref<32x128xbf16, #tpu.memory_space<vmem>>, vector<32x128xbf16>
    tpu.vector_store %arg4[%c0_6, %c0_7], %8 {strides = array<i32>} : memref<32x128xbf16, #tpu.memory_space<vmem>>, vector<32x128xbf16>,
    return
  }
  func.func @transform_0(%arg0: i32) -> (i32, i32) {
    %c0_i32 = arith.constant 0 : i32
    %c0_i32_0 = arith.constant 0 : i32
    return %arg0, %c0_i32 : i32, i32
  }
  func.func @transform_1(%arg0: i32) -> (i32, i32) {
    %c0_i32 = arith.constant 0 : i32
    %c0_i32_0 = arith.constant 0 : i32
    %c0_i32_1 = arith.constant 0 : i32
    return %c0_i32, %c0_i32_0 : i32, i32
  }
  func.func @transform_2(%arg0: i32) -> (i32, i32) {
    %c0_i32 = arith.constant 0 : i32
    %c0_i32_0 = arith.constant 0 : i32
    %c0_i32_1 = arith.constant 0 : i32
    return %c0_i32, %c0_i32_0 : i32, i32
  }
  func.func @transform_3(%arg0: i32) -> (i32, i32) {
    %c0_i32 = arith.constant 0 : i32
    %c0_i32_0 = arith.constant 0 : i32
    return %arg0, %c0_i32 : i32, i32
  }
}

module attributes {stable_mosaic.version = 11 : i64} {
  func.func @_gemm_bias_act_kernel(%arg0: i32, %arg1: memref<8x512xbf16, #tpu.memory_space<vmem>>, %arg2: memref<512x128xbf16, #tpu.memory_space<vmem>>, %arg3: memref<1x128xf32, #tpu.memory_space<vmem>>, %arg4: memref<8x128xbf16, #tpu.memory_space<vmem>>) attributes {dimension_semantics = [#tpu.dimension_semantics<parallel>], iteration_bounds = array<i64: 1>, scalar_prefetch = 0 : i64, scratch_operands = 0 : i64, tpu.core_type = #tpu.core_type<tc>, window_params = [{transform_indices = @transform_0, window_bounds = array<i64: 8, 512>}, {pipeline_mode = #tpu.pipeline_mode<synchronous>, transform_indices = @transform_1, window_bounds = array<i64: 512, 128>}, {pipeline_mode = #tpu.pipeline_mode<synchronous>, transform_indices = @transform_2, window_bounds = array<i64: 1, 128>}, {transform_indices = @transform_3, window_bounds = array<i64: 8, 128>}]} {
    %c0 = arith.constant 0 : index
    %c0_0 = arith.constant 0 : index
    %0 = vector.load %arg1[%c0, %c0_0] : memref<8x512xbf16, #tpu.memory_space<vmem>>, vector<8x512xbf16>
    %c0_1 = arith.constant 0 : index
    %c0_2 = arith.constant 0 : index
    %1 = vector.load %arg2[%c0_1, %c0_2] : memref<512x128xbf16, #tpu.memory_space<vmem>>, vector<512x128xbf16>
    %cst = arith.constant dense<0.000000e+00> : vector<8x128xf32>
    %2 = tpu.matmul %0, %1, %cst {dimension_numbers = #tpu.dot_dimension_numbers<[1], [0], [0], [1], [0, 0, 1, 1], [], []>} : vector<8x512xbf16>, vector<512x128xbf16>, vector<8x128xf32> -> vector<8x128xf32>
    %c0_3 = arith.constant 0 : index
    %c0_4 = arith.constant 0 : index
    %3 = vector.load %arg3[%c0_3, %c0_4] : memref<1x128xf32, #tpu.memory_space<vmem>>, vector<1x128xf32>
    %4 = vector.broadcast %3 : vector<1x128xf32> to vector<8x128xf32>
    %5 = arith.addf %2, %4 : vector<8x128xf32>
    %cst_5 = arith.constant 0.000000e+00 : f32
    %6 = vector.broadcast %cst_5 : f32 to vector<8x128xf32>
    %7 = arith.maximumf %5, %6 : vector<8x128xf32>
    %8 = arith.truncf %7 : vector<8x128xf32> to vector<8x128xbf16>
    %c0_6 = arith.constant 0 : index
    %c0_7 = arith.constant 0 : index
    %9 = vector.load %arg4[%c0_6, %c0_7] : memref<8x128xbf16, #tpu.memory_space<vmem>>, vector<8x128xbf16>
    tpu.vector_store %arg4[%c0_6, %c0_7], %8 {strides = array<i32>} : memref<8x128xbf16, #tpu.memory_space<vmem>>, vector<8x128xbf16>,
    return
  }
  func.func @transform_0(%arg0: i32) -> (i32, i32) {
    %c0_i32 = arith.constant 0 : i32
    %c0_i32_0 = arith.constant 0 : i32
    return %arg0, %c0_i32 : i32, i32
  }
  func.func @transform_1(%arg0: i32) -> (i32, i32) {
    %c0_i32 = arith.constant 0 : i32
    %c0_i32_0 = arith.constant 0 : i32
    %c0_i32_1 = arith.constant 0 : i32
    return %c0_i32, %c0_i32_0 : i32, i32
  }
  func.func @transform_2(%arg0: i32) -> (i32, i32) {
    %c0_i32 = arith.constant 0 : i32
    %c0_i32_0 = arith.constant 0 : i32
    %c0_i32_1 = arith.constant 0 : i32
    return %c0_i32, %c0_i32_0 : i32, i32
  }
  func.func @transform_3(%arg0: i32) -> (i32, i32) {
    %c0_i32 = arith.constant 0 : i32
    %c0_i32_0 = arith.constant 0 : i32
    return %arg0, %c0_i32 : i32, i32
  }
}

module attributes {stable_mosaic.version = 11 : i64} {
  func.func @_fused_mlp3_kernel(%arg0: i32, %arg1: memref<8x1920xbf16, #tpu.memory_space<vmem>>, %arg2: memref<1920x384xbf16, #tpu.memory_space<vmem>>, %arg3: memref<1x384xf32, #tpu.memory_space<vmem>>, %arg4: memref<384x128xbf16, #tpu.memory_space<vmem>>, %arg5: memref<1x128xf32, #tpu.memory_space<vmem>>, %arg6: memref<128x128xbf16, #tpu.memory_space<vmem>>, %arg7: memref<1x128xf32, #tpu.memory_space<vmem>>, %arg8: memref<8x128xf32, #tpu.memory_space<vmem>>) attributes {dimension_semantics = [#tpu.dimension_semantics<parallel>], iteration_bounds = array<i64: 1>, scalar_prefetch = 0 : i64, scratch_operands = 0 : i64, tpu.core_type = #tpu.core_type<tc>, window_params = [{transform_indices = @transform_0, window_bounds = array<i64: 8, 1920>}, {pipeline_mode = #tpu.pipeline_mode<synchronous>, transform_indices = @transform_1, window_bounds = array<i64: 1920, 384>}, {pipeline_mode = #tpu.pipeline_mode<synchronous>, transform_indices = @transform_2, window_bounds = array<i64: 1, 384>}, {pipeline_mode = #tpu.pipeline_mode<synchronous>, transform_indices = @transform_3, window_bounds = array<i64: 384, 128>}, {pipeline_mode = #tpu.pipeline_mode<synchronous>, transform_indices = @transform_4, window_bounds = array<i64: 1, 128>}, {pipeline_mode = #tpu.pipeline_mode<synchronous>, transform_indices = @transform_5, window_bounds = array<i64: 128, 128>}, {pipeline_mode = #tpu.pipeline_mode<synchronous>, transform_indices = @transform_6, window_bounds = array<i64: 1, 128>}, {transform_indices = @transform_7, window_bounds = array<i64: 8, 128>}]} {
    %c0 = arith.constant 0 : index
    %c0_0 = arith.constant 0 : index
    %0 = vector.load %arg1[%c0, %c0_0] : memref<8x1920xbf16, #tpu.memory_space<vmem>>, vector<8x1920xbf16>
    %c0_1 = arith.constant 0 : index
    %c0_2 = arith.constant 0 : index
    %1 = vector.load %arg2[%c0_1, %c0_2] : memref<1920x384xbf16, #tpu.memory_space<vmem>>, vector<1920x384xbf16>
    %cst = arith.constant dense<0.000000e+00> : vector<8x384xf32>
    %2 = tpu.matmul %0, %1, %cst {dimension_numbers = #tpu.dot_dimension_numbers<[1], [0], [0], [1], [0, 0, 1, 1], [], []>} : vector<8x1920xbf16>, vector<1920x384xbf16>, vector<8x384xf32> -> vector<8x384xf32>
    %c0_3 = arith.constant 0 : index
    %c0_4 = arith.constant 0 : index
    %3 = vector.load %arg3[%c0_3, %c0_4] : memref<1x384xf32, #tpu.memory_space<vmem>>, vector<1x384xf32>
    %4 = vector.broadcast %3 : vector<1x384xf32> to vector<8x384xf32>
    %5 = arith.addf %2, %4 : vector<8x384xf32>
    %cst_5 = arith.constant 0.000000e+00 : f32
    %6 = vector.broadcast %cst_5 : f32 to vector<8x384xf32>
    %7 = arith.maximumf %5, %6 : vector<8x384xf32>
    %8 = arith.truncf %7 : vector<8x384xf32> to vector<8x384xbf16>
    %c0_6 = arith.constant 0 : index
    %c0_7 = arith.constant 0 : index
    %9 = vector.load %arg4[%c0_6, %c0_7] : memref<384x128xbf16, #tpu.memory_space<vmem>>, vector<384x128xbf16>
    %cst_8 = arith.constant dense<0.000000e+00> : vector<8x128xf32>
    %10 = tpu.matmul %8, %9, %cst_8 {dimension_numbers = #tpu.dot_dimension_numbers<[1], [0], [0], [1], [0, 0, 1, 1], [], []>} : vector<8x384xbf16>, vector<384x128xbf16>, vector<8x128xf32> -> vector<8x128xf32>
    %c0_9 = arith.constant 0 : index
    %c0_10 = arith.constant 0 : index
    %11 = vector.load %arg5[%c0_9, %c0_10] : memref<1x128xf32, #tpu.memory_space<vmem>>, vector<1x128xf32>
    %12 = vector.broadcast %11 : vector<1x128xf32> to vector<8x128xf32>
    %13 = arith.addf %10, %12 : vector<8x128xf32>
    %cst_11 = arith.constant 0.000000e+00 : f32
    %14 = vector.broadcast %cst_11 : f32 to vector<8x128xf32>
    %15 = arith.maximumf %13, %14 : vector<8x128xf32>
    %16 = arith.truncf %15 : vector<8x128xf32> to vector<8x128xbf16>
    %c0_12 = arith.constant 0 : index
    %c0_13 = arith.constant 0 : index
    %17 = vector.load %arg6[%c0_12, %c0_13] : memref<128x128xbf16, #tpu.memory_space<vmem>>, vector<128x128xbf16>
    %cst_14 = arith.constant dense<0.000000e+00> : vector<8x128xf32>
    %18 = tpu.matmul %16, %17, %cst_14 {dimension_numbers = #tpu.dot_dimension_numbers<[1], [0], [0], [1], [0, 0, 1, 1], [], []>} : vector<8x128xbf16>, vector<128x128xbf16>, vector<8x128xf32> -> vector<8x128xf32>
    %c0_15 = arith.constant 0 : index
    %c0_16 = arith.constant 0 : index
    %19 = vector.load %arg7[%c0_15, %c0_16] : memref<1x128xf32, #tpu.memory_space<vmem>>, vector<1x128xf32>
    %20 = vector.broadcast %19 : vector<1x128xf32> to vector<8x128xf32>
    %21 = arith.addf %18, %20 : vector<8x128xf32>
    %c0_17 = arith.constant 0 : index
    %c0_18 = arith.constant 0 : index
    %22 = vector.load %arg8[%c0_17, %c0_18] : memref<8x128xf32, #tpu.memory_space<vmem>>, vector<8x128xf32>
    tpu.vector_store %arg8[%c0_17, %c0_18], %21 {strides = array<i32>} : memref<8x128xf32, #tpu.memory_space<vmem>>, vector<8x128xf32>,
    return
  }
  func.func @transform_0(%arg0: i32) -> (i32, i32) {
    %c0_i32 = arith.constant 0 : i32
    %c0_i32_0 = arith.constant 0 : i32
    return %arg0, %c0_i32 : i32, i32
  }
  func.func @transform_1(%arg0: i32) -> (i32, i32) {
    %c0_i32 = arith.constant 0 : i32
    %c0_i32_0 = arith.constant 0 : i32
    %c0_i32_1 = arith.constant 0 : i32
    return %c0_i32, %c0_i32_0 : i32, i32
  }
  func.func @transform_2(%arg0: i32) -> (i32, i32) {
    %c0_i32 = arith.constant 0 : i32
    %c0_i32_0 = arith.constant 0 : i32
    %c0_i32_1 = arith.constant 0 : i32
    return %c0_i32, %c0_i32_0 : i32, i32
  }
  func.func @transform_3(%arg0: i32) -> (i32, i32) {
    %c0_i32 = arith.constant 0 : i32
    %c0_i32_0 = arith.constant 0 : i32
    %c0_i32_1 = arith.constant 0 : i32
    return %c0_i32, %c0_i32_0 : i32, i32
  }
  func.func @transform_4(%arg0: i32) -> (i32, i32) {
    %c0_i32 = arith.constant 0 : i32
    %c0_i32_0 = arith.constant 0 : i32
    %c0_i32_1 = arith.constant 0 : i32
    return %c0_i32, %c0_i32_0 : i32, i32
  }
  func.func @transform_5(%arg0: i32) -> (i32, i32) {
    %c0_i32 = arith.constant 0 : i32
    %c0_i32_0 = arith.constant 0 : i32
    %c0_i32_1 = arith.constant 0 : i32
    return %c0_i32, %c0_i32_0 : i32, i32
  }
  func.func @transform_6(%arg0: i32) -> (i32, i32) {
    %c0_i32 = arith.constant 0 : i32
    %c0_i32_0 = arith.constant 0 : i32
    %c0_i32_1 = arith.constant 0 : i32
    return %c0_i32, %c0_i32_0 : i32, i32
  }
  func.func @transform_7(%arg0: i32) -> (i32, i32) {
    %c0_i32 = arith.constant 0 : i32
    %c0_i32_0 = arith.constant 0 : i32
    return %arg0, %c0_i32 : i32, i32
  }
}

</mosaic_0001>

<bundles_post_ra>
// kernel: _lambda_.5
= control target key start
LH: loop header
LB: loop body
LE: loop exit
PB: predicated region body
PF: predicated region fallthrough
CT: control target
= control target key end

     0   :  { %s1126_s12 = smov 0   ;;  %s1247_s0 = inlined_call_operand.vmem [shape: bf16[512,128], index: 0, kind: input, shape index: {}]   ;;  %s1248_s1 = inlined_call_operand.vmem [shape: bf16[128,128], index: 1, kind: input, shape index: {}]   ;;  %s1249_s2 = inlined_call_operand.vmem [shape: f32[1,128], index: 2, kind: input, shape index: {}]   ;;  %s1250_s3 = inlined_call_operand.vmem [shape: bf16[512,128], index: 3, kind: output, shape index: {}]  }
   0x1 LB: > { %s783_s13 = sadd.s32 4294967295, %s1104_s12   ;;  %p787_p0 = scmp.ge.s32.totalorder %s1104_s12, 1  ;;  %s1104_s12 = sphi %s1126_s12, %s13_s12  }
   0x2   : > { %p138_p1 = scmp.lt.s32.totalorder %s1104_s12, 3 }
   0x4   : > { %p139_p2 = pnand %p787_p0, %p138_p1 }
   0x5   : > { %s788_s16 = sshll.u32 (!%p139_p2), %s783_s13, 5 }
   0x6   : > { %142 = sbr.rel (%p139_p2) target bundleno = 274 (0x112), region = 32  ;;  %p163_p3 = scmp.lt.s32.totalorder (!%p139_p2), %s788_s16, 63 }
   0xb   : > { %v1074_v0 = vld [vmem:[%s1248_s1 + $0x38] sm:$0xff]   ;;  %v1075_v1 = vld [vmem:[%s1248_s1 + $0x30] sm:$0xff]   ;;  %s1252_s16 = smov (!%p163_p3, %s788_s16), 63  ;;  %v1076_v2 = vld [vmem:[%s1248_s1 + $0x28] sm:$0xff]  }
   0xc   : > { %1002 = vmatprep.subr.bf16.mxu0 %v1074_v0  ;;  %1050 = vmatprep.subr.bf16.mxu1 %v1074_v0  ;;  %s789_s21 = sshll.u32 %s1252_s16, 2  ;;  %v1077_v3 = vld [vmem:[%s1248_s1 + $0x20] sm:$0xff]   ;;  %v1078_v6 = vld [vmem:[%s1248_s1 + $0x18] sm:$0xff]   ;;  %v1079_v7 = vld [vmem:[%s1248_s1 + $0x10] sm:$0xff]  }
   0xd   : > { %1003 = vmatpush3.bf16.msra.mxu0 %v1074_v0  ;;  %1058 = vmatpush3.bf16.msra.mxu1 %v1074_v0  ;;  %s1151_s24 = scalar_lea.vmem %s1247_s0, %s789_s21  ;;  %v1080_v8 = vld [vmem:[%s1248_s1 + $0x8] sm:$0xff]   ;;  %v1081_v9 = vld [vmem:[%s1248_s1] sm:$0xff]   ;;  %s1202_s13 = scalar_lea.vmem %s1250_s3, %s789_s21 }
   0xe   : > { %1004 = vmatprep.subr.bf16.mxu0 %v1075_v1  ;;  %1051 = vmatprep.subr.bf16.mxu1 %v1075_v1  ;;  %v1082_v4 = vld [vmem:[%s1151_s24] sm:$0xff]   ;;  %v1084_v10 = vld [vmem:[%s1151_s24 + $0x8] sm:$0xff]   ;;  %v1086_v12 = vld [vmem:[%s1151_s24 + $0x10] sm:$0xff]  }
   0xf   : > { %v1083_v5 = vld [vmem:[%s1151_s24 + $0x40] sm:$0xff]   ;;  %1018 = vmatprep.mubr.bf16.mxu0 %v1082_v4  ;;  %v1085_v11 = vld [vmem:[%s1151_s24 + $0x48] sm:$0xff]   ;;  %v1087_v13 = vld [vmem:[%s1151_s24 + $0x50] sm:$0xff]  }
  0x10   : > { %1034 = vmatprep.mubr.bf16.mxu1 %v1083_v5  ;;  %v1088_v14 = vld [vmem:[%s1151_s24 + $0x18] sm:$0xff]   ;;  %v1090_v16 = vld [vmem:[%s1151_s24 + $0x20] sm:$0xff]   ;;  %v1092_v18 = vld [vmem:[%s1151_s24 + $0x28] sm:$0xff]  }
  0x11   : > { %1005 = vmatpush3.bf16.msra.mxu0 %v1075_v1  ;;  %1059 = vmatpush3.bf16.msra.mxu1 %v1075_v1  ;;  %v1089_v15 = vld [vmem:[%s1151_s24 + $0x58] sm:$0xff]   ;;  %v1091_v17 = vld [vmem:[%s1151_s24 + $0x60] sm:$0xff]   ;;  %v1093_v19 = vld [vmem:[%s1151_s24 + $0x68] sm:$0xff]  }
  0x12   : > { %1006 = vmatprep.subr.bf16.mxu0 %v1076_v2  ;;  %1052 = vmatprep.subr.bf16.mxu1 %v1076_v2  ;;  %v1094_v20 = vld [vmem:[%s1151_s24 + $0x30] sm:$0xff]   ;;  %v1096_v22 = vld [vmem:[%s1151_s24 + $0x38] sm:$0xff]   ;;  %v1187_v24 = vld [vmem:[%s1249_s2] ss:$0 sm:$0xff] }
  0x13   : > { %v1095_v21 = vld [vmem:[%s1151_s24 + $0x70] sm:$0xff]   ;;  %v1097_v23 = vld [vmem:[%s1151_s24 + $0x78] sm:$0xff]  }
  0x15   : > { %1007 = vmatpush3.bf16.msra.mxu0 %v1076_v2  ;;  %1060 = vmatpush3.bf16.msra.mxu1 %v1076_v2 }
  0x16   : > { %1008 = vmatprep.subr.bf16.mxu0 %v1077_v3  ;;  %1053 = vmatprep.subr.bf16.mxu1 %v1077_v3 }
  0x19   : > { %1009 = vmatpush3.bf16.msra.mxu0 %v1077_v3  ;;  %1061 = vmatpush3.bf16.msra.mxu1 %v1077_v3 }
  0x1a   : > { %1010 = vmatprep.subr.bf16.mxu0 %v1078_v6  ;;  %1054 = vmatprep.subr.bf16.mxu1 %v1078_v6 }
  0x1d   : > { %1011 = vmatpush3.bf16.msra.mxu0 %v1078_v6  ;;  %1062 = vmatpush3.bf16.msra.mxu1 %v1078_v6 }
  0x1e   : > { %1012 = vmatprep.subr.bf16.mxu0 %v1079_v7  ;;  %1055 = vmatprep.subr.bf16.mxu1 %v1079_v7 }
  0x21   : > { %1013 = vmatpush3.bf16.msra.mxu0 %v1079_v7  ;;  %1063 = vmatpush3.bf16.msra.mxu1 %v1079_v7 }
  0x22   : > { %1014 = vmatprep.subr.bf16.mxu0 %v1080_v8  ;;  %1056 = vmatprep.subr.bf16.mxu1 %v1080_v8 }
  0x25   : > { %1015 = vmatpush3.bf16.msra.mxu0 %v1080_v8  ;;  %1064 = vmatpush3.bf16.msra.mxu1 %v1080_v8 }
  0x26   : > { %1016 = vmatprep.subr.bf16.mxu0 %v1081_v9  ;;  %1057 = vmatprep.subr.bf16.mxu1 %v1081_v9 }
  0x29   : > { %1017 = vmatpush3.bf16.msra.mxu0 %v1081_v9  ;;  %1065 = vmatpush3.bf16.msra.mxu1 %v1081_v9 }
  0x2c   : > { %1019 = vmatmul.mubr.bf16.vlgmr.msra.gmra.mxu0 %v1084_v10  ;;  %1035 = vmatmul.mubr.bf16.vlgmr.msra.gmra.mxu1 %v1085_v11 }
  0x2d   : > { %1022 = vmatprep.mubr.bf16.mxu0 %v1086_v12  ;;  %1038 = vmatprep.mubr.bf16.mxu1 %v1087_v13 }
  0x34   : > { %1023 = vmatmul.mubr.bf16.gmra.mxu0 %v1088_v14  ;;  %1039 = vmatmul.mubr.bf16.gmra.mxu1 %v1089_v15 }
  0x35   : > { %1026 = vmatprep.mubr.bf16.mxu0 %v1090_v16  ;;  %1042 = vmatprep.mubr.bf16.mxu1 %v1091_v17 }
  0x3c   : > { %1027 = vmatmul.mubr.bf16.gmra.mxu0 %v1092_v18  ;;  %1043 = vmatmul.mubr.bf16.gmra.mxu1 %v1093_v19 }
  0x3d   : > { %1030 = vmatprep.mubr.bf16.mxu0 %v1094_v20  ;;  %1046 = vmatprep.mubr.bf16.mxu1 %v1095_v21 }
  0x44   : > { %1031 = vmatmul.mubr.bf16.gmra.mxu0 %v1096_v22  ;;  %1047 = vmatmul.mubr.bf16.gmra.mxu1 %v1097_v23 }
  0xec   : > { %v1020_v25 = vpop.f32.mrf.mxu0  ;;  %v1036_v26 = vpop.f32.mrf.mxu1 }
  0xed   : > { %v417_v27 = vadd.f32 %v1020_v25, %v1187_v24  ;;  %v481_v28 = vadd.f32 %v1036_v26, %v1187_v24 }
  0xee   : > { %v408_v29 = vpop.f32.mrf.mxu0  ;;  %v472_v30 = vpop.f32.mrf.mxu1 }
  0xef   : > { %v409_v31 = vadd.f32 %v1187_v24, %v408_v29  ;;  %v473_v32 = vadd.f32 %v1187_v24, %v472_v30  ;;  %v537_v37 = vmax.f32 %v417_v27, 0.0  ;;  %v553_v38 = vmax.f32 %v481_v28, 0.0 }
  0xf0   : > { %v1021_v33 = vpop.f32.mrf.mxu0  ;;  %v1037_v34 = vpop.f32.mrf.mxu1 }
  0xf1   : > { %v420_v35 = vadd.f32 %v1021_v33, %v1187_v24  ;;  %v484_v36 = vadd.f32 %v1037_v34, %v1187_v24  ;;  %v535_v45 = vmax.f32 %v409_v31, 0.0  ;;  %v551_v46 = vmax.f32 %v473_v32, 0.0 }
  0xf2   : > { %v411_v39 = vpop.f32.mrf.mxu0  ;;  %v475_v40 = vpop.f32.mrf.mxu1 }
  0xf3   : > { %v538_v41 = vmax.f32 %v420_v35, 0.0  ;;  %v554_v42 = vmax.f32 %v484_v36, 0.0  ;;  %v412_v43 = vadd.f32 %v1187_v24, %v411_v39  ;;  %v476_v44 = vadd.f32 %v1187_v24, %v475_v40 }
  0xf4   : > { %v1024_v47 = vpop.f32.mrf.mxu0  ;;  %v1040_v48 = vpop.f32.mrf.mxu1 }
  0xf5   : > { %v891_v49 = vpack.c.bf16 %v538_v41, %v537_v37  ;;  %v931_v50 = vpack.c.bf16 %v554_v42, %v553_v38  ;;  %v536_v51 = vmax.f32 %v412_v43, 0.0  ;;  %v552_v52 = vmax.f32 %v476_v44, 0.0 }
  0xf6   : > { %v433_v53 = vadd.f32 %v1024_v47, %v1187_v24  ;;  %v497_v54 = vadd.f32 %v1040_v48, %v1187_v24  ;;  %v424_v55 = vpop.f32.mrf.mxu0  ;;  %v488_v56 = vpop.f32.mrf.mxu1 }
  0xf7   : > { %963 = vst [vmem:[%s1202_s13 + $0x8] sm:$0xff] %v891_v49   ;;  %971 = vst [vmem:[%s1202_s13 + $0x48] sm:$0xff] %v931_v50   ;;  %v886_v57 = vpack.c.bf16 %v536_v51, %v535_v45  ;;  %v926_v58 = vpack.c.bf16 %v552_v52, %v551_v46  ;;  %v425_v59 = vadd.f32 %v1187_v24, %v424_v55 }
  0xf8   : > { %v489_v60 = vadd.f32 %v1187_v24, %v488_v56  ;;  %v1025_v61 = vpop.f32.mrf.mxu0  ;;  %v1041_v62 = vpop.f32.mrf.mxu1  ;;  %v541_v1 = vmax.f32 %v433_v53, 0.0  ;;  %v557_v2 = vmax.f32 %v497_v54, 0.0 }
  0xf9   : > { %887 = vst [vmem:[%s1202_s13] sm:$0xff] %v886_v57   ;;  %970 = vst [vmem:[%s1202_s13 + $0x40] sm:$0xff] %v926_v58   ;;  %v436_v63 = vadd.f32 %v1025_v61, %v1187_v24  ;;  %v500_v0 = vadd.f32 %v1041_v62, %v1187_v24  ;;  %v539_v9 = vmax.f32 %v425_v59, 0.0 }
  0xfa   : > { %v427_v3 = vpop.f32.mrf.mxu0  ;;  %v491_v4 = vpop.f32.mrf.mxu1  ;;  %v555_v10 = vmax.f32 %v489_v60, 0.0 }
  0xfb   : > { %v542_v5 = vmax.f32 %v436_v63, 0.0  ;;  %v558_v6 = vmax.f32 %v500_v0, 0.0  ;;  %v428_v7 = vadd.f32 %v1187_v24, %v427_v3  ;;  %v492_v8 = vadd.f32 %v1187_v24, %v491_v4 }
  0xfc   : > { %v1028_v11 = vpop.f32.mrf.mxu0  ;;  %v1044_v12 = vpop.f32.mrf.mxu1 }
  0xfd   : > { %v901_v13 = vpack.c.bf16 %v542_v5, %v541_v1  ;;  %v941_v14 = vpack.c.bf16 %v558_v6, %v557_v2  ;;  %v540_v15 = vmax.f32 %v428_v7, 0.0  ;;  %v556_v16 = vmax.f32 %v492_v8, 0.0 }
  0xfe   : > { %v449_v17 = vadd.f32 %v1028_v11, %v1187_v24  ;;  %v513_v18 = vadd.f32 %v1044_v12, %v1187_v24  ;;  %v440_v19 = vpop.f32.mrf.mxu0  ;;  %v504_v20 = vpop.f32.mrf.mxu1 }
  0xff   : > { %965 = vst [vmem:[%s1202_s13 + $0x18] sm:$0xff] %v901_v13   ;;  %973 = vst [vmem:[%s1202_s13 + $0x58] sm:$0xff] %v941_v14   ;;  %v896_v21 = vpack.c.bf16 %v540_v15, %v539_v9  ;;  %v936_v22 = vpack.c.bf16 %v556_v16, %v555_v10  ;;  %v441_v23 = vadd.f32 %v1187_v24, %v440_v19 }
 0x100   : > { %v505_v25 = vadd.f32 %v1187_v24, %v504_v20  ;;  %v1029_v26 = vpop.f32.mrf.mxu0  ;;  %v1045_v27 = vpop.f32.mrf.mxu1  ;;  %v545_v30 = vmax.f32 %v449_v17, 0.0  ;;  %v561_v31 = vmax.f32 %v513_v18, 0.0 }
 0x101   : > { %964 = vst [vmem:[%s1202_s13 + $0x10] sm:$0xff] %v896_v21   ;;  %972 = vst [vmem:[%s1202_s13 + $0x50] sm:$0xff] %v936_v22   ;;  %v452_v28 = vadd.f32 %v1029_v26, %v1187_v24  ;;  %v516_v29 = vadd.f32 %v1045_v27, %v1187_v24  ;;  %v543_v38 = vmax.f32 %v441_v23, 0.0 }
 0x102   : > { %v443_v32 = vpop.f32.mrf.mxu0  ;;  %v507_v33 = vpop.f32.mrf.mxu1  ;;  %v559_v39 = vmax.f32 %v505_v25, 0.0 }
 0x103   : > { %v546_v34 = vmax.f32 %v452_v28, 0.0  ;;  %v562_v35 = vmax.f32 %v516_v29, 0.0  ;;  %v444_v36 = vadd.f32 %v1187_v24, %v443_v32  ;;  %v508_v37 = vadd.f32 %v1187_v24, %v507_v33 }
 0x104   : > { %v1032_v40 = vpop.f32.mrf.mxu0  ;;  %v1048_v41 = vpop.f32.mrf.mxu1 }
 0x105   : > { %v911_v42 = vpack.c.bf16 %v546_v34, %v545_v30  ;;  %v951_v43 = vpack.c.bf16 %v562_v35, %v561_v31  ;;  %v544_v44 = vmax.f32 %v444_v36, 0.0  ;;  %v560_v45 = vmax.f32 %v508_v37, 0.0 }
 0x106   : > { %v465_v46 = vadd.f32 %v1032_v40, %v1187_v24  ;;  %v529_v47 = vadd.f32 %v1048_v41, %v1187_v24  ;;  %v456_v48 = vpop.f32.mrf.mxu0  ;;  %v520_v49 = vpop.f32.mrf.mxu1 }
 0x107   : > { %967 = vst [vmem:[%s1202_s13 + $0x28] sm:$0xff] %v911_v42   ;;  %975 = vst [vmem:[%s1202_s13 + $0x68] sm:$0xff] %v951_v43   ;;  %v906_v50 = vpack.c.bf16 %v544_v44, %v543_v38  ;;  %v946_v51 = vpack.c.bf16 %v560_v45, %v559_v39  ;;  %v457_v52 = vadd.f32 %v1187_v24, %v456_v48 }
 0x108   : > { %v521_v53 = vadd.f32 %v1187_v24, %v520_v49  ;;  %v1033_v54 = vpop.f32.mrf.mxu0  ;;  %v1049_v55 = vpop.f32.mrf.mxu1  ;;  %v549_v58 = vmax.f32 %v465_v46, 0.0  ;;  %v565_v59 = vmax.f32 %v529_v47, 0.0 }
 0x109   : > { %966 = vst [vmem:[%s1202_s13 + $0x20] sm:$0xff] %v906_v50   ;;  %974 = vst [vmem:[%s1202_s13 + $0x60] sm:$0xff] %v946_v51   ;;  %v468_v56 = vadd.f32 %v1033_v54, %v1187_v24  ;;  %v532_v57 = vadd.f32 %v1049_v55, %v1187_v24  ;;  %v547_v2 = vmax.f32 %v457_v52, 0.0 }
 0x10a   : > { %v459_v60 = vpop.f32.mrf.mxu0  ;;  %v523_v61 = vpop.f32.mrf.mxu1  ;;  %v563_v3 = vmax.f32 %v521_v53, 0.0 }
 0x10b   : > { %v550_v62 = vmax.f32 %v468_v56, 0.0  ;;  %v566_v63 = vmax.f32 %v532_v57, 0.0  ;;  %v460_v0 = vadd.f32 %v1187_v24, %v459_v60  ;;  %v524_v1 = vadd.f32 %v1187_v24, %v523_v61 }
 0x10d   : > { %v921_v4 = vpack.c.bf16 %v550_v62, %v549_v58  ;;  %v961_v5 = vpack.c.bf16 %v566_v63, %v565_v59  ;;  %v548_v6 = vmax.f32 %v460_v0, 0.0  ;;  %v564_v7 = vmax.f32 %v524_v1, 0.0 }
 0x10f   : > { %969 = vst [vmem:[%s1202_s13 + $0x38] sm:$0xff] %v921_v4   ;;  %977 = vst [vmem:[%s1202_s13 + $0x78] sm:$0xff] %v961_v5   ;;  %v916_v8 = vpack.c.bf16 %v548_v6, %v547_v2  ;;  %v956_v9 = vpack.c.bf16 %v564_v7, %v563_v3 }
 0x111   : > { %968 = vst [vmem:[%s1202_s13 + $0x30] sm:$0xff] %v916_v8   ;;  %976 = vst [vmem:[%s1202_s13 + $0x70] sm:$0xff] %v956_v9  }
 0x112 PF: > { %s13_s12 = sadd.s32 1, %s1104_s12  }
 0x113   : > { %p10_p4 = scmp.ge.s32.totalorder %s13_s12, 4  }
 0x115   :  { %12 = sbr.rel (!%p10_p4) target bundleno = 1 (0x1), region = 62 }

// kernel: _lambda_.6
= control target key start
LH: loop header
LB: loop body
LE: loop exit
PB: predicated region body
PF: predicated region fallthrough
CT: control target
= control target key end

     0   :  { %s836_s1 = inlined_call_operand.vmem [shape: bf16[256,128], index: 1, kind: input, shape index: {}]   ;;  %s837_s0 = inlined_call_operand.vmem [shape: bf16[128,256], index: 0, kind: input, shape index: {}]   ;;  %s838_s2 = inlined_call_operand.vmem [shape: f32[1,128], index: 2, kind: input, shape index: {}]   ;;  %s839_s3 = inlined_call_operand.vmem [shape: bf16[128,128], index: 3, kind: output, shape index: {}]  }
   0x1   :  { %v635_v0 = vld [vmem:[%s836_s1 + $0x78] sm:$0xff]   ;;  %v637_v2 = vld [vmem:[%s836_s1 + $0x70] sm:$0xff]   ;;  %v639_v4 = vld [vmem:[%s836_s1 + $0x68] sm:$0xff]  }
   0x2   :  { %v636_v1 = vld [vmem:[%s836_s1 + $0x38] sm:$0xff]   ;;  %555 = vmatprep.subr.bf16.mxu0 %v635_v0  ;;  %619 = vmatprep.subr.bf16.mxu1 %v635_v0  ;;  %v638_v3 = vld [vmem:[%s836_s1 + $0x30] sm:$0xff]   ;;  %v640_v5 = vld [vmem:[%s836_s1 + $0x28] sm:$0xff]  }
   0x3   :  { %556 = vmatpush3.bf16.msra.mxu0 %v636_v1  ;;  %627 = vmatpush3.bf16.msra.mxu1 %v636_v1  ;;  %v641_v6 = vld [vmem:[%s836_s1 + $0x60] sm:$0xff]   ;;  %v643_v8 = vld [vmem:[%s836_s1 + $0x58] sm:$0xff]   ;;  %v645_v10 = vld [vmem:[%s836_s1 + $0x50] sm:$0xff]  }
   0x4   :  { %557 = vmatprep.subr.bf16.mxu0 %v637_v2  ;;  %620 = vmatprep.subr.bf16.mxu1 %v637_v2  ;;  %v642_v7 = vld [vmem:[%s836_s1 + $0x20] sm:$0xff]   ;;  %v644_v9 = vld [vmem:[%s836_s1 + $0x18] sm:$0xff]   ;;  %v646_v13 = vld [vmem:[%s836_s1 + $0x10] sm:$0xff]  }
   0x5   :  { %v653_v11 = vld [vmem:[%s837_s0 + $0x4] ss:$8 sps:$4 sm:$0xff]   ;;  %v651_v18 = vld [vmem:[%s837_s0] ss:$8 sps:$4 sm:$0xff]   ;;  %v657_v20 = vld [vmem:[%s837_s0 + $0x14] ss:$8 sps:$4 sm:$0xff]  }
   0x6   :  { %v656_v12 = vld [vmem:[%s837_s0 + $0x44] ss:$8 sps:$4 sm:$0xff]   ;;  %278 = vmatprep.mubr.bf16.mxu0 %v653_v11  ;;  %v654_v19 = vld [vmem:[%s837_s0 + $0x40] ss:$8 sps:$4 sm:$0xff]   ;;  %v659_v21 = vld [vmem:[%s837_s0 + $0x54] ss:$8 sps:$4 sm:$0xff]  }
   0x7   :  { %558 = vmatpush3.bf16.msra.mxu0 %v638_v3  ;;  %628 = vmatpush3.bf16.msra.mxu1 %v638_v3  ;;  %v647_v14 = vld [vmem:[%s836_s1 + $0x48] sm:$0xff]   ;;  %v649_v16 = vld [vmem:[%s836_s1 + $0x40] sm:$0xff]   ;;  %v661_v22 = vld [vmem:[%s837_s0 + $0x10] ss:$8 sps:$4 sm:$0xff]  }
   0x8   :  { %559 = vmatprep.subr.bf16.mxu0 %v639_v4  ;;  %621 = vmatprep.subr.bf16.mxu1 %v639_v4  ;;  %v648_v15 = vld [vmem:[%s836_s1 + $0x8] sm:$0xff]   ;;  %v650_v17 = vld [vmem:[%s836_s1] sm:$0xff]   ;;  %v662_v23 = vld [vmem:[%s837_s0 + $0x50] ss:$8 sps:$4 sm:$0xff]  }
   0x9   :  { %310 = vmatprep.mubr.bf16.mxu1 %v656_v12  ;;  %v663_v24 = vld [vmem:[%s837_s0 + $0x24] ss:$8 sps:$4 sm:$0xff]   ;;  %v667_v26 = vld [vmem:[%s837_s0 + $0x20] ss:$8 sps:$4 sm:$0xff]   ;;  %v669_v28 = vld [vmem:[%s837_s0 + $0x34] ss:$8 sps:$4 sm:$0xff]  }
   0xa   :  { %v665_v25 = vld [vmem:[%s837_s0 + $0x64] ss:$8 sps:$4 sm:$0xff]   ;;  %v668_v27 = vld [vmem:[%s837_s0 + $0x60] ss:$8 sps:$4 sm:$0xff]   ;;  %v671_v29 = vld [vmem:[%s837_s0 + $0x74] ss:$8 sps:$4 sm:$0xff]  }
   0xb   :  { %560 = vmatpush3.bf16.msra.mxu0 %v640_v5  ;;  %629 = vmatpush3.bf16.msra.mxu1 %v640_v5  ;;  %v673_v30 = vld [vmem:[%s837_s0 + $0x30] ss:$8 sps:$4 sm:$0xff]   ;;  %v794_v36 = vld [vmem:[%s838_s2] ss:$0 sm:$0xff] }
   0xc   :  { %561 = vmatprep.subr.bf16.mxu0 %v641_v6  ;;  %622 = vmatprep.subr.bf16.mxu1 %v641_v6  ;;  %v674_v31 = vld [vmem:[%s837_s0 + $0x70] ss:$8 sps:$4 sm:$0xff]  }
   0xf   :  { %562 = vmatpush3.bf16.msra.mxu0 %v642_v7  ;;  %630 = vmatpush3.bf16.msra.mxu1 %v642_v7 }
  0x10   :  { %563 = vmatprep.subr.bf16.mxu0 %v643_v8  ;;  %623 = vmatprep.subr.bf16.mxu1 %v643_v8 }
  0x13   :  { %564 = vmatpush3.bf16.msra.mxu0 %v644_v9  ;;  %631 = vmatpush3.bf16.msra.mxu1 %v644_v9 }
  0x14   :  { %565 = vmatprep.subr.bf16.mxu0 %v645_v10  ;;  %624 = vmatprep.subr.bf16.mxu1 %v645_v10 }
  0x17   :  { %566 = vmatpush3.bf16.msra.mxu0 %v646_v13  ;;  %632 = vmatpush3.bf16.msra.mxu1 %v646_v13 }
  0x18   :  { %567 = vmatprep.subr.bf16.mxu0 %v647_v14  ;;  %625 = vmatprep.subr.bf16.mxu1 %v647_v14 }
  0x1b   :  { %568 = vmatpush3.bf16.msra.mxu0 %v648_v15  ;;  %633 = vmatpush3.bf16.msra.mxu1 %v648_v15 }
  0x1c   :  { %569 = vmatprep.subr.bf16.mxu0 %v649_v16  ;;  %626 = vmatprep.subr.bf16.mxu1 %v649_v16 }
  0x1f   :  { %570 = vmatpush3.bf16.msra.mxu0 %v650_v17  ;;  %634 = vmatpush3.bf16.msra.mxu1 %v650_v17 }
  0x22   :  { %279 = vmatmul.mubr.bf16.vlgmr.msra.gmra.mxu0 %v651_v18  ;;  %311 = vmatmul.mubr.bf16.vlgmr.msra.gmra.mxu1 %v654_v19 }
  0x23   :  { %286 = vmatprep.mubr.bf16.mxu0 %v657_v20  ;;  %318 = vmatprep.mubr.bf16.mxu1 %v659_v21 }
  0x2a   :  { %287 = vmatmul.mubr.bf16.gmra.mxu0 %v661_v22  ;;  %319 = vmatmul.mubr.bf16.gmra.mxu1 %v662_v23 }
  0x2b   :  { %294 = vmatprep.mubr.bf16.mxu0 %v663_v24  ;;  %326 = vmatprep.mubr.bf16.mxu1 %v665_v25 }
  0x32   :  { %295 = vmatmul.mubr.bf16.gmra.mxu0 %v667_v26  ;;  %327 = vmatmul.mubr.bf16.gmra.mxu1 %v668_v27 }
  0x33   :  { %302 = vmatprep.mubr.bf16.mxu0 %v669_v28  ;;  %334 = vmatprep.mubr.bf16.mxu1 %v671_v29 }
  0x3a   :  { %303 = vmatmul.mubr.bf16.gmra.mxu0 %v673_v30  ;;  %335 = vmatmul.mubr.bf16.gmra.mxu1 %v674_v31 }
  0xe2   :  { %v571_v32 = vpop.f32.mrf.mxu0  ;;  %v595_v33 = vpop.f32.mrf.mxu1 }
  0xe4   :  { %v572_v34 = vpop.f32.mrf.mxu0  ;;  %v596_v35 = vpop.f32.mrf.mxu1 }
  0xe5   :  { %v573_v37 = vadd.f32 %v572_v34, %v571_v32  ;;  %v597_v38 = vadd.f32 %v596_v35, %v595_v33 }
  0xe6   :  { %v574_v39 = vpop.f32.mrf.mxu0  ;;  %v598_v40 = vpop.f32.mrf.mxu1 }
  0xe7   :  { %v281_v41 = vadd.f32 %v573_v37, %v794_v36  ;;  %v313_v42 = vadd.f32 %v597_v38, %v794_v36 }
  0xe8   :  { %v575_v43 = vpop.f32.mrf.mxu0  ;;  %v599_v44 = vpop.f32.mrf.mxu1 }
  0xe9   :  { %v576_v45 = vadd.f32 %v575_v43, %v574_v39  ;;  %v600_v46 = vadd.f32 %v599_v44, %v598_v40  ;;  %v343_v51 = vmax.f32 %v281_v41, 0.0  ;;  %v351_v52 = vmax.f32 %v313_v42, 0.0 }
  0xea   :  { %v577_v47 = vpop.f32.mrf.mxu0  ;;  %v601_v48 = vpop.f32.mrf.mxu1 }
  0xeb   :  { %v284_v49 = vadd.f32 %v576_v45, %v794_v36  ;;  %v316_v50 = vadd.f32 %v600_v46, %v794_v36 }
  0xec   :  { %v578_v53 = vpop.f32.mrf.mxu0  ;;  %v602_v54 = vpop.f32.mrf.mxu1 }
  0xed   :  { %v344_v55 = vmax.f32 %v284_v49, 0.0  ;;  %v352_v56 = vmax.f32 %v316_v50, 0.0  ;;  %v579_v57 = vadd.f32 %v578_v53, %v577_v47  ;;  %v603_v58 = vadd.f32 %v602_v54, %v601_v48 }
  0xee   :  { %v580_v59 = vpop.f32.mrf.mxu0  ;;  %v604_v60 = vpop.f32.mrf.mxu1 }
  0xef   :  { %v511_v61 = vpack.c.bf16 %v344_v55, %v343_v51  ;;  %v531_v62 = vpack.c.bf16 %v352_v56, %v351_v52  ;;  %v289_v63 = vadd.f32 %v579_v57, %v794_v36  ;;  %v321_v0 = vadd.f32 %v603_v58, %v794_v36 }
  0xf0   :  { %v581_v1 = vpop.f32.mrf.mxu0  ;;  %v605_v2 = vpop.f32.mrf.mxu1 }
  0xf1   :  { %512 = vst [vmem:[%s839_s3] sm:$0xff] %v511_v61   ;;  %551 = vst [vmem:[%s839_s3 + $0x20] sm:$0xff] %v531_v62   ;;  %v582_v3 = vadd.f32 %v581_v1, %v580_v59  ;;  %v606_v4 = vadd.f32 %v605_v2, %v604_v60  ;;  %v345_v9 = vmax.f32 %v289_v63, 0.0  ;;  %v353_v10 = vmax.f32 %v321_v0, 0.0 }
  0xf2   :  { %v583_v5 = vpop.f32.mrf.mxu0  ;;  %v607_v6 = vpop.f32.mrf.mxu1 }
  0xf3   :  { %v292_v7 = vadd.f32 %v582_v3, %v794_v36  ;;  %v324_v8 = vadd.f32 %v606_v4, %v794_v36 }
  0xf4   :  { %v584_v11 = vpop.f32.mrf.mxu0  ;;  %v608_v12 = vpop.f32.mrf.mxu1 }
  0xf5   :  { %v346_v13 = vmax.f32 %v292_v7, 0.0  ;;  %v354_v14 = vmax.f32 %v324_v8, 0.0  ;;  %v585_v15 = vadd.f32 %v584_v11, %v583_v5  ;;  %v609_v16 = vadd.f32 %v608_v12, %v607_v6 }
  0xf6   :  { %v586_v17 = vpop.f32.mrf.mxu0  ;;  %v610_v18 = vpop.f32.mrf.mxu1 }
  0xf7   :  { %v516_v19 = vpack.c.bf16 %v346_v13, %v345_v9  ;;  %v536_v20 = vpack.c.bf16 %v354_v14, %v353_v10  ;;  %v297_v21 = vadd.f32 %v585_v15, %v794_v36  ;;  %v329_v22 = vadd.f32 %v609_v16, %v794_v36 }
  0xf8   :  { %v587_v23 = vpop.f32.mrf.mxu0  ;;  %v611_v24 = vpop.f32.mrf.mxu1 }
  0xf9   :  { %548 = vst [vmem:[%s839_s3 + $0x8] sm:$0xff] %v516_v19   ;;  %552 = vst [vmem:[%s839_s3 + $0x28] sm:$0xff] %v536_v20   ;;  %v588_v25 = vadd.f32 %v587_v23, %v586_v17  ;;  %v612_v26 = vadd.f32 %v611_v24, %v610_v18  ;;  %v347_v31 = vmax.f32 %v297_v21, 0.0  ;;  %v355_v32 = vmax.f32 %v329_v22, 0.0 }
  0xfa   :  { %v589_v27 = vpop.f32.mrf.mxu0  ;;  %v613_v28 = vpop.f32.mrf.mxu1 }
  0xfb   :  { %v300_v29 = vadd.f32 %v588_v25, %v794_v36  ;;  %v332_v30 = vadd.f32 %v612_v26, %v794_v36 }
  0xfc   :  { %v590_v33 = vpop.f32.mrf.mxu0  ;;  %v614_v34 = vpop.f32.mrf.mxu1 }
  0xfd   :  { %v348_v35 = vmax.f32 %v300_v29, 0.0  ;;  %v356_v37 = vmax.f32 %v332_v30, 0.0  ;;  %v591_v38 = vadd.f32 %v590_v33, %v589_v27  ;;  %v615_v39 = vadd.f32 %v614_v34, %v613_v28 }
  0xfe   :  { %v592_v40 = vpop.f32.mrf.mxu0  ;;  %v616_v41 = vpop.f32.mrf.mxu1 }
  0xff   :  { %v521_v42 = vpack.c.bf16 %v348_v35, %v347_v31  ;;  %v541_v43 = vpack.c.bf16 %v356_v37, %v355_v32  ;;  %v305_v46 = vadd.f32 %v591_v38, %v794_v36  ;;  %v337_v47 = vadd.f32 %v615_v39, %v794_v36 }
 0x100   :  { %v593_v44 = vpop.f32.mrf.mxu0  ;;  %v617_v45 = vpop.f32.mrf.mxu1 }
 0x101   :  { %549 = vst [vmem:[%s839_s3 + $0x10] sm:$0xff] %v521_v42   ;;  %553 = vst [vmem:[%s839_s3 + $0x30] sm:$0xff] %v541_v43   ;;  %v594_v48 = vadd.f32 %v593_v44, %v592_v40  ;;  %v618_v49 = vadd.f32 %v617_v45, %v616_v41  ;;  %v349_v52 = vmax.f32 %v305_v46, 0.0  ;;  %v357_v53 = vmax.f32 %v337_v47, 0.0 }
 0x103   :  { %v308_v50 = vadd.f32 %v594_v48, %v794_v36  ;;  %v340_v51 = vadd.f32 %v618_v49, %v794_v36 }
 0x105   :  { %v350_v54 = vmax.f32 %v308_v50, 0.0  ;;  %v358_v55 = vmax.f32 %v340_v51, 0.0 }
 0x107   :  { %v526_v56 = vpack.c.bf16 %v350_v54, %v349_v52  ;;  %v546_v57 = vpack.c.bf16 %v358_v55, %v357_v53 }
 0x109   :  { %550 = vst [vmem:[%s839_s3 + $0x18] sm:$0xff] %v526_v56   ;;  %554 = vst [vmem:[%s839_s3 + $0x38] sm:$0xff] %v546_v57  }

// kernel: _lambda_.7
= control target key start
LH: loop header
LB: loop body
LE: loop exit
PB: predicated region body
PF: predicated region fallthrough
CT: control target
= control target key end

     0   :  { %s639_s1 = inlined_call_operand.vmem [shape: bf16[384,128], index: 1, kind: input, shape index: {}]   ;;  %s640_s0 = inlined_call_operand.vmem [shape: bf16[32,384], index: 0, kind: input, shape index: {}]   ;;  %s641_s2 = inlined_call_operand.vmem [shape: f32[1,128], index: 2, kind: input, shape index: {}]   ;;  %s642_s3 = inlined_call_operand.vmem [shape: bf16[32,128], index: 3, kind: output, shape index: {}]  }
   0x1   :  { %v488_v0 = vld [vmem:[%s639_s1 + $0x78] sm:$0xff]   ;;  %v490_v2 = vld [vmem:[%s639_s1 + $0x70] sm:$0xff]   ;;  %v493_v5 = vld [vmem:[%s639_s1 + $0x68] sm:$0xff]  }
   0x2   :  { %v489_v1 = vld [vmem:[%s639_s1 + $0x38] sm:$0xff]   ;;  %430 = vmatprep.subr.bf16.mxu0 %v488_v0  ;;  %v492_v4 = vld [vmem:[%s639_s1 + $0x30] sm:$0xff]   ;;  %v495_v7 = vld [vmem:[%s639_s1 + $0x28] sm:$0xff]  }
   0x3   :  { %431 = vmatpush3.bf16.msra.mxu0 %v489_v1  ;;  %v491_v3 = vld [vmem:[%s639_s1 + $0xb8] sm:$0xff]   ;;  %v494_v6 = vld [vmem:[%s639_s1 + $0xb0] sm:$0xff]   ;;  %v496_v8 = vld [vmem:[%s639_s1 + $0x60] sm:$0xff]  }
   0x4   :  { %432 = vmatprep.subr.bf16.mxu0 %v490_v2  ;;  %468 = vmatprep.subr.bf16.mxu1 %v491_v3  ;;  %v497_v9 = vld [vmem:[%s639_s1 + $0xa8] sm:$0xff]   ;;  %v498_v10 = vld [vmem:[%s639_s1 + $0x20] sm:$0xff]   ;;  %v499_v11 = vld [vmem:[%s639_s1 + $0x58] sm:$0xff]  }
   0x5   :  { %469 = vmatpush3.bf16.msra.mxu1 %v491_v3  ;;  %v500_v12 = vld [vmem:[%s639_s1 + $0xa0] sm:$0xff]   ;;  %v501_v13 = vld [vmem:[%s639_s1 + $0x18] sm:$0xff]   ;;  %v502_v15 = vld [vmem:[%s639_s1 + $0x50] sm:$0xff]  }
   0x6   :  { %470 = vmatprep.subr.bf16.mxu1 %v494_v6  ;;  %v503_v14 = vld [vmem:[%s639_s1 + $0x98] sm:$0xff]   ;;  %v504_v16 = vld [vmem:[%s639_s1 + $0x10] sm:$0xff]   ;;  %v505_v18 = vld [vmem:[%s639_s1 + $0x48] sm:$0xff]  }
   0x7   :  { %433 = vmatpush3.bf16.msra.mxu0 %v492_v4  ;;  %v506_v17 = vld [vmem:[%s639_s1 + $0x90] sm:$0xff]   ;;  %v507_v19 = vld [vmem:[%s639_s1 + $0x8] sm:$0xff]   ;;  %v508_v20 = vld [vmem:[%s639_s1 + $0x40] sm:$0xff]  }
   0x8   :  { %434 = vmatprep.subr.bf16.mxu0 %v493_v5  ;;  %v509_v21 = vld [vmem:[%s639_s1 + $0x88] sm:$0xff]   ;;  %v513_v22 = vld [vmem:[%s640_s0 + $0x4] ss:$12 sps:$4 sm:$0xff]   ;;  %v380_v32 = vld [vmem:[%s641_s2] ss:$0 sm:$0xff] }
   0x9   :  { %471 = vmatpush3.bf16.msra.mxu1 %v494_v6  ;;  %v510_v23 = vld [vmem:[%s639_s1] sm:$0xff]   ;;  %286 = vmatprep.mubr.bf16.mxu0 %v513_v22  ;;  %v515_v24 = vld [vmem:[%s640_s0 + $0x8] ss:$12 sps:$4 sm:$0xff]  }
   0xa   :  { %472 = vmatprep.subr.bf16.mxu1 %v497_v9  ;;  %v514_v25 = vld [vmem:[%s639_s1 + $0x80] sm:$0xff]   ;;  %484 = vmatprep.mubr.bf16.mxu1 %v515_v24  ;;  %v517_v27 = vld [vmem:[%s640_s0 + $0x1c] ss:$12 sps:$4 sm:$0xff]  }
   0xb   :  { %435 = vmatpush3.bf16.msra.mxu0 %v495_v7  ;;  %v511_v26 = vld [vmem:[%s640_s0] ss:$12 sps:$4 sm:$0xff]   ;;  %v519_v29 = vld [vmem:[%s640_s0 + $0x18] ss:$12 sps:$4 sm:$0xff]  }
   0xc   :  { %436 = vmatprep.subr.bf16.mxu0 %v496_v8  ;;  %v516_v28 = vld [vmem:[%s640_s0 + $0x20] ss:$12 sps:$4 sm:$0xff]  }
   0xd   :  { %473 = vmatpush3.bf16.msra.mxu1 %v497_v9 }
   0xe   :  { %474 = vmatprep.subr.bf16.mxu1 %v500_v12 }
   0xf   :  { %437 = vmatpush3.bf16.msra.mxu0 %v498_v10 }
  0x10   :  { %438 = vmatprep.subr.bf16.mxu0 %v499_v11 }
  0x11   :  { %475 = vmatpush3.bf16.msra.mxu1 %v500_v12 }
  0x12   :  { %476 = vmatprep.subr.bf16.mxu1 %v503_v14 }
  0x13   :  { %439 = vmatpush3.bf16.msra.mxu0 %v501_v13 }
  0x14   :  { %440 = vmatprep.subr.bf16.mxu0 %v502_v15 }
  0x15   :  { %477 = vmatpush3.bf16.msra.mxu1 %v503_v14 }
  0x16   :  { %478 = vmatprep.subr.bf16.mxu1 %v506_v17 }
  0x17   :  { %441 = vmatpush3.bf16.msra.mxu0 %v504_v16 }
  0x18   :  { %442 = vmatprep.subr.bf16.mxu0 %v505_v18 }
  0x19   :  { %479 = vmatpush3.bf16.msra.mxu1 %v506_v17 }
  0x1a   :  { %480 = vmatprep.subr.bf16.mxu1 %v509_v21 }
  0x1b   :  { %443 = vmatpush3.bf16.msra.mxu0 %v507_v19 }
  0x1c   :  { %444 = vmatprep.subr.bf16.mxu0 %v508_v20 }
  0x1d   :  { %481 = vmatpush3.bf16.msra.mxu1 %v509_v21 }
  0x1e   :  { %482 = vmatprep.subr.bf16.mxu1 %v514_v25 }
  0x1f   :  { %445 = vmatpush3.bf16.msra.mxu0 %v510_v23 }
  0x21   :  { %483 = vmatpush3.bf16.msra.mxu1 %v514_v25 }
  0x22   :  { %287 = vmatmul.mubr.bf16.vlgmr.msra.gmra.mxu0 %v511_v26 }
  0x23   :  { %294 = vmatprep.mubr.bf16.mxu0 %v517_v27 }
  0x24   :  { %485 = vmatmul.mubr.bf16.vlgmr.msra.gmra.mxu1 %v516_v28 }
  0x2a   :  { %295 = vmatmul.mubr.bf16.gmra.mxu0 %v519_v29 }
  0xe2   :  { %v446_v30 = vpop.f32.mrf.mxu0 }
  0xe4   :  { %v447_v31 = vpop.f32.mrf.mxu0  ;;  %v486_v34 = vpop.f32.mrf.mxu1 }
  0xe5   :  { %v448_v33 = vadd.f32 %v447_v31, %v446_v30 }
  0xe6   :  { %v449_v35 = vpop.f32.mrf.mxu0  ;;  %v337_v37 = vpop.f32.mrf.mxu1 }
  0xe7   :  { %v289_v36 = vadd.f32 %v448_v33, %v380_v32 }
  0xe8   :  { %v450_v38 = vpop.f32.mrf.mxu0  ;;  %v487_v40 = vpop.f32.mrf.mxu1 }
  0xe9   :  { %v451_v39 = vadd.f32 %v450_v38, %v449_v35  ;;  %v338_v42 = vadd.f32 %v337_v37, %v289_v36 }
  0xea   :  { %v452_v41 = vpop.f32.mrf.mxu0  ;;  %v340_v44 = vpop.f32.mrf.mxu1 }
  0xeb   :  { %v292_v43 = vadd.f32 %v451_v39, %v380_v32  ;;  %v352_v49 = vmax.f32 %v338_v42, 0.0 }
  0xec   :  { %v453_v45 = vpop.f32.mrf.mxu0 }
  0xed   :  { %v454_v46 = vadd.f32 %v453_v45, %v452_v41  ;;  %v341_v47 = vadd.f32 %v340_v44, %v292_v43 }
  0xee   :  { %v455_v48 = vpop.f32.mrf.mxu0 }
  0xef   :  { %v297_v50 = vadd.f32 %v454_v46, %v380_v32  ;;  %v353_v51 = vmax.f32 %v341_v47, 0.0 }
  0xf0   :  { %v456_v52 = vpop.f32.mrf.mxu0 }
  0xf1   :  { %v422_v53 = vpack.c.bf16 %v353_v51, %v352_v49  ;;  %v457_v54 = vadd.f32 %v456_v52, %v455_v48  ;;  %v346_v55 = vadd.f32 %v486_v34, %v297_v50 }
  0xf3   :  { %423 = vst [vmem:[%s642_s3] sm:$0xff] %v422_v53   ;;  %v300_v56 = vadd.f32 %v457_v54, %v380_v32  ;;  %v354_v58 = vmax.f32 %v346_v55, 0.0 }
  0xf5   :  { %v349_v57 = vadd.f32 %v487_v40, %v300_v56 }
  0xf7   :  { %v355_v59 = vmax.f32 %v349_v57, 0.0 }
  0xf9   :  { %v427_v60 = vpack.c.bf16 %v355_v59, %v354_v58 }
  0xfb   :  { %429 = vst [vmem:[%s642_s3 + $0x8] sm:$0xff] %v427_v60  }

// kernel: _lambda_.8
= control target key start
LH: loop header
LB: loop body
LE: loop exit
PB: predicated region body
PF: predicated region fallthrough
CT: control target
= control target key end

     0   :  { %s626_s1 = inlined_call_operand.vmem [shape: bf16[512,128], index: 1, kind: input, shape index: {}]   ;;  %s627_s0 = inlined_call_operand.vmem [shape: bf16[8,512], index: 0, kind: input, shape index: {}]   ;;  %s628_s2 = inlined_call_operand.vmem [shape: f32[1,128], index: 2, kind: input, shape index: {}]   ;;  %s629_s3 = inlined_call_operand.vmem [shape: bf16[8,128], index: 3, kind: output, shape index: {}]  }
   0x1   :  { %v462_v0 = vld [vmem:[%s626_s1 + $0x78] sm:$0xff]   ;;  %v466_v4 = vld [vmem:[%s626_s1 + $0x70] sm:$0xff]   ;;  %v470_v8 = vld [vmem:[%s626_s1 + $0x68] sm:$0xff]  }
   0x2   :  { %v463_v1 = vld [vmem:[%s626_s1 + $0xf8] sm:$0xff]   ;;  %418 = vmatprep.subr.bf16.mxu0 %v462_v0  ;;  %v467_v5 = vld [vmem:[%s626_s1 + $0xf0] sm:$0xff]   ;;  %v471_v9 = vld [vmem:[%s626_s1 + $0xe8] sm:$0xff]  }
   0x3   :  { %v464_v2 = vld [vmem:[%s626_s1 + $0x38] sm:$0xff]   ;;  %440 = vmatprep.subr.bf16.mxu1 %v463_v1  ;;  %v468_v6 = vld [vmem:[%s626_s1 + $0x30] sm:$0xff]   ;;  %v472_v10 = vld [vmem:[%s626_s1 + $0x28] sm:$0xff]  }
   0x4   :  { %v465_v3 = vld [vmem:[%s626_s1 + $0xb8] sm:$0xff]   ;;  %419 = vmatpush3.bf16.msra.mxu0 %v464_v2  ;;  %v469_v7 = vld [vmem:[%s626_s1 + $0xb0] sm:$0xff]   ;;  %v473_v11 = vld [vmem:[%s626_s1 + $0xa8] sm:$0xff]  }
   0x5   :  { %441 = vmatpush3.bf16.msra.mxu1 %v465_v3  ;;  %420 = vmatprep.subr.bf16.mxu0 %v466_v4  ;;  %v474_v12 = vld [vmem:[%s626_s1 + $0x60] sm:$0xff]   ;;  %v478_v16 = vld [vmem:[%s626_s1 + $0x58] sm:$0xff]   ;;  %v482_v20 = vld [vmem:[%s626_s1 + $0x50] sm:$0xff]  }
   0x6   :  { %442 = vmatprep.subr.bf16.mxu1 %v467_v5  ;;  %v475_v13 = vld [vmem:[%s626_s1 + $0xe0] sm:$0xff]   ;;  %v479_v17 = vld [vmem:[%s626_s1 + $0xd8] sm:$0xff]   ;;  %v483_v21 = vld [vmem:[%s626_s1 + $0xd0] sm:$0xff]  }
   0x7   :  { %v476_v14 = vld [vmem:[%s626_s1 + $0x20] sm:$0xff]   ;;  %v480_v18 = vld [vmem:[%s626_s1 + $0x18] sm:$0xff]   ;;  %v484_v22 = vld [vmem:[%s626_s1 + $0x10] sm:$0xff]  }
   0x8   :  { %421 = vmatpush3.bf16.msra.mxu0 %v468_v6  ;;  %v477_v15 = vld [vmem:[%s626_s1 + $0xa0] sm:$0xff]   ;;  %v481_v19 = vld [vmem:[%s626_s1 + $0x98] sm:$0xff]   ;;  %v485_v23 = vld [vmem:[%s626_s1 + $0x90] sm:$0xff]  }
   0x9   :  { %443 = vmatpush3.bf16.msra.mxu1 %v469_v7  ;;  %422 = vmatprep.subr.bf16.mxu0 %v470_v8  ;;  %v486_v24 = vld [vmem:[%s626_s1 + $0x48] sm:$0xff]   ;;  %v490_v28 = vld [vmem:[%s626_s1 + $0x40] sm:$0xff]  }
   0xa   :  { %444 = vmatprep.subr.bf16.mxu1 %v471_v9  ;;  %v487_v25 = vld [vmem:[%s626_s1 + $0xc8] sm:$0xff]   ;;  %v491_v29 = vld [vmem:[%s626_s1 + $0xc0] sm:$0xff]  }
   0xb   :  { %v488_v26 = vld [vmem:[%s626_s1 + $0x8] sm:$0xff]   ;;  %v492_v30 = vld [vmem:[%s626_s1] sm:$0xff]  }
   0xc   :  { %423 = vmatpush3.bf16.msra.mxu0 %v472_v10  ;;  %v489_v27 = vld [vmem:[%s626_s1 + $0x88] sm:$0xff]   ;;  %v493_v31 = vld [vmem:[%s626_s1 + $0x80] sm:$0xff]  }
   0xd   :  { %445 = vmatpush3.bf16.msra.mxu1 %v473_v11  ;;  %424 = vmatprep.subr.bf16.mxu0 %v474_v12  ;;  %v15_v32 = vld [vmem:[%s627_s0] sm:$0xff]  ;;  %v16_v33 = vld [vmem:[%s627_s0 + $0x8] sm:$0xff] }
   0xe   :  { %446 = vmatprep.subr.bf16.mxu1 %v475_v13  ;;  %v382_v34 = vcombine.low %v15_v32, %v15_v32  ;;  %v383_v35 = vcombine.high %v15_v32, %v15_v32  ;;  %v384_v36 = vcombine.low %v16_v33, %v16_v33  ;;  %v385_v37 = vcombine.high %v16_v33, %v16_v33  ;;  %v381_v40 = vld [vmem:[%s628_s2] ss:$0 sm:$0xff] }
  0x10   :  { %425 = vmatpush3.bf16.msra.mxu0 %v476_v14  ;;  %326 = vmatprep.mubr.bf16.mxu0 %v383_v35 }
  0x11   :  { %447 = vmatpush3.bf16.msra.mxu1 %v477_v15  ;;  %426 = vmatprep.subr.bf16.mxu0 %v478_v16 }
  0x12   :  { %448 = vmatprep.subr.bf16.mxu1 %v479_v17  ;;  %366 = vmatprep.mubr.bf16.mxu1 %v385_v37 }
  0x14   :  { %427 = vmatpush3.bf16.msra.mxu0 %v480_v18 }
  0x15   :  { %449 = vmatpush3.bf16.msra.mxu1 %v481_v19  ;;  %428 = vmatprep.subr.bf16.mxu0 %v482_v20 }
  0x16   :  { %450 = vmatprep.subr.bf16.mxu1 %v483_v21 }
  0x18   :  { %429 = vmatpush3.bf16.msra.mxu0 %v484_v22 }
  0x19   :  { %451 = vmatpush3.bf16.msra.mxu1 %v485_v23  ;;  %430 = vmatprep.subr.bf16.mxu0 %v486_v24 }
  0x1a   :  { %452 = vmatprep.subr.bf16.mxu1 %v487_v25 }
  0x1c   :  { %431 = vmatpush3.bf16.msra.mxu0 %v488_v26 }
  0x1d   :  { %453 = vmatpush3.bf16.msra.mxu1 %v489_v27  ;;  %432 = vmatprep.subr.bf16.mxu0 %v490_v28 }
  0x1e   :  { %454 = vmatprep.subr.bf16.mxu1 %v491_v29 }
  0x20   :  { %433 = vmatpush3.bf16.msra.mxu0 %v492_v30 }
  0x21   :  { %455 = vmatpush3.bf16.msra.mxu1 %v493_v31 }
  0x23   :  { %327 = vmatmul.mubr.bf16.vlgmr.msra.gmra.mxu0 %v382_v34 }
  0x24   :  { %367 = vmatmul.mubr.bf16.vlgmr.msra.gmra.mxu1 %v384_v36 }
  0xe3   :  { %v434_v38 = vpop.f32.mrf.mxu0 }
  0xe4   :  { %v456_v39 = vpop.f32.mrf.mxu1 }
  0xe5   :  { %v435_v41 = vpop.f32.mrf.mxu0 }
  0xe6   :  { %v457_v42 = vpop.f32.mrf.mxu1  ;;  %v436_v43 = vadd.f32 %v435_v41, %v434_v38 }
  0xe7   :  { %v437_v44 = vpop.f32.mrf.mxu0  ;;  %v458_v47 = vadd.f32 %v457_v42, %v456_v39 }
  0xe8   :  { %v459_v45 = vpop.f32.mrf.mxu1  ;;  %v329_v46 = vadd.f32 %v436_v43, %v381_v40 }
  0xe9   :  { %v438_v48 = vpop.f32.mrf.mxu0 }
  0xea   :  { %v460_v49 = vpop.f32.mrf.mxu1  ;;  %v369_v50 = vadd.f32 %v458_v47, %v329_v46 }
  0xec   :  { %v374_v51 = vmax.f32 %v369_v50, 0.0 }
  0xee   :  { %v375_v52 = vpack.c.bf16 %v374_v51, %v374_v51 }
  0xf0   :  { %376 = vst [vmem:[%s629_s3] sm:$0xf] %v375_v52 }

// kernel: _lambda_.9
= control target key start
LH: loop header
LB: loop body
LE: loop exit
PB: predicated region body
PF: predicated region fallthrough
CT: control target
= control target key end

     0   :  { %vm4761_vm0 = vmmov 0   ;;  %s6159_s1 = inlined_call_operand.vmem [shape: bf16[1920,384], index: 1, kind: input, shape index: {}]   ;;  %s6160_s0 = inlined_call_operand.vmem [shape: bf16[8,1920], index: 0, kind: input, shape index: {}]   ;;  %s6161_s2 = inlined_call_operand.vmem [shape: f32[1,384], index: 2, kind: input, shape index: {}]   ;;  %s6162_s3 = inlined_call_operand.vmem [shape: bf16[384,128], index: 3, kind: input, shape index: {}]   ;;  %s6163_s5 = inlined_call_operand.vmem [shape: bf16[128,128], index: 5, kind: input, shape index: {}]   ;;  %s6164_s4 = inlined_call_operand.vmem [shape: f32[1,128], index: 4, kind: input, shape index: {}]   ;;  %s6165_s6 = inlined_call_operand.vmem [shape: f32[1,128], index: 6, kind: input, shape index: {}]   ;;  %s6166_s7 = inlined_call_operand.vmem [shape: f32[8,128], index: 7, kind: output, shape index: {}]  }
   0x1   :  { %v4231_v0 = vld [vmem:[%s6159_s1 + $0xac] ss:$12 sps:$4 sm:$0xff]   ;;  %v4233_v1 = vld [vmem:[%s6159_s1 + $0xa8] ss:$12 sps:$4 sm:$0xff]   ;;  %v4239_v5 = vld [vmem:[%s6159_s1 + $0x90] ss:$12 sps:$4 sm:$0xff]  }
   0x2   :  { %2505 = vmatprep.subr.bf16.mxu0 %v4231_v0  ;;  %v4234_v2 = vld [vmem:[%s6159_s1 + $0x22c] ss:$12 sps:$4 sm:$0xff]   ;;  %v4236_v3 = vld [vmem:[%s6159_s1 + $0x228] ss:$12 sps:$4 sm:$0xff]   ;;  %v4242_v7 = vld [vmem:[%s6159_s1 + $0x210] ss:$12 sps:$4 sm:$0xff]  }
   0x3   :  { %2506 = vmatpush1.bf16.msra.mxu0 %v4233_v1  ;;  %v4237_v4 = vld [vmem:[%s6159_s1 + $0x94] ss:$12 sps:$4 sm:$0xff]   ;;  %2546 = vmatprep.subr.bf16.mxu1 %v4234_v2  ;;  %v4243_v8 = vld [vmem:[%s6159_s1 + $0x7c] ss:$12 sps:$4 sm:$0xff]   ;;  %v4245_v9 = vld [vmem:[%s6159_s1 + $0x78] ss:$12 sps:$4 sm:$0xff]  }
   0x4   :  { %v4240_v6 = vld [vmem:[%s6159_s1 + $0x214] ss:$12 sps:$4 sm:$0xff]   ;;  %2547 = vmatpush1.bf16.msra.mxu1 %v4236_v3  ;;  %2507 = vmatprep.subr.bf16.mxu0 %v4237_v4  ;;  %v4246_v10 = vld [vmem:[%s6159_s1 + $0x1fc] ss:$12 sps:$4 sm:$0xff]   ;;  %v4249_v11 = vld [vmem:[%s6159_s1 + $0x64] ss:$12 sps:$4 sm:$0xff]  }
   0x5   :  { %2548 = vmatprep.subr.bf16.mxu1 %v4240_v6  ;;  %v4248_v12 = vld [vmem:[%s6159_s1 + $0x1f8] ss:$12 sps:$4 sm:$0xff]   ;;  %v4251_v14 = vld [vmem:[%s6159_s1 + $0x60] ss:$12 sps:$4 sm:$0xff]   ;;  %v4257_v18 = vld [vmem:[%s6159_s1 + $0x48] ss:$12 sps:$4 sm:$0xff]  }
   0x6   :  { %v4252_v13 = vld [vmem:[%s6159_s1 + $0x1e4] ss:$12 sps:$4 sm:$0xff]   ;;  %v4255_v15 = vld [vmem:[%s6159_s1 + $0x4c] ss:$12 sps:$4 sm:$0xff]   ;;  %v4261_v19 = vld [vmem:[%s6159_s1 + $0x34] ss:$12 sps:$4 sm:$0xff]  }
   0x7   :  { %2508 = vmatpush1.bf16.msra.mxu0 %v4239_v5  ;;  %v4254_v16 = vld [vmem:[%s6159_s1 + $0x1e0] ss:$12 sps:$4 sm:$0xff]   ;;  %v4260_v20 = vld [vmem:[%s6159_s1 + $0x1c8] ss:$12 sps:$4 sm:$0xff]   ;;  %v4263_v22 = vld [vmem:[%s6159_s1 + $0x30] ss:$12 sps:$4 sm:$0xff]  }
   0x8   :  { %2509 = vmatprep.subr.bf16.mxu0 %v4243_v8  ;;  %2549 = vmatpush1.bf16.msra.mxu1 %v4242_v7  ;;  %v4258_v17 = vld [vmem:[%s6159_s1 + $0x1cc] ss:$12 sps:$4 sm:$0xff]   ;;  %v4264_v21 = vld [vmem:[%s6159_s1 + $0x1b4] ss:$12 sps:$4 sm:$0xff]   ;;  %v4267_v23 = vld [vmem:[%s6159_s1 + $0x1c] ss:$12 sps:$4 sm:$0xff]  }
   0x9   :  { %2550 = vmatprep.subr.bf16.mxu1 %v4246_v10  ;;  %v4266_v24 = vld [vmem:[%s6159_s1 + $0x1b0] ss:$12 sps:$4 sm:$0xff]   ;;  %v4269_v26 = vld [vmem:[%s6159_s1 + $0x18] ss:$12 sps:$4 sm:$0xff]   ;;  %v4275_v30 = vld [vmem:[%s6159_s1] ss:$12 sps:$4 sm:$0xff]  }
   0xa   :  { %v4270_v25 = vld [vmem:[%s6159_s1 + $0x19c] ss:$12 sps:$4 sm:$0xff]   ;;  %v4273_v27 = vld [vmem:[%s6159_s1 + $0x4] ss:$12 sps:$4 sm:$0xff]   ;;  %v4279_v31 = vld [vmem:[%s6159_s1 + $0x16c] ss:$12 sps:$4 sm:$0xff]  }
   0xb   :  { %2510 = vmatpush1.bf16.msra.mxu0 %v4245_v9  ;;  %v4272_v28 = vld [vmem:[%s6159_s1 + $0x198] ss:$12 sps:$4 sm:$0xff]   ;;  %v4278_v32 = vld [vmem:[%s6159_s1 + $0x180] ss:$12 sps:$4 sm:$0xff]   ;;  %v4281_v34 = vld [vmem:[%s6159_s1 + $0x168] ss:$12 sps:$4 sm:$0xff]  }
   0xc   :  { %2511 = vmatprep.subr.bf16.mxu0 %v4249_v11  ;;  %2551 = vmatpush1.bf16.msra.mxu1 %v4248_v12  ;;  %v4276_v29 = vld [vmem:[%s6159_s1 + $0x184] ss:$12 sps:$4 sm:$0xff]   ;;  %v4282_v33 = vld [vmem:[%s6159_s1 + $0x2ec] ss:$12 sps:$4 sm:$0xff]   ;;  %v4285_v35 = vld [vmem:[%s6159_s1 + $0x154] ss:$12 sps:$4 sm:$0xff]  }
   0xd   :  { %2552 = vmatprep.subr.bf16.mxu1 %v4252_v13  ;;  %v4284_v36 = vld [vmem:[%s6159_s1 + $0x2e8] ss:$12 sps:$4 sm:$0xff]   ;;  %v4287_v38 = vld [vmem:[%s6159_s1 + $0x150] ss:$12 sps:$4 sm:$0xff]   ;;  %v4293_v42 = vld [vmem:[%s6159_s1 + $0x138] ss:$12 sps:$4 sm:$0xff]  }
   0xe   :  { %v4288_v37 = vld [vmem:[%s6159_s1 + $0x2d4] ss:$12 sps:$4 sm:$0xff]   ;;  %v4291_v39 = vld [vmem:[%s6159_s1 + $0x13c] ss:$12 sps:$4 sm:$0xff]   ;;  %v4297_v43 = vld [vmem:[%s6159_s1 + $0x124] ss:$12 sps:$4 sm:$0xff]  }
   0xf   :  { %2512 = vmatpush1.bf16.msra.mxu0 %v4251_v14  ;;  %v4290_v40 = vld [vmem:[%s6159_s1 + $0x2d0] ss:$12 sps:$4 sm:$0xff]   ;;  %v4296_v44 = vld [vmem:[%s6159_s1 + $0x2b8] ss:$12 sps:$4 sm:$0xff]   ;;  %v4299_v47 = vld [vmem:[%s6159_s1 + $0x120] ss:$12 sps:$4 sm:$0xff]  }
  0x10   :  { %2513 = vmatprep.subr.bf16.mxu0 %v4255_v15  ;;  %2553 = vmatpush1.bf16.msra.mxu1 %v4254_v16  ;;  %v4294_v41 = vld [vmem:[%s6159_s1 + $0x2bc] ss:$12 sps:$4 sm:$0xff]   ;;  %v4300_v45 = vld [vmem:[%s6159_s1 + $0x2a4] ss:$12 sps:$4 sm:$0xff]   ;;  %v4303_v49 = vld [vmem:[%s6159_s1 + $0x10c] ss:$12 sps:$4 sm:$0xff]  }
  0x11   :  { %2554 = vmatprep.subr.bf16.mxu1 %v4258_v17  ;;  %v27_v46 = vld [vmem:[%s6160_s0] sm:$0xff]  ;;  %v28_v50 = vld [vmem:[%s6160_s0 + $0x8] sm:$0xff]  ;;  %v4311_v58 = vld [vmem:[%s6159_s1 + $0xf0] ss:$12 sps:$4 sm:$0xff]  }
  0x12   :  { %v4946_v48 = vcombine.high %v27_v46, %v27_v46  ;;  %v4302_v51 = vld [vmem:[%s6159_s1 + $0x2a0] ss:$12 sps:$4 sm:$0xff]   ;;  %v4958_v52 = vcombine.high %v28_v50, %v28_v50  ;;  %v4305_v54 = vld [vmem:[%s6159_s1 + $0x108] ss:$12 sps:$4 sm:$0xff]   ;;  %v4314_v60 = vld [vmem:[%s6159_s1 + $0x270] ss:$12 sps:$4 sm:$0xff]   ;;  %v5009_v5 = vcombine.low %v27_v46, %v27_v46  ;;  %v5017_v8 = vcombine.low %v28_v50, %v28_v50 }
  0x13   :  { %2514 = vmatpush1.bf16.msra.mxu0 %v4257_v18  ;;  %v4306_v53 = vld [vmem:[%s6159_s1 + $0x28c] ss:$12 sps:$4 sm:$0xff]   ;;  %v4309_v55 = vld [vmem:[%s6159_s1 + $0xf4] ss:$12 sps:$4 sm:$0xff]   ;;  %v4315_v59 = vld [vmem:[%s6159_s1 + $0xdc] ss:$12 sps:$4 sm:$0xff]  }
  0x14   :  { %2515 = vmatprep.subr.bf16.mxu0 %v4261_v19  ;;  %2555 = vmatpush1.bf16.msra.mxu1 %v4260_v20  ;;  %v4308_v56 = vld [vmem:[%s6159_s1 + $0x288] ss:$12 sps:$4 sm:$0xff]   ;;  %v4317_v62 = vld [vmem:[%s6159_s1 + $0xd8] ss:$12 sps:$4 sm:$0xff]   ;;  %v4323_v2 = vld [vmem:[%s6159_s1 + $0xc0] ss:$12 sps:$4 sm:$0xff]  }
  0x15   :  { %2556 = vmatprep.subr.bf16.mxu1 %v4264_v21  ;;  %2537 = vmatprep.mubr.bf16.mxu0 %v4946_v48  ;;  %v4312_v57 = vld [vmem:[%s6159_s1 + $0x274] ss:$12 sps:$4 sm:$0xff]   ;;  %v4318_v61 = vld [vmem:[%s6159_s1 + $0x25c] ss:$12 sps:$4 sm:$0xff]   ;;  %v4321_v63 = vld [vmem:[%s6159_s1 + $0xc4] ss:$12 sps:$4 sm:$0xff]  }
  0x16   :  { %2578 = vmatprep.mubr.bf16.mxu1 %v4958_v52  ;;  %v4320_v0 = vld [vmem:[%s6159_s1 + $0x258] ss:$12 sps:$4 sm:$0xff]   ;;  %v4328_v4 = vld [vmem:[%s6159_s1 + $0x240] ss:$12 sps:$4 sm:$0xff]   ;;  %v4329_v7 = vld [vmem:[%s6159_s1 + $0x3a8] ss:$12 sps:$4 sm:$0xff]  }
  0x17   :  { %2516 = vmatpush1.bf16.msra.mxu0 %v4263_v22  ;;  %v4324_v1 = vld [vmem:[%s6159_s1 + $0x244] ss:$12 sps:$4 sm:$0xff]   ;;  %v4331_v3 = vld [vmem:[%s6159_s1 + $0x3ac] ss:$12 sps:$4 sm:$0xff]   ;;  %v4339_v9 = vld [vmem:[%s6159_s1 + $0x394] ss:$12 sps:$4 sm:$0xff]  }
  0x18   :  { %2517 = vmatprep.subr.bf16.mxu0 %v4267_v23  ;;  %2557 = vmatpush1.bf16.msra.mxu1 %v4266_v24  ;;  %v4336_v6 = vld [vmem:[%s6159_s1 + $0x52c] ss:$12 sps:$4 sm:$0xff]   ;;  %v4334_v10 = vld [vmem:[%s6159_s1 + $0x528] ss:$12 sps:$4 sm:$0xff]   ;;  %v4337_v12 = vld [vmem:[%s6159_s1 + $0x390] ss:$12 sps:$4 sm:$0xff]  }
  0x19   :  { %2558 = vmatprep.subr.bf16.mxu1 %v4270_v25  ;;  %v4342_v11 = vld [vmem:[%s6159_s1 + $0x514] ss:$12 sps:$4 sm:$0xff]   ;;  %v4345_v13 = vld [vmem:[%s6159_s1 + $0x37c] ss:$12 sps:$4 sm:$0xff]   ;;  %v4343_v16 = vld [vmem:[%s6159_s1 + $0x378] ss:$12 sps:$4 sm:$0xff]  }
  0x1a   :  { %v4340_v14 = vld [vmem:[%s6159_s1 + $0x510] ss:$12 sps:$4 sm:$0xff]   ;;  %v4346_v18 = vld [vmem:[%s6159_s1 + $0x4f8] ss:$12 sps:$4 sm:$0xff]   ;;  %v4349_v20 = vld [vmem:[%s6159_s1 + $0x360] ss:$12 sps:$4 sm:$0xff]  }
  0x1b   :  { %2518 = vmatpush1.bf16.msra.mxu0 %v4269_v26  ;;  %v4348_v15 = vld [vmem:[%s6159_s1 + $0x4fc] ss:$12 sps:$4 sm:$0xff]   ;;  %v4351_v17 = vld [vmem:[%s6159_s1 + $0x364] ss:$12 sps:$4 sm:$0xff]   ;;  %v4357_v21 = vld [vmem:[%s6159_s1 + $0x34c] ss:$12 sps:$4 sm:$0xff]  }
  0x1c   :  { %2519 = vmatprep.subr.bf16.mxu0 %v4273_v27  ;;  %2559 = vmatpush1.bf16.msra.mxu1 %v4272_v28  ;;  %v4354_v19 = vld [vmem:[%s6159_s1 + $0x4e4] ss:$12 sps:$4 sm:$0xff]   ;;  %v4352_v22 = vld [vmem:[%s6159_s1 + $0x4e0] ss:$12 sps:$4 sm:$0xff]   ;;  %v4355_v24 = vld [vmem:[%s6159_s1 + $0x348] ss:$12 sps:$4 sm:$0xff]  }
  0x1d   :  { %2560 = vmatprep.subr.bf16.mxu1 %v4276_v29  ;;  %v4360_v23 = vld [vmem:[%s6159_s1 + $0x4cc] ss:$12 sps:$4 sm:$0xff]   ;;  %v4363_v25 = vld [vmem:[%s6159_s1 + $0x334] ss:$12 sps:$4 sm:$0xff]   ;;  %v4361_v28 = vld [vmem:[%s6159_s1 + $0x330] ss:$12 sps:$4 sm:$0xff]  }
  0x1e   :  { %v4358_v26 = vld [vmem:[%s6159_s1 + $0x4c8] ss:$12 sps:$4 sm:$0xff]  }
  0x1f   :  { %2520 = vmatpush1.bf16.msra.mxu0 %v4275_v30  ;;  %v4366_v27 = vld [vmem:[%s6159_s1 + $0x4b4] ss:$12 sps:$4 sm:$0xff]   ;;  %v4369_v29 = vld [vmem:[%s6159_s1 + $0x31c] ss:$12 sps:$4 sm:$0xff]  }
  0x20   :  { %2521 = vmatprep.subr.bf16.mxu0 %v4279_v31  ;;  %2561 = vmatpush1.bf16.msra.mxu1 %v4278_v32  ;;  %v4364_v30 = vld [vmem:[%s6159_s1 + $0x4b0] ss:$12 sps:$4 sm:$0xff]   ;;  %v4382_v46 = vld [vmem:[%s6159_s1 + $0x5e8] ss:$12 sps:$4 sm:$0xff]  }
  0x21   :  { %2562 = vmatprep.subr.bf16.mxu1 %v4282_v33  ;;  %v4372_v31 = vld [vmem:[%s6159_s1 + $0x49c] ss:$12 sps:$4 sm:$0xff]   ;;  %v5093_v32 = vld [vmem:[%s6160_s0 + $0x10] sm:$0xff]  ;;  %v4367_v33 = vld [vmem:[%s6159_s1 + $0x318] ss:$12 sps:$4 sm:$0xff]  }
  0x22   :  { %v4393_v50 = vld [vmem:[%s6159_s1 + $0x43c] ss:$12 sps:$4 sm:$0xff]  }
  0x23   :  { %2522 = vmatpush2.bf16.msra.mxu0 %v4281_v34  ;;  %v5100_v34 = vcombine.high %v5093_v32, %v5093_v32 }
  0x24   :  { %2523 = vmatprep.subr.bf16.mxu0 %v4285_v35  ;;  %2563 = vmatpush2.bf16.msra.mxu1 %v4284_v36  ;;  %v5105_v35 = vld [vmem:[%s6160_s0 + $0x18] sm:$0xff]  ;;  %v4375_v36 = vld [vmem:[%s6159_s1 + $0x304] ss:$12 sps:$4 sm:$0xff]  }
  0x25   :  { %2564 = vmatprep.subr.bf16.mxu1 %v4288_v37  ;;  %v5112_v37 = vcombine.high %v5105_v35, %v5105_v35 }
  0x27   :  { %2524 = vmatpush2.bf16.msra.mxu0 %v4287_v38  ;;  %v4370_v38 = vld [vmem:[%s6159_s1 + $0x498] ss:$12 sps:$4 sm:$0xff]  }
  0x28   :  { %2525 = vmatprep.subr.bf16.mxu0 %v4291_v39  ;;  %2565 = vmatpush2.bf16.msra.mxu1 %v4290_v40  ;;  %v4378_v39 = vld [vmem:[%s6159_s1 + $0x484] ss:$12 sps:$4 sm:$0xff]   ;;  %v4373_v40 = vld [vmem:[%s6159_s1 + $0x300] ss:$12 sps:$4 sm:$0xff]  }
  0x29   :  { %2566 = vmatprep.subr.bf16.mxu1 %v4294_v41  ;;  %v4381_v41 = vld [vmem:[%s6159_s1 + $0x46c] ss:$12 sps:$4 sm:$0xff]  }
  0x2b   :  { %2526 = vmatpush2.bf16.msra.mxu0 %v4293_v42  ;;  %v4376_v42 = vld [vmem:[%s6159_s1 + $0x480] ss:$12 sps:$4 sm:$0xff]  }
  0x2c   :  { %2527 = vmatprep.subr.bf16.mxu0 %v4297_v43  ;;  %2567 = vmatpush2.bf16.msra.mxu1 %v4296_v44  ;;  %v4384_v43 = vld [vmem:[%s6159_s1 + $0x5ec] ss:$12 sps:$4 sm:$0xff]   ;;  %v4379_v44 = vld [vmem:[%s6159_s1 + $0x468] ss:$12 sps:$4 sm:$0xff]  }
  0x2d   :  { %2568 = vmatprep.subr.bf16.mxu1 %v4300_v45  ;;  %v4387_v45 = vld [vmem:[%s6159_s1 + $0x454] ss:$12 sps:$4 sm:$0xff]  }
  0x2f   :  { %2528 = vmatpush2.bf16.msra.mxu0 %v4299_v47  ;;  %v4390_v47 = vld [vmem:[%s6159_s1 + $0x5d4] ss:$12 sps:$4 sm:$0xff]  }
  0x30   :  { %2529 = vmatprep.subr.bf16.mxu0 %v4303_v49  ;;  %2569 = vmatpush2.bf16.msra.mxu1 %v4302_v51  ;;  %v4385_v49 = vld [vmem:[%s6159_s1 + $0x450] ss:$12 sps:$4 sm:$0xff]  }
  0x31   :  { %2570 = vmatprep.subr.bf16.mxu1 %v4306_v53  ;;  %v4388_v51 = vld [vmem:[%s6159_s1 + $0x5d0] ss:$12 sps:$4 sm:$0xff]  }
  0x32   :  { %v4396_v53 = vld [vmem:[%s6159_s1 + $0x5bc] ss:$12 sps:$4 sm:$0xff]  }
  0x33   :  { %2530 = vmatpush2.bf16.msra.mxu0 %v4305_v54  ;;  %v4391_v54 = vld [vmem:[%s6159_s1 + $0x438] ss:$12 sps:$4 sm:$0xff]  }
  0x34   :  { %2531 = vmatprep.subr.bf16.mxu0 %v4309_v55  ;;  %2571 = vmatpush2.bf16.msra.mxu1 %v4308_v56  ;;  %v4399_v55 = vld [vmem:[%s6159_s1 + $0x424] ss:$12 sps:$4 sm:$0xff]  }
  0x35   :  { %2572 = vmatprep.subr.bf16.mxu1 %v4312_v57  ;;  %v4394_v56 = vld [vmem:[%s6159_s1 + $0x5b8] ss:$12 sps:$4 sm:$0xff]  }
  0x36   :  { %v4402_v57 = vld [vmem:[%s6159_s1 + $0x5a4] ss:$12 sps:$4 sm:$0xff]  }
  0x37   :  { %2532 = vmatpush2.bf16.msra.mxu0 %v4311_v58  ;;  %v4397_v58 = vld [vmem:[%s6159_s1 + $0x420] ss:$12 sps:$4 sm:$0xff]  }
  0x38   :  { %2533 = vmatprep.subr.bf16.mxu0 %v4315_v59  ;;  %2573 = vmatpush2.bf16.msra.mxu1 %v4314_v60  ;;  %v4405_v59 = vld [vmem:[%s6159_s1 + $0x40c] ss:$12 sps:$4 sm:$0xff]  }
  0x39   :  { %2574 = vmatprep.subr.bf16.mxu1 %v4318_v61  ;;  %v4400_v60 = vld [vmem:[%s6159_s1 + $0x5a0] ss:$12 sps:$4 sm:$0xff]  }
  0x3a   :  { %v4408_v61 = vld [vmem:[%s6159_s1 + $0x58c] ss:$12 sps:$4 sm:$0xff]  }
  0x3b   :  { %2534 = vmatpush2.bf16.msra.mxu0 %v4317_v62  ;;  %v4403_v62 = vld [vmem:[%s6159_s1 + $0x408] ss:$12 sps:$4 sm:$0xff]  }
  0x3c   :  { %2535 = vmatprep.subr.bf16.mxu0 %v4321_v63  ;;  %2575 = vmatpush2.bf16.msra.mxu1 %v4320_v0  ;;  %v4411_v63 = vld [vmem:[%s6159_s1 + $0x3f4] ss:$12 sps:$4 sm:$0xff]  }
  0x3d   :  { %2576 = vmatprep.subr.bf16.mxu1 %v4324_v1  ;;  %v4406_v0 = vld [vmem:[%s6159_s1 + $0x588] ss:$12 sps:$4 sm:$0xff]  }
  0x3e   :  { %v4414_v1 = vld [vmem:[%s6159_s1 + $0x574] ss:$12 sps:$4 sm:$0xff]  }
  0x3f   :  { %2536 = vmatpush2.bf16.msra.mxu0 %v4323_v2  ;;  %v4409_v2 = vld [vmem:[%s6159_s1 + $0x3f0] ss:$12 sps:$4 sm:$0xff]  }
  0x40   :  { %2587 = vmatprep.subr.bf16.mxu0 %v4331_v3  ;;  %2577 = vmatpush2.bf16.msra.mxu1 %v4328_v4  ;;  %v4417_v3 = vld [vmem:[%s6159_s1 + $0x3dc] ss:$12 sps:$4 sm:$0xff]  }
  0x41   :  { %2628 = vmatprep.subr.bf16.mxu1 %v4336_v6  ;;  %v4412_v4 = vld [vmem:[%s6159_s1 + $0x570] ss:$12 sps:$4 sm:$0xff]  }
  0x42   :  { %2538 = vmatmul.mubr.bf16.vlgmr.msra.gmra.mxu0 %v5009_v5  ;;  %v4420_v6 = vld [vmem:[%s6159_s1 + $0x55c] ss:$12 sps:$4 sm:$0xff]  }
  0x43   :  { %2588 = vmatpush1.bf16.msra.mxu0 %v4329_v7  ;;  %2579 = vmatmul.mubr.bf16.vlgmr.msra.gmra.mxu1 %v5017_v8  ;;  %v4415_v7 = vld [vmem:[%s6159_s1 + $0x3d8] ss:$12 sps:$4 sm:$0xff]  }
  0x44   :  { %2589 = vmatprep.subr.bf16.mxu0 %v4339_v9  ;;  %2629 = vmatpush1.bf16.msra.mxu1 %v4334_v10  ;;  %v4423_v9 = vld [vmem:[%s6159_s1 + $0x3c4] ss:$12 sps:$4 sm:$0xff]  }
  0x45   :  { %2630 = vmatprep.subr.bf16.mxu1 %v4342_v11  ;;  %2619 = vmatprep.mubr.bf16.mxu0 %v5100_v34  ;;  %v4418_v10 = vld [vmem:[%s6159_s1 + $0x558] ss:$12 sps:$4 sm:$0xff]  }
  0x46   :  { %2660 = vmatprep.mubr.bf16.mxu1 %v5112_v37  ;;  %v4426_v11 = vld [vmem:[%s6159_s1 + $0x544] ss:$12 sps:$4 sm:$0xff]  }
  0x47   :  { %2590 = vmatpush1.bf16.msra.mxu0 %v4337_v12  ;;  %v4421_v12 = vld [vmem:[%s6159_s1 + $0x3c0] ss:$12 sps:$4 sm:$0xff]  }
  0x48   :  { %2591 = vmatprep.subr.bf16.mxu0 %v4345_v13  ;;  %2631 = vmatpush1.bf16.msra.mxu1 %v4340_v14  ;;  %v4431_v13 = vld [vmem:[%s6159_s1 + $0x6ac] ss:$12 sps:$4 sm:$0xff]  }
  0x49   :  { %2632 = vmatprep.subr.bf16.mxu1 %v4348_v15  ;;  %v4424_v14 = vld [vmem:[%s6159_s1 + $0x540] ss:$12 sps:$4 sm:$0xff]   ;;  %v5229_v15 = vcombine.low %v5093_v32, %v5093_v32  ;;  %v4446_v32 = vld [vmem:[%s6159_s1 + $0x7f8] ss:$12 sps:$4 sm:$0xff]  }
  0x4b   :  { %2592 = vmatpush1.bf16.msra.mxu0 %v4343_v16  ;;  %v4436_v16 = vld [vmem:[%s6159_s1 + $0x82c] ss:$12 sps:$4 sm:$0xff]  }
  0x4c   :  { %2593 = vmatprep.subr.bf16.mxu0 %v4351_v17  ;;  %2633 = vmatpush1.bf16.msra.mxu1 %v4346_v18  ;;  %v4429_v17 = vld [vmem:[%s6159_s1 + $0x6a8] ss:$12 sps:$4 sm:$0xff]   ;;  %v5239_v18 = vcombine.low %v5105_v35, %v5105_v35  ;;  %v4449_v35 = vld [vmem:[%s6159_s1 + $0x660] ss:$12 sps:$4 sm:$0xff]  }
  0x4d   :  { %2634 = vmatprep.subr.bf16.mxu1 %v4354_v19  ;;  %v4439_v19 = vld [vmem:[%s6159_s1 + $0x694] ss:$12 sps:$4 sm:$0xff]  }
  0x4f   :  { %2594 = vmatpush1.bf16.msra.mxu0 %v4349_v20  ;;  %v4434_v20 = vld [vmem:[%s6159_s1 + $0x828] ss:$12 sps:$4 sm:$0xff]  }
  0x50   :  { %2595 = vmatprep.subr.bf16.mxu0 %v4357_v21  ;;  %2635 = vmatpush1.bf16.msra.mxu1 %v4352_v22  ;;  %v5250_v21 = vld [vmem:[%s6160_s0 + $0x20] sm:$0xff]  ;;  %v4437_v22 = vld [vmem:[%s6159_s1 + $0x690] ss:$12 sps:$4 sm:$0xff]  }
  0x51   :  { %2636 = vmatprep.subr.bf16.mxu1 %v4360_v23  ;;  %v4442_v23 = vld [vmem:[%s6159_s1 + $0x814] ss:$12 sps:$4 sm:$0xff]  }
  0x53   :  { %2596 = vmatpush1.bf16.msra.mxu0 %v4355_v24  ;;  %v5261_v24 = vcombine.high %v5250_v21, %v5250_v21 }
  0x54   :  { %2597 = vmatprep.subr.bf16.mxu0 %v4363_v25  ;;  %2637 = vmatpush1.bf16.msra.mxu1 %v4358_v26  ;;  %v5266_v25 = vld [vmem:[%s6160_s0 + $0x28] sm:$0xff] }
  0x55   :  { %2638 = vmatprep.subr.bf16.mxu1 %v4366_v27  ;;  %v4445_v26 = vld [vmem:[%s6159_s1 + $0x67c] ss:$12 sps:$4 sm:$0xff]   ;;  %v5274_v27 = vcombine.high %v5266_v25, %v5266_v25 }
  0x57   :  { %2598 = vmatpush1.bf16.msra.mxu0 %v4361_v28  ;;  %v4440_v28 = vld [vmem:[%s6159_s1 + $0x810] ss:$12 sps:$4 sm:$0xff]  }
  0x58   :  { %2599 = vmatprep.subr.bf16.mxu0 %v4369_v29  ;;  %2639 = vmatpush1.bf16.msra.mxu1 %v4364_v30  ;;  %v4448_v29 = vld [vmem:[%s6159_s1 + $0x7fc] ss:$12 sps:$4 sm:$0xff]   ;;  %v4443_v30 = vld [vmem:[%s6159_s1 + $0x678] ss:$12 sps:$4 sm:$0xff]  }
  0x59   :  { %2640 = vmatprep.subr.bf16.mxu1 %v4372_v31  ;;  %v4451_v31 = vld [vmem:[%s6159_s1 + $0x664] ss:$12 sps:$4 sm:$0xff]  }
  0x5b   :  { %2600 = vmatpush1.bf16.msra.mxu0 %v4367_v33  ;;  %v4454_v33 = vld [vmem:[%s6159_s1 + $0x7e4] ss:$12 sps:$4 sm:$0xff]  }
  0x5c   :  { %2601 = vmatprep.subr.bf16.mxu0 %v4375_v36  ;;  %2641 = vmatpush1.bf16.msra.mxu1 %v4370_v38  ;;  %v4457_v36 = vld [vmem:[%s6159_s1 + $0x64c] ss:$12 sps:$4 sm:$0xff]  }
  0x5d   :  { %2642 = vmatprep.subr.bf16.mxu1 %v4378_v39  ;;  %v4452_v38 = vld [vmem:[%s6159_s1 + $0x7e0] ss:$12 sps:$4 sm:$0xff]  }
  0x5e   :  { %v4460_v39 = vld [vmem:[%s6159_s1 + $0x7cc] ss:$12 sps:$4 sm:$0xff]  }
  0x5f   :  { %2602 = vmatpush1.bf16.msra.mxu0 %v4373_v40  ;;  %v4455_v40 = vld [vmem:[%s6159_s1 + $0x648] ss:$12 sps:$4 sm:$0xff]  }
  0x60   :  { %2603 = vmatprep.subr.bf16.mxu0 %v4381_v41  ;;  %2643 = vmatpush1.bf16.msra.mxu1 %v4376_v42  ;;  %v4463_v41 = vld [vmem:[%s6159_s1 + $0x634] ss:$12 sps:$4 sm:$0xff]  }
  0x61   :  { %2644 = vmatprep.subr.bf16.mxu1 %v4384_v43  ;;  %v4458_v42 = vld [vmem:[%s6159_s1 + $0x7c8] ss:$12 sps:$4 sm:$0xff]  }
  0x62   :  { %v4466_v43 = vld [vmem:[%s6159_s1 + $0x7b4] ss:$12 sps:$4 sm:$0xff]  }
  0x63   :  { %2604 = vmatpush2.bf16.msra.mxu0 %v4379_v44  ;;  %v4461_v44 = vld [vmem:[%s6159_s1 + $0x630] ss:$12 sps:$4 sm:$0xff]  }
  0x64   :  { %2605 = vmatprep.subr.bf16.mxu0 %v4387_v45  ;;  %2645 = vmatpush2.bf16.msra.mxu1 %v4382_v46  ;;  %v4469_v45 = vld [vmem:[%s6159_s1 + $0x61c] ss:$12 sps:$4 sm:$0xff]  }
  0x65   :  { %2646 = vmatprep.subr.bf16.mxu1 %v4390_v47  ;;  %v4464_v46 = vld [vmem:[%s6159_s1 + $0x7b0] ss:$12 sps:$4 sm:$0xff]  }
  0x66   :  { %v4472_v47 = vld [vmem:[%s6159_s1 + $0x79c] ss:$12 sps:$4 sm:$0xff]  }
  0x67   :  { %2606 = vmatpush2.bf16.msra.mxu0 %v4385_v49  ;;  %v4467_v49 = vld [vmem:[%s6159_s1 + $0x618] ss:$12 sps:$4 sm:$0xff]  }
  0x68   :  { %2607 = vmatprep.subr.bf16.mxu0 %v4393_v50  ;;  %2647 = vmatpush2.bf16.msra.mxu1 %v4388_v51  ;;  %v4475_v50 = vld [vmem:[%s6159_s1 + $0x604] ss:$12 sps:$4 sm:$0xff]  }
  0x69   :  { %2648 = vmatprep.subr.bf16.mxu1 %v4396_v53  ;;  %v4470_v51 = vld [vmem:[%s6159_s1 + $0x798] ss:$12 sps:$4 sm:$0xff]  }
  0x6a   :  { %v4478_v53 = vld [vmem:[%s6159_s1 + $0x784] ss:$12 sps:$4 sm:$0xff]  }
  0x6b   :  { %2608 = vmatpush2.bf16.msra.mxu0 %v4391_v54  ;;  %v4473_v54 = vld [vmem:[%s6159_s1 + $0x600] ss:$12 sps:$4 sm:$0xff]  }
  0x6c   :  { %2609 = vmatprep.subr.bf16.mxu0 %v4399_v55  ;;  %2649 = vmatpush2.bf16.msra.mxu1 %v4394_v56  ;;  %v4481_v55 = vld [vmem:[%s6159_s1 + $0x76c] ss:$12 sps:$4 sm:$0xff]  }
  0x6d   :  { %2650 = vmatprep.subr.bf16.mxu1 %v4402_v57  ;;  %v4476_v56 = vld [vmem:[%s6159_s1 + $0x780] ss:$12 sps:$4 sm:$0xff]  }
  0x6e   :  { %v4484_v57 = vld [vmem:[%s6159_s1 + $0x8ec] ss:$12 sps:$4 sm:$0xff]  }
  0x6f   :  { %2610 = vmatpush2.bf16.msra.mxu0 %v4397_v58  ;;  %v4479_v58 = vld [vmem:[%s6159_s1 + $0x768] ss:$12 sps:$4 sm:$0xff]  }
  0x70   :  { %2611 = vmatprep.subr.bf16.mxu0 %v4405_v59  ;;  %2651 = vmatpush2.bf16.msra.mxu1 %v4400_v60  ;;  %v4487_v59 = vld [vmem:[%s6159_s1 + $0x754] ss:$12 sps:$4 sm:$0xff]  }
  0x71   :  { %2652 = vmatprep.subr.bf16.mxu1 %v4408_v61  ;;  %v4482_v60 = vld [vmem:[%s6159_s1 + $0x8e8] ss:$12 sps:$4 sm:$0xff]  }
  0x72   :  { %v4490_v61 = vld [vmem:[%s6159_s1 + $0x8d4] ss:$12 sps:$4 sm:$0xff]  }
  0x73   :  { %2612 = vmatpush2.bf16.msra.mxu0 %v4403_v62  ;;  %v4485_v62 = vld [vmem:[%s6159_s1 + $0x750] ss:$12 sps:$4 sm:$0xff]  }
  0x74   :  { %2613 = vmatprep.subr.bf16.mxu0 %v4411_v63  ;;  %2653 = vmatpush2.bf16.msra.mxu1 %v4406_v0  ;;  %v4493_v63 = vld [vmem:[%s6159_s1 + $0x73c] ss:$12 sps:$4 sm:$0xff]  }
  0x75   :  { %2654 = vmatprep.subr.bf16.mxu1 %v4414_v1  ;;  %v4488_v0 = vld [vmem:[%s6159_s1 + $0x8d0] ss:$12 sps:$4 sm:$0xff]  }
  0x76   :  { %v4496_v1 = vld [vmem:[%s6159_s1 + $0x8bc] ss:$12 sps:$4 sm:$0xff]  }
  0x77   :  { %2614 = vmatpush2.bf16.msra.mxu0 %v4409_v2  ;;  %v4491_v2 = vld [vmem:[%s6159_s1 + $0x738] ss:$12 sps:$4 sm:$0xff]  }
  0x78   :  { %2615 = vmatprep.subr.bf16.mxu0 %v4417_v3  ;;  %2655 = vmatpush2.bf16.msra.mxu1 %v4412_v4  ;;  %v4499_v3 = vld [vmem:[%s6159_s1 + $0x724] ss:$12 sps:$4 sm:$0xff]  }
  0x79   :  { %2656 = vmatprep.subr.bf16.mxu1 %v4420_v6  ;;  %v4494_v4 = vld [vmem:[%s6159_s1 + $0x8b8] ss:$12 sps:$4 sm:$0xff]  }
  0x7a   :  { %v4502_v6 = vld [vmem:[%s6159_s1 + $0x8a4] ss:$12 sps:$4 sm:$0xff]  }
  0x7b   :  { %2616 = vmatpush2.bf16.msra.mxu0 %v4415_v7  ;;  %v4497_v7 = vld [vmem:[%s6159_s1 + $0x720] ss:$12 sps:$4 sm:$0xff]  }
  0x7c   :  { %2617 = vmatprep.subr.bf16.mxu0 %v4423_v9  ;;  %2657 = vmatpush2.bf16.msra.mxu1 %v4418_v10  ;;  %v4505_v9 = vld [vmem:[%s6159_s1 + $0x70c] ss:$12 sps:$4 sm:$0xff]  }
  0x7d   :  { %2658 = vmatprep.subr.bf16.mxu1 %v4426_v11  ;;  %v4500_v10 = vld [vmem:[%s6159_s1 + $0x8a0] ss:$12 sps:$4 sm:$0xff]  }
  0x7e   :  { %v4508_v11 = vld [vmem:[%s6159_s1 + $0x88c] ss:$12 sps:$4 sm:$0xff]  }
  0x7f   :  { %2618 = vmatpush2.bf16.msra.mxu0 %v4421_v12  ;;  %v4503_v12 = vld [vmem:[%s6159_s1 + $0x708] ss:$12 sps:$4 sm:$0xff]  }
  0x80   :  { %2669 = vmatprep.subr.bf16.mxu0 %v4431_v13  ;;  %2659 = vmatpush2.bf16.msra.mxu1 %v4424_v14  ;;  %v4511_v13 = vld [vmem:[%s6159_s1 + $0x6f4] ss:$12 sps:$4 sm:$0xff]  }
  0x81   :  { %2710 = vmatprep.subr.bf16.mxu1 %v4436_v16  ;;  %v4506_v14 = vld [vmem:[%s6159_s1 + $0x888] ss:$12 sps:$4 sm:$0xff]   ;;  %v4509_v16 = vld [vmem:[%s6159_s1 + $0x6f0] ss:$12 sps:$4 sm:$0xff]  }
  0x82   :  { %2620 = vmatmul.mubr.bf16.vlgmr.msra.gmra.mxu0 %v5229_v15 }
  0x83   :  { %2670 = vmatpush1.bf16.msra.mxu0 %v4429_v17  ;;  %2661 = vmatmul.mubr.bf16.vlgmr.msra.gmra.mxu1 %v5239_v18  ;;  %v517_v17 = vlaneseq }
  0x84   :  { %2671 = vmatprep.subr.bf16.mxu0 %v4439_v19  ;;  %2711 = vmatpush1.bf16.msra.mxu1 %v4434_v20  ;;  %v4514_v19 = vld [vmem:[%s6159_s1 + $0x874] ss:$12 sps:$4 sm:$0xff]   ;;  %v4512_v20 = vld [vmem:[%s6159_s1 + $0x870] ss:$12 sps:$4 sm:$0xff]  }
  0x85   :  { %2701 = vmatprep.mubr.bf16.mxu0 %v5261_v24  ;;  %2712 = vmatprep.subr.bf16.mxu1 %v4442_v23  ;;  %v4515_v23 = vld [vmem:[%s6159_s1 + $0x6d8] ss:$12 sps:$4 sm:$0xff]  }
  0x86   :  { %2742 = vmatprep.mubr.bf16.mxu1 %v5274_v27 }
  0x87   :  { %2672 = vmatpush1.bf16.msra.mxu0 %v4437_v22  ;;  %v4517_v22 = vld [vmem:[%s6159_s1 + $0x6dc] ss:$12 sps:$4 sm:$0xff]  }
  0x88   :  { %2673 = vmatprep.subr.bf16.mxu0 %v4445_v26  ;;  %2713 = vmatpush1.bf16.msra.mxu1 %v4440_v28  ;;  %v5428_v26 = vshrl.u32 %v517_v17, 7  ;;  %v4520_v28 = vld [vmem:[%s6159_s1 + $0x85c] ss:$12 sps:$4 sm:$0xff]   ;;  %v4583_v17 = vld [vmem:[%s6160_s0 + $0x38] ss:$0 sps:$4 sm:$0xff]  }
  0x89   :  { %2714 = vmatprep.subr.bf16.mxu1 %v4448_v29  ;;  %v4518_v29 = vld [vmem:[%s6159_s1 + $0x858] ss:$12 sps:$4 sm:$0xff]  }
  0x8b   :  { %2674 = vmatpush1.bf16.msra.mxu0 %v4443_v30  ;;  %v4523_v30 = vld [vmem:[%s6159_s1 + $0x6c4] ss:$12 sps:$4 sm:$0xff]  }
  0x8c   :  { %2675 = vmatprep.subr.bf16.mxu0 %v4451_v31  ;;  %2715 = vmatpush1.bf16.msra.mxu1 %v4446_v32  ;;  %v4521_v31 = vld [vmem:[%s6159_s1 + $0x6c0] ss:$12 sps:$4 sm:$0xff]   ;;  %v519_v32 = vsub.s32 0, %v5428_v26 }
  0x8d   :  { %2716 = vmatprep.subr.bf16.mxu1 %v4454_v33  ;;  %v4526_v33 = vld [vmem:[%s6159_s1 + $0x844] ss:$12 sps:$4 sm:$0xff]  }
  0x8f   :  { %2676 = vmatpush1.bf16.msra.mxu0 %v4449_v35  ;;  %v4524_v35 = vld [vmem:[%s6159_s1 + $0x840] ss:$12 sps:$4 sm:$0xff]  }
  0x90   :  { %2677 = vmatprep.subr.bf16.mxu0 %v4457_v36  ;;  %2717 = vmatpush1.bf16.msra.mxu1 %v4452_v38  ;;  %v4531_v36 = vld [vmem:[%s6159_s1 + $0x9ac] ss:$12 sps:$4 sm:$0xff]   ;;  %v5455_v38 = vld [vmem:[%s6160_s0 + $0x30] sm:$0xff] }
  0x91   :  { %2718 = vmatprep.subr.bf16.mxu1 %v4460_v39  ;;  %v523_v39 = vsub.s32 1, %v5428_v26 }
  0x93   :  { %2678 = vmatpush1.bf16.msra.mxu0 %v4455_v40  ;;  %v4529_v40 = vld [vmem:[%s6159_s1 + $0x9a8] ss:$12 sps:$4 sm:$0xff]  }
  0x94   :  { %2679 = vmatprep.subr.bf16.mxu0 %v4463_v41  ;;  %2719 = vmatpush1.bf16.msra.mxu1 %v4458_v42  ;;  %v5463_v41 = vcombine.low %v5250_v21, %v5250_v21  ;;  %v4536_v42 = vld [vmem:[%s6159_s1 + $0xb2c] ss:$12 sps:$4 sm:$0xff]   ;;  %v4539_v21 = vld [vmem:[%s6159_s1 + $0x994] ss:$12 sps:$4 sm:$0xff]  }
  0x95   :  { %2720 = vmatprep.subr.bf16.mxu1 %v4466_v43  ;;  %v4534_v43 = vld [vmem:[%s6159_s1 + $0xb28] ss:$12 sps:$4 sm:$0xff]  }
  0x97   :  { %2680 = vmatpush1.bf16.msra.mxu0 %v4461_v44  ;;  %v5473_v44 = vcombine.high %v5455_v38, %v5455_v38 }
  0x98   :  { %2681 = vmatprep.subr.bf16.mxu0 %v4469_v45  ;;  %2721 = vmatpush1.bf16.msra.mxu1 %v4464_v46  ;;  %v5477_v45 = vcombine.low %v5266_v25, %v5266_v25  ;;  %v4537_v46 = vld [vmem:[%s6159_s1 + $0x990] ss:$12 sps:$4 sm:$0xff]  }
  0x99   :  { %2722 = vmatprep.subr.bf16.mxu1 %v4472_v47  ;;  %v4542_v47 = vld [vmem:[%s6159_s1 + $0xb14] ss:$12 sps:$4 sm:$0xff]   ;;  %v4540_v25 = vld [vmem:[%s6159_s1 + $0xb10] ss:$12 sps:$4 sm:$0xff]  }
  0x9b   :  { %2682 = vmatpush1.bf16.msra.mxu0 %v4467_v49  ;;  %v4545_v49 = vld [vmem:[%s6159_s1 + $0x97c] ss:$12 sps:$4 sm:$0xff]  }
  0x9c   :  { %2683 = vmatprep.subr.bf16.mxu0 %v4475_v50  ;;  %2723 = vmatpush1.bf16.msra.mxu1 %v4470_v51  ;;  %v4543_v50 = vld [vmem:[%s6159_s1 + $0x978] ss:$12 sps:$4 sm:$0xff]   ;;  %v4759_v51 = vmov 0  }
  0x9d   :  { %2724 = vmatprep.subr.bf16.mxu1 %v4478_v53  ;;  %v4548_v53 = vld [vmem:[%s6159_s1 + $0xafc] ss:$12 sps:$4 sm:$0xff]  }
  0x9f   :  { %2684 = vmatpush1.bf16.msra.mxu0 %v4473_v54  ;;  %v4546_v54 = vld [vmem:[%s6159_s1 + $0xaf8] ss:$12 sps:$4 sm:$0xff]  }
  0xa0   :  { %2685 = vmatprep.subr.bf16.mxu0 %v4481_v55  ;;  %2725 = vmatpush1.bf16.msra.mxu1 %v4476_v56  ;;  %v4551_v55 = vld [vmem:[%s6159_s1 + $0x964] ss:$12 sps:$4 sm:$0xff]   ;;  %v4549_v56 = vld [vmem:[%s6159_s1 + $0x960] ss:$12 sps:$4 sm:$0xff]  }
  0xa1   :  { %2726 = vmatprep.subr.bf16.mxu1 %v4484_v57  ;;  %v4554_v57 = vld [vmem:[%s6159_s1 + $0xae4] ss:$12 sps:$4 sm:$0xff]  }
  0xa3   :  { %2686 = vmatpush2.bf16.msra.mxu0 %v4479_v58  ;;  %v4552_v58 = vld [vmem:[%s6159_s1 + $0xae0] ss:$12 sps:$4 sm:$0xff]  }
  0xa4   :  { %2687 = vmatprep.subr.bf16.mxu0 %v4487_v59  ;;  %2727 = vmatpush2.bf16.msra.mxu1 %v4482_v60  ;;  %v4557_v59 = vld [vmem:[%s6159_s1 + $0x94c] ss:$12 sps:$4 sm:$0xff]   ;;  %v4555_v60 = vld [vmem:[%s6159_s1 + $0x948] ss:$12 sps:$4 sm:$0xff]  }
  0xa5   :  { %2728 = vmatprep.subr.bf16.mxu1 %v4490_v61  ;;  %v4560_v61 = vld [vmem:[%s6159_s1 + $0xacc] ss:$12 sps:$4 sm:$0xff]  }
  0xa7   :  { %2688 = vmatpush2.bf16.msra.mxu0 %v4485_v62  ;;  %v4558_v62 = vld [vmem:[%s6159_s1 + $0xac8] ss:$12 sps:$4 sm:$0xff]  }
  0xa8   :  { %2689 = vmatprep.subr.bf16.mxu0 %v4493_v63  ;;  %2729 = vmatpush2.bf16.msra.mxu1 %v4488_v0  ;;  %v4563_v63 = vld [vmem:[%s6159_s1 + $0x934] ss:$12 sps:$4 sm:$0xff]   ;;  %v4561_v0 = vld [vmem:[%s6159_s1 + $0x930] ss:$12 sps:$4 sm:$0xff]  }
  0xa9   :  { %2730 = vmatprep.subr.bf16.mxu1 %v4496_v1  ;;  %v4566_v1 = vld [vmem:[%s6159_s1 + $0xab4] ss:$12 sps:$4 sm:$0xff]  }
  0xab   :  { %2690 = vmatpush2.bf16.msra.mxu0 %v4491_v2  ;;  %v4564_v2 = vld [vmem:[%s6159_s1 + $0xab0] ss:$12 sps:$4 sm:$0xff]  }
  0xac   :  { %2691 = vmatprep.subr.bf16.mxu0 %v4499_v3  ;;  %2731 = vmatpush2.bf16.msra.mxu1 %v4494_v4  ;;  %v4569_v3 = vld [vmem:[%s6159_s1 + $0x91c] ss:$12 sps:$4 sm:$0xff]   ;;  %v4567_v4 = vld [vmem:[%s6159_s1 + $0x918] ss:$12 sps:$4 sm:$0xff]  }
  0xad   :  { %2732 = vmatprep.subr.bf16.mxu1 %v4502_v6  ;;  %v4572_v6 = vld [vmem:[%s6159_s1 + $0xa9c] ss:$12 sps:$4 sm:$0xff]  }
  0xaf   :  { %2692 = vmatpush2.bf16.msra.mxu0 %v4497_v7  ;;  %v4570_v7 = vld [vmem:[%s6159_s1 + $0xa98] ss:$12 sps:$4 sm:$0xff]  }
  0xb0   :  { %2693 = vmatprep.subr.bf16.mxu0 %v4505_v9  ;;  %2733 = vmatpush2.bf16.msra.mxu1 %v4500_v10  ;;  %v4575_v9 = vld [vmem:[%s6159_s1 + $0x904] ss:$12 sps:$4 sm:$0xff]   ;;  %v4573_v10 = vld [vmem:[%s6159_s1 + $0x900] ss:$12 sps:$4 sm:$0xff]  }
  0xb1   :  { %2734 = vmatprep.subr.bf16.mxu1 %v4508_v11  ;;  %v4578_v11 = vld [vmem:[%s6159_s1 + $0xa84] ss:$12 sps:$4 sm:$0xff]  }
  0xb3   :  { %2694 = vmatpush2.bf16.msra.mxu0 %v4503_v12  ;;  %v4576_v12 = vld [vmem:[%s6159_s1 + $0xa80] ss:$12 sps:$4 sm:$0xff]  }
  0xb4   :  { %2695 = vmatprep.subr.bf16.mxu0 %v4511_v13  ;;  %2735 = vmatpush2.bf16.msra.mxu1 %v4506_v14  ;;  %v4581_v13 = vld [vmem:[%s6159_s1 + $0xa6c] ss:$12 sps:$4 sm:$0xff]   ;;  %v4579_v14 = vld [vmem:[%s6159_s1 + $0xa68] ss:$12 sps:$4 sm:$0xff]  }
  0xb5   :  { %2736 = vmatprep.subr.bf16.mxu1 %v4514_v19  ;;  %v4584_v19 = vld [vmem:[%s6159_s1 + $0xb0] ss:$12 sps:$4 sm:$0xff]  }
  0xb7   :  { %2696 = vmatpush2.bf16.msra.mxu0 %v4509_v16  ;;  %v4582_v16 = vld [vmem:[%s6159_s1 + $0x170] ss:$12 sps:$4 sm:$0xff]  }
  0xb8   :  { %2697 = vmatprep.subr.bf16.mxu0 %v4517_v22  ;;  %2737 = vmatpush2.bf16.msra.mxu1 %v4512_v20  ;;  %v4587_v20 = vld [vmem:[%s6159_s1 + $0xa54] ss:$12 sps:$4 sm:$0xff]   ;;  %v4585_v22 = vld [vmem:[%s6159_s1 + $0xa50] ss:$12 sps:$4 sm:$0xff]  }
  0xb9   :  { %2738 = vmatprep.subr.bf16.mxu1 %v4520_v28  ;;  %v4589_v28 = vld [vmem:[%s6159_s1 + $0x98] ss:$12 sps:$4 sm:$0xff]  }
  0xbb   :  { %2698 = vmatpush2.bf16.msra.mxu0 %v4515_v23  ;;  %v4588_v23 = vld [vmem:[%s6159_s1 + $0x158] ss:$12 sps:$4 sm:$0xff]  }
  0xbc   :  { %2699 = vmatprep.subr.bf16.mxu0 %v4523_v30  ;;  %2739 = vmatpush2.bf16.msra.mxu1 %v4518_v29  ;;  %v4592_v29 = vld [vmem:[%s6159_s1 + $0xa3c] ss:$12 sps:$4 sm:$0xff]   ;;  %v4590_v30 = vld [vmem:[%s6159_s1 + $0xa38] ss:$12 sps:$4 sm:$0xff]  }
  0xbd   :  { %2740 = vmatprep.subr.bf16.mxu1 %v4526_v33  ;;  %v4594_v33 = vld [vmem:[%s6159_s1 + $0x80] ss:$12 sps:$4 sm:$0xff]  }
  0xbf   :  { %2700 = vmatpush2.bf16.msra.mxu0 %v4521_v31  ;;  %v4593_v31 = vld [vmem:[%s6159_s1 + $0x140] ss:$12 sps:$4 sm:$0xff]  }
  0xc0   :  { %2751 = vmatprep.subr.bf16.mxu0 %v4531_v36  ;;  %2741 = vmatpush2.bf16.msra.mxu1 %v4524_v35  ;;  %v4597_v35 = vld [vmem:[%s6159_s1 + $0xa24] ss:$12 sps:$4 sm:$0xff]   ;;  %v4598_v36 = vld [vmem:[%s6159_s1 + $0x128] ss:$12 sps:$4 sm:$0xff]  }
  0xc1   :  { %2792 = vmatprep.subr.bf16.mxu1 %v4536_v42  ;;  %v4602_v42 = vld [vmem:[%s6159_s1 + $0xa0c] ss:$12 sps:$4 sm:$0xff]  }
  0xc2   :  { %2702 = vmatmul.mubr.bf16.vlgmr.msra.gmra.mxu0 %v5463_v41 }
  0xc3   :  { %2752 = vmatpush1.bf16.msra.mxu0 %v4529_v40  ;;  %2783 = vmatprep.mubr.bf16.mxu0 %v5473_v44  ;;  %v4599_v40 = vld [vmem:[%s6159_s1 + $0x68] ss:$12 sps:$4 sm:$0xff]  }
  0xc4   :  { %2743 = vmatmul.mubr.bf16.vlgmr.msra.gmra.mxu1 %v5477_v45  ;;  %2753 = vmatprep.subr.bf16.mxu0 %v4539_v21  ;;  %v4603_v21 = vld [vmem:[%s6159_s1 + $0x110] ss:$12 sps:$4 sm:$0xff]  }
  0xc5   :  { %2793 = vmatpush1.bf16.msra.mxu1 %v4534_v43  ;;  %2824 = vmatprep.mubr.bf16.mxu1 %v4759_v51  ;;  %v4600_v43 = vld [vmem:[%s6159_s1 + $0xa08] ss:$12 sps:$4 sm:$0xff]  }
  0xc6   :  { %2794 = vmatprep.subr.bf16.mxu1 %v4542_v47  ;;  %v4607_v47 = vld [vmem:[%s6159_s1 + $0x9f4] ss:$12 sps:$4 sm:$0xff]   ;;  %v4612_v51 = vld [vmem:[%s6159_s1 + $0x9dc] ss:$12 sps:$4 sm:$0xff]  }
  0xc7   :  { %2754 = vmatpush1.bf16.msra.mxu0 %v4537_v46  ;;  %v4604_v46 = vld [vmem:[%s6159_s1 + $0x50] ss:$12 sps:$4 sm:$0xff]  }
  0xc8   :  { %2755 = vmatprep.subr.bf16.mxu0 %v4545_v49  ;;  %v4608_v49 = vld [vmem:[%s6159_s1 + $0xf8] ss:$12 sps:$4 sm:$0xff]  }
  0xc9   :  { %2795 = vmatpush1.bf16.msra.mxu1 %v4540_v25  ;;  %v4605_v25 = vld [vmem:[%s6159_s1 + $0x9f0] ss:$12 sps:$4 sm:$0xff]  }
  0xca   :  { %2796 = vmatprep.subr.bf16.mxu1 %v4548_v53  ;;  %v4610_v53 = vld [vmem:[%s6159_s1 + $0x9d8] ss:$12 sps:$4 sm:$0xff]  }
  0xcb   :  { %2756 = vmatpush1.bf16.msra.mxu0 %v4543_v50  ;;  %v4609_v50 = vld [vmem:[%s6159_s1 + $0x38] ss:$12 sps:$4 sm:$0xff]  }
  0xcc   :  { %2757 = vmatprep.subr.bf16.mxu0 %v4551_v55  ;;  %v4614_v55 = vld [vmem:[%s6159_s1 + $0x20] ss:$12 sps:$4 sm:$0xff]  }
  0xcd   :  { %2797 = vmatpush1.bf16.msra.mxu1 %v4546_v54  ;;  %v4613_v54 = vld [vmem:[%s6159_s1 + $0xe0] ss:$12 sps:$4 sm:$0xff]  }
  0xce   :  { %2798 = vmatprep.subr.bf16.mxu1 %v4554_v57  ;;  %v4615_v57 = vld [vmem:[%s6159_s1 + $0x9c0] ss:$12 sps:$4 sm:$0xff]  }
  0xcf   :  { %2758 = vmatpush1.bf16.msra.mxu0 %v4549_v56  ;;  %v4617_v56 = vld [vmem:[%s6159_s1 + $0x9c4] ss:$12 sps:$4 sm:$0xff]  }
  0xd0   :  { %2759 = vmatprep.subr.bf16.mxu0 %v4557_v59  ;;  %v5666_v59 = vld [vmem:[%s6161_s2] sm:$0x7] }
  0xd1   :  { %2799 = vmatpush1.bf16.msra.mxu1 %v4552_v58  ;;  %v4618_v58 = vld [vmem:[%s6159_s1 + $0xc8] ss:$12 sps:$4 sm:$0xff]  }
  0xd2   :  { %2800 = vmatprep.subr.bf16.mxu1 %v4560_v61  ;;  %v4621_v61 = vld [vmem:[%s6159_s1 + $0x8] ss:$12 sps:$4 sm:$0xff]  }
  0xd3   :  { %2760 = vmatpush1.bf16.msra.mxu0 %v4555_v60  ;;  %v4622_v60 = vld [vmem:[%s6159_s1 + $0x2f0] ss:$12 sps:$4 sm:$0xff]  }
  0xd4   :  { %2761 = vmatprep.subr.bf16.mxu0 %v4563_v63  ;;  %v4624_v63 = vld [vmem:[%s6159_s1 + $0x470] ss:$12 sps:$4 sm:$0xff]  }
  0xd5   :  { %2801 = vmatpush1.bf16.msra.mxu1 %v4558_v62  ;;  %v5676_v62 = vcombine.low %v5455_v38, %v5455_v38  ;;  %v524_v38 = vrot.slane %v5666_v59, %v523_v39 }
  0xd6   :  { %2802 = vmatprep.subr.bf16.mxu1 %v4566_v1  ;;  %v4623_v1 = vld [vmem:[%s6159_s1 + $0x230] ss:$12 sps:$4 sm:$0xff]  }
  0xd7   :  { %2762 = vmatpush1.bf16.msra.mxu0 %v4561_v0  ;;  %v520_v0 = vrot.slane %v5666_v59, %v519_v32  ;;  %v4628_v32 = vld [vmem:[%s6159_s1 + $0x458] ss:$12 sps:$4 sm:$0xff]  }
  0xd8   :  { %2763 = vmatprep.subr.bf16.mxu0 %v4569_v3  ;;  %v4625_v3 = vld [vmem:[%s6159_s1 + $0x3b0] ss:$12 sps:$4 sm:$0xff]  }
  0xd9   :  { %2803 = vmatpush1.bf16.msra.mxu1 %v4564_v2  ;;  %v4626_v2 = vld [vmem:[%s6159_s1 + $0x2d8] ss:$12 sps:$4 sm:$0xff]  }
  0xda   :  { %2804 = vmatprep.subr.bf16.mxu1 %v4572_v6 }
  0xdb   :  { %2764 = vmatpush1.bf16.msra.mxu0 %v4567_v4 }
  0xdc   :  { %2765 = vmatprep.subr.bf16.mxu0 %v4575_v9 }
  0xdd   :  { %2805 = vmatpush1.bf16.msra.mxu1 %v4570_v7  ;;  %v4627_v7 = vld [vmem:[%s6159_s1 + $0x218] ss:$12 sps:$4 sm:$0xff]  }
  0xde   :  { %2806 = vmatprep.subr.bf16.mxu1 %v4578_v11 }
  0xdf   :  { %2766 = vmatpush1.bf16.msra.mxu0 %v4573_v10  ;;  %v4630_v10 = vld [vmem:[%s6159_s1 + $0x2c0] ss:$12 sps:$4 sm:$0xff]  }
  0xe0   :  { %2767 = vmatprep.subr.bf16.mxu0 %v4581_v13  ;;  %v4629_v13 = vld [vmem:[%s6159_s1 + $0x398] ss:$12 sps:$4 sm:$0xff]  }
  0xe1   :  { %2807 = vmatpush1.bf16.msra.mxu1 %v4576_v12 }
  0xe2   :  { %3965 = vmatprep.subr.bf16.mxu1 %v4582_v16 }
  0xe3   :  { %2768 = vmatpush2.bf16.msra.mxu0 %v4579_v14 }
  0xe4   :  { %2825 = vmatmul.mubr.bf16.vlgmr.msra.gmra.mxu1 %v4583_v17  ;;  %2769 = vmatprep.subr.bf16.mxu0 %v4587_v20  ;;  %v4631_v17 = vld [vmem:[%s6159_s1 + $0x200] ss:$12 sps:$4 sm:$0xff]  }
  0xe5   :  { %3966 = vmatpush3.bf16.msra.mxu1 %v4584_v19  ;;  %2865 = vmatprep.mubr.bf16.mxu1 %v4946_v48  ;;  %v4595_v48 = vld [vmem:[%s6159_s1 + $0xa20] ss:$12 sps:$4 sm:$0xff]  }
  0xe6   :  { %3967 = vmatprep.subr.bf16.mxu1 %v4588_v23  ;;  %v4636_v23 = vld [vmem:[%s6159_s1 + $0x428] ss:$12 sps:$4 sm:$0xff]  }
  0xe7   :  { %2770 = vmatpush2.bf16.msra.mxu0 %v4585_v22  ;;  %v4633_v22 = vld [vmem:[%s6159_s1 + $0x380] ss:$12 sps:$4 sm:$0xff]  }
  0xe8   :  { %2771 = vmatprep.subr.bf16.mxu0 %v4592_v29  ;;  %v4635_v29 = vld [vmem:[%s6159_s1 + $0x1e8] ss:$12 sps:$4 sm:$0xff]  }
  0xe9   :  { %3968 = vmatpush3.bf16.msra.mxu1 %v4589_v28 }
  0xea   :  { %3969 = vmatprep.subr.bf16.mxu1 %v4593_v31  ;;  %v4637_v31 = vld [vmem:[%s6159_s1 + $0x368] ss:$12 sps:$4 sm:$0xff]  }
  0xeb   :  { %2772 = vmatpush2.bf16.msra.mxu0 %v4590_v30  ;;  %v4638_v30 = vld [vmem:[%s6159_s1 + $0x290] ss:$12 sps:$4 sm:$0xff]  }
  0xec   :  { %2773 = vmatprep.subr.bf16.mxu0 %v4597_v35  ;;  %v4639_v35 = vld [vmem:[%s6159_s1 + $0x1d0] ss:$12 sps:$4 sm:$0xff]  }
  0xed   :  { %3970 = vmatpush3.bf16.msra.mxu1 %v4594_v33  ;;  %v4640_v33 = vld [vmem:[%s6159_s1 + $0x410] ss:$12 sps:$4 sm:$0xff]  }
  0xee   :  { %3971 = vmatprep.subr.bf16.mxu1 %v4598_v36  ;;  %v4641_v36 = vld [vmem:[%s6159_s1 + $0x350] ss:$12 sps:$4 sm:$0xff]  }
  0xef   :  { %2774 = vmatpush2.bf16.msra.mxu0 %v4595_v48  ;;  %v4642_v48 = vld [vmem:[%s6159_s1 + $0x278] ss:$12 sps:$4 sm:$0xff]  }
  0xf0   :  { %2775 = vmatprep.subr.bf16.mxu0 %v4602_v42  ;;  %v4643_v42 = vld [vmem:[%s6159_s1 + $0x1b8] ss:$12 sps:$4 sm:$0xff]  }
  0xf1   :  { %3972 = vmatpush3.bf16.msra.mxu1 %v4599_v40  ;;  %v4644_v40 = vld [vmem:[%s6159_s1 + $0x3f8] ss:$12 sps:$4 sm:$0xff]  }
  0xf2   :  { %3973 = vmatprep.subr.bf16.mxu1 %v4603_v21  ;;  %v4646_v21 = vld [vmem:[%s6159_s1 + $0x260] ss:$12 sps:$4 sm:$0xff]  }
  0xf3   :  { %2776 = vmatpush2.bf16.msra.mxu0 %v4600_v43  ;;  %v4645_v43 = vld [vmem:[%s6159_s1 + $0x338] ss:$12 sps:$4 sm:$0xff]  }
  0xf4   :  { %2777 = vmatprep.subr.bf16.mxu0 %v4607_v47  ;;  %v4648_v47 = vld [vmem:[%s6159_s1 + $0x3e0] ss:$12 sps:$4 sm:$0xff]  }
  0xf5   :  { %3974 = vmatpush3.bf16.msra.mxu1 %v4604_v46  ;;  %v4647_v46 = vld [vmem:[%s6159_s1 + $0x1a0] ss:$12 sps:$4 sm:$0xff]  }
  0xf6   :  { %3975 = vmatprep.subr.bf16.mxu1 %v4608_v49  ;;  %v4650_v49 = vld [vmem:[%s6159_s1 + $0x248] ss:$12 sps:$4 sm:$0xff]  }
  0xf7   :  { %2778 = vmatpush2.bf16.msra.mxu0 %v4605_v25  ;;  %v4649_v25 = vld [vmem:[%s6159_s1 + $0x320] ss:$12 sps:$4 sm:$0xff]  }
  0xf8   :  { %2779 = vmatprep.subr.bf16.mxu0 %v4612_v51  ;;  %v4652_v51 = vld [vmem:[%s6159_s1 + $0x3c8] ss:$12 sps:$4 sm:$0xff]  }
  0xf9   :  { %3976 = vmatpush3.bf16.msra.mxu1 %v4609_v50  ;;  %v4651_v50 = vld [vmem:[%s6159_s1 + $0x188] ss:$12 sps:$4 sm:$0xff]  }
  0xfa   :  { %3977 = vmatprep.subr.bf16.mxu1 %v4613_v54  ;;  %v4654_v54 = vld [vmem:[%s6159_s1 + $0x5f0] ss:$12 sps:$4 sm:$0xff]  }
  0xfb   :  { %2780 = vmatpush2.bf16.msra.mxu0 %v4610_v53  ;;  %v4653_v53 = vld [vmem:[%s6159_s1 + $0x308] ss:$12 sps:$4 sm:$0xff]  }
  0xfc   :  { %2781 = vmatprep.subr.bf16.mxu0 %v4617_v56  ;;  %v4656_v56 = vld [vmem:[%s6159_s1 + $0x770] ss:$12 sps:$4 sm:$0xff]  }
  0xfd   :  { %3978 = vmatpush3.bf16.msra.mxu1 %v4614_v55  ;;  %v4655_v55 = vld [vmem:[%s6159_s1 + $0x530] ss:$12 sps:$4 sm:$0xff]  }
  0xfe   :  { %3979 = vmatprep.subr.bf16.mxu1 %v4618_v58  ;;  %v4658_v58 = vld [vmem:[%s6159_s1 + $0x5d8] ss:$12 sps:$4 sm:$0xff]  }
  0xff   :  { %2782 = vmatpush2.bf16.msra.mxu0 %v4615_v57  ;;  %v4657_v57 = vld [vmem:[%s6159_s1 + $0x6b0] ss:$12 sps:$4 sm:$0xff]  }
 0x100   :  { %3987 = vmatprep.subr.bf16.mxu0 %v4622_v60  ;;  %v4660_v60 = vld [vmem:[%s6159_s1 + $0x758] ss:$12 sps:$4 sm:$0xff]  }
 0x101   :  { %3980 = vmatpush3.bf16.msra.mxu1 %v4621_v61  ;;  %v4659_v61 = vld [vmem:[%s6159_s1 + $0x518] ss:$12 sps:$4 sm:$0xff]  }
 0x102   :  { %v2539_v4 = vpop.f32.mrf.mxu0  ;;  %2784 = vmatmul.mubr.bf16.vlgmr.msra.gmra.mxu0 %v5676_v62  ;;  %4009 = vmatprep.subr.bf16.mxu1 %v4624_v63  ;;  %v4661_v63 = vld [vmem:[%s6159_s1 + $0x698] ss:$12 sps:$4 sm:$0xff]  }
 0x103   :  { %v2540_v6 = vadd.f32 %v2539_v4, %v520_v0  ;;  %3988 = vmatpush3.bf16.msra.mxu0 %v4623_v1  ;;  %2905 = vmatprep.mubr.bf16.mxu0 %v4958_v52  ;;  %v2580_v9 = vpop.f32.mrf.mxu1  ;;  %v4662_v0 = vld [vmem:[%s6159_s1 + $0x5c0] ss:$12 sps:$4 sm:$0xff]   ;;  %v4672_v4 = vld [vmem:[%s6159_s1 + $0x710] ss:$12 sps:$4 sm:$0xff]  }
 0x104   :  { %v2541_v39 = vpop.f32.mrf.mxu0  ;;  %2866 = vmatmul.mubr.bf16.vlgmr.msra.gmra.mxu1 %v5009_v5  ;;  %3989 = vmatprep.subr.bf16.mxu0 %v4626_v2  ;;  %v4632_v5 = vld [vmem:[%s6159_s1 + $0x440] ss:$12 sps:$4 sm:$0xff]   ;;  %v4668_v2 = vld [vmem:[%s6159_s1 + $0x728] ss:$12 sps:$4 sm:$0xff]  }
 0x105   :  { %v2542_v11 = vadd.f32 %v2541_v39, %v524_v38  ;;  %v5708_v12 = vadd.f32 %v2580_v9, %v2540_v6  ;;  %4010 = vmatpush3.bf16.msra.mxu1 %v4625_v3  ;;  %2945 = vmatprep.mubr.bf16.mxu1 %v5100_v34  ;;  %v2582_v14 = vpop.f32.mrf.mxu1  ;;  %v4634_v34 = vld [vmem:[%s6159_s1 + $0x2a8] ss:$12 sps:$4 sm:$0xff]   ;;  %v4664_v1 = vld [vmem:[%s6159_s1 + $0x740] ss:$12 sps:$4 sm:$0xff]   ;;  %v4670_v38 = vld [vmem:[%s6159_s1 + $0x590] ss:$12 sps:$4 sm:$0xff]  }
 0x106   :  { %v2543_v52 = vpop.f32.mrf.mxu0  ;;  %4011 = vmatprep.subr.bf16.mxu1 %v4628_v32  ;;  %v4669_v3 = vld [vmem:[%s6159_s1 + $0x668] ss:$12 sps:$4 sm:$0xff]   ;;  %v4671_v32 = vld [vmem:[%s6159_s1 + $0x4d0] ss:$12 sps:$4 sm:$0xff]   ;;  %v4674_v6 = vld [vmem:[%s6159_s1 + $0x578] ss:$12 sps:$4 sm:$0xff]  }
 0x107   :  { %v5717_v16 = vadd.f32 %v2582_v14, %v2542_v11  ;;  %3990 = vmatpush3.bf16.msra.mxu0 %v4627_v7  ;;  %v2584_v20 = vpop.f32.mrf.mxu1  ;;  %v4673_v7 = vld [vmem:[%s6159_s1 + $0x650] ss:$12 sps:$4 sm:$0xff]   ;;  %v4676_v39 = vld [vmem:[%s6159_s1 + $0x6f8] ss:$12 sps:$4 sm:$0xff]   ;;  %v4679_v52 = vld [vmem:[%s6159_s1 + $0x4a0] ss:$12 sps:$4 sm:$0xff]  }
 0x108   :  { %v2544_v19 = vpop.f32.mrf.mxu0  ;;  %3991 = vmatprep.subr.bf16.mxu0 %v4630_v10  ;;  %v4675_v9 = vld [vmem:[%s6159_s1 + $0x4b8] ss:$12 sps:$4 sm:$0xff]   ;;  %v4678_v10 = vld [vmem:[%s6159_s1 + $0x560] ss:$12 sps:$4 sm:$0xff]   ;;  %v4682_v14 = vld [vmem:[%s6159_s1 + $0x548] ss:$12 sps:$4 sm:$0xff]  }
 0x109   :  { %4012 = vmatpush3.bf16.msra.mxu1 %v4629_v13  ;;  %v2585_v28 = vpop.f32.mrf.mxu1  ;;  %v4677_v11 = vld [vmem:[%s6159_s1 + $0x638] ss:$12 sps:$4 sm:$0xff]   ;;  %v4680_v13 = vld [vmem:[%s6159_s1 + $0x6e0] ss:$12 sps:$4 sm:$0xff]   ;;  %v4683_v19 = vld [vmem:[%s6159_s1 + $0x488] ss:$12 sps:$4 sm:$0xff]  }
 0x10a   :  { %4013 = vmatprep.subr.bf16.mxu1 %v4632_v5  ;;  %v4681_v5 = vld [vmem:[%s6159_s1 + $0x620] ss:$12 sps:$4 sm:$0xff]   ;;  %v4685_v20 = vld [vmem:[%s6159_s1 + $0x608] ss:$12 sps:$4 sm:$0xff]   ;;  %v4690_v28 = vld [vmem:[%s6159_s1 + $0x8d8] ss:$12 sps:$4 sm:$0xff]  }
 0x10b   :  { %3992 = vmatpush3.bf16.msra.mxu0 %v4631_v17  ;;  %v4684_v17 = vld [vmem:[%s6159_s1 + $0x6c8] ss:$12 sps:$4 sm:$0xff]  }
 0x10c   :  { %3993 = vmatprep.subr.bf16.mxu0 %v4634_v34  ;;  %v4686_v34 = vld [vmem:[%s6159_s1 + $0x8f0] ss:$12 sps:$4 sm:$0xff]  }
 0x10d   :  { %4014 = vmatpush3.bf16.msra.mxu1 %v4633_v22  ;;  %v4688_v22 = vld [vmem:[%s6159_s1 + $0xa70] ss:$12 sps:$4 sm:$0xff]  }
 0x10e   :  { %4015 = vmatprep.subr.bf16.mxu1 %v4636_v23  ;;  %v4687_v23 = vld [vmem:[%s6159_s1 + $0x830] ss:$12 sps:$4 sm:$0xff]  }
 0x10f   :  { %3994 = vmatpush3.bf16.msra.mxu0 %v4635_v29  ;;  %v4689_v29 = vld [vmem:[%s6159_s1 + $0x9b0] ss:$12 sps:$4 sm:$0xff]  }
 0x110   :  { %3995 = vmatprep.subr.bf16.mxu0 %v4638_v30 }
 0x111   :  { %4016 = vmatpush3.bf16.msra.mxu1 %v4637_v31  ;;  %v4692_v31 = vld [vmem:[%s6159_s1 + $0xa58] ss:$12 sps:$4 sm:$0xff]  }
 0x112   :  { %4017 = vmatprep.subr.bf16.mxu1 %v4640_v33 }
 0x113   :  { %3996 = vmatpush3.bf16.msra.mxu0 %v4639_v35  ;;  %v4691_v35 = vld [vmem:[%s6159_s1 + $0x818] ss:$12 sps:$4 sm:$0xff]  }
 0x114   :  { %3997 = vmatprep.subr.bf16.mxu0 %v4642_v48 }
 0x115   :  { %4018 = vmatpush3.bf16.msra.mxu1 %v4641_v36 }
 0x116   :  { %4019 = vmatprep.subr.bf16.mxu1 %v4644_v40 }
 0x117   :  { %3998 = vmatpush3.bf16.msra.mxu0 %v4643_v42 }
 0x118   :  { %3999 = vmatprep.subr.bf16.mxu0 %v4646_v21 }
 0x119   :  { %4020 = vmatpush3.bf16.msra.mxu1 %v4645_v43 }
 0x11a   :  { %4021 = vmatprep.subr.bf16.mxu1 %v4648_v47 }
 0x11b   :  { %4000 = vmatpush3.bf16.msra.mxu0 %v4647_v46 }
 0x11c   :  { %4001 = vmatprep.subr.bf16.mxu0 %v4650_v49  ;;  %v4700_v49 = vld [vmem:[%s6159_s1 + $0xa28] ss:$12 sps:$4 sm:$0xff]  }
 0x11d   :  { %4022 = vmatpush3.bf16.msra.mxu1 %v4649_v25  ;;  %v4697_v25 = vld [vmem:[%s6159_s1 + $0x980] ss:$12 sps:$4 sm:$0xff]  }
 0x11e   :  { %4023 = vmatprep.subr.bf16.mxu1 %v4652_v51  ;;  %v4699_v51 = vld [vmem:[%s6159_s1 + $0x7e8] ss:$12 sps:$4 sm:$0xff]  }
 0x11f   :  { %4002 = vmatpush3.bf16.msra.mxu0 %v4651_v50 }
 0x120   :  { %4031 = vmatprep.subr.bf16.mxu0 %v4654_v54  ;;  %v4701_v54 = vld [vmem:[%s6159_s1 + $0x968] ss:$12 sps:$4 sm:$0xff]  }
 0x121   :  { %4024 = vmatpush3.bf16.msra.mxu1 %v4653_v53  ;;  %v4702_v53 = vld [vmem:[%s6159_s1 + $0x890] ss:$12 sps:$4 sm:$0xff]  }
 0x122   :  { %2906 = vmatmul.mubr.bf16.vlgmr.msra.gmra.mxu0 %v5017_v8  ;;  %4053 = vmatprep.subr.bf16.mxu1 %v4656_v56  ;;  %v4663_v8 = vld [vmem:[%s6159_s1 + $0x500] ss:$12 sps:$4 sm:$0xff]   ;;  %v4703_v56 = vld [vmem:[%s6159_s1 + $0x7d0] ss:$12 sps:$4 sm:$0xff]  }
 0x123   :  { %4032 = vmatpush3.bf16.msra.mxu0 %v4655_v55  ;;  %2985 = vmatprep.mubr.bf16.mxu0 %v5112_v37  ;;  %v4665_v37 = vld [vmem:[%s6159_s1 + $0x680] ss:$12 sps:$4 sm:$0xff]   ;;  %v4704_v55 = vld [vmem:[%s6159_s1 + $0xa10] ss:$12 sps:$4 sm:$0xff]  }
 0x124   :  { %2946 = vmatmul.mubr.bf16.vlgmr.msra.gmra.mxu1 %v5229_v15  ;;  %4033 = vmatprep.subr.bf16.mxu0 %v4658_v58  ;;  %v4666_v15 = vld [vmem:[%s6159_s1 + $0x5a8] ss:$12 sps:$4 sm:$0xff]   ;;  %v4705_v58 = vld [vmem:[%s6159_s1 + $0x950] ss:$12 sps:$4 sm:$0xff]  }
 0x125   :  { %4054 = vmatpush3.bf16.msra.mxu1 %v4657_v57  ;;  %3025 = vmatprep.mubr.bf16.mxu1 %v5261_v24  ;;  %v4667_v24 = vld [vmem:[%s6159_s1 + $0x4e8] ss:$12 sps:$4 sm:$0xff]   ;;  %v4706_v57 = vld [vmem:[%s6159_s1 + $0x878] ss:$12 sps:$4 sm:$0xff]  }
 0x126   :  { %4055 = vmatprep.subr.bf16.mxu1 %v4660_v60  ;;  %v4708_v60 = vld [vmem:[%s6159_s1 + $0x9f8] ss:$12 sps:$4 sm:$0xff]  }
 0x127   :  { %4034 = vmatpush3.bf16.msra.mxu0 %v4659_v61  ;;  %v4707_v61 = vld [vmem:[%s6159_s1 + $0x7b8] ss:$12 sps:$4 sm:$0xff]  }
 0x128   :  { %4035 = vmatprep.subr.bf16.mxu0 %v4662_v0  ;;  %v4709_v0 = vld [vmem:[%s6159_s1 + $0x938] ss:$12 sps:$4 sm:$0xff]  }
 0x129   :  { %4056 = vmatpush3.bf16.msra.mxu1 %v4661_v63  ;;  %v4710_v63 = vld [vmem:[%s6159_s1 + $0x860] ss:$12 sps:$4 sm:$0xff]  }
 0x12a   :  { %4057 = vmatprep.subr.bf16.mxu1 %v4664_v1  ;;  %v4711_v1 = vld [vmem:[%s6159_s1 + $0x7a0] ss:$12 sps:$4 sm:$0xff]  }
 0x12b   :  { %4036 = vmatpush3.bf16.msra.mxu0 %v4663_v8  ;;  %v4712_v8 = vld [vmem:[%s6159_s1 + $0x9e0] ss:$12 sps:$4 sm:$0xff]  }
 0x12c   :  { %4037 = vmatprep.subr.bf16.mxu0 %v4666_v15  ;;  %v4713_v15 = vld [vmem:[%s6159_s1 + $0x920] ss:$12 sps:$4 sm:$0xff]  }
 0x12d   :  { %4058 = vmatpush3.bf16.msra.mxu1 %v4665_v37  ;;  %v4714_v37 = vld [vmem:[%s6159_s1 + $0x848] ss:$12 sps:$4 sm:$0xff]  }
 0x12e   :  { %4059 = vmatprep.subr.bf16.mxu1 %v4668_v2  ;;  %v4715_v2 = vld [vmem:[%s6159_s1 + $0x788] ss:$12 sps:$4 sm:$0xff]  }
 0x12f   :  { %4038 = vmatpush3.bf16.msra.mxu0 %v4667_v24  ;;  %v4716_v24 = vld [vmem:[%s6159_s1 + $0x9c8] ss:$12 sps:$4 sm:$0xff]  }
 0x130   :  { %4039 = vmatprep.subr.bf16.mxu0 %v4670_v38  ;;  %v4717_v38 = vld [vmem:[%s6159_s1 + $0x908] ss:$12 sps:$4 sm:$0xff]  }
 0x131   :  { %4060 = vmatpush3.bf16.msra.mxu1 %v4669_v3  ;;  %v4726_v3 = vld [vmem:[%s6162_s3 + $0x78] sm:$0xff]  }
 0x132   :  { %4061 = vmatprep.subr.bf16.mxu1 %v4672_v4  ;;  %v4718_v4 = vld [vmem:[%s6159_s1 + $0xb30] ss:$12 sps:$4 sm:$0xff]  }
 0x133   :  { %4040 = vmatpush3.bf16.msra.mxu0 %v4671_v32  ;;  %v4760_v32 = vmov 0.0  }
 0x134   :  { %4041 = vmatprep.subr.bf16.mxu0 %v4674_v6  ;;  %v4727_v6 = vld [vmem:[%s6162_s3 + $0x38] sm:$0xff]  }
 0x135   :  { %4062 = vmatpush3.bf16.msra.mxu1 %v4673_v7  ;;  %v4728_v7 = vld [vmem:[%s6162_s3 + $0x70] sm:$0xff]  }
 0x136   :  { %4063 = vmatprep.subr.bf16.mxu1 %v4676_v39  ;;  %v4719_v39 = vld [vmem:[%s6159_s1 + $0xb18] ss:$12 sps:$4 sm:$0xff]  }
 0x137   :  { %4042 = vmatpush3.bf16.msra.mxu0 %v4675_v9  ;;  %v4730_v9 = vld [vmem:[%s6162_s3 + $0x68] sm:$0xff]  }
 0x138   :  { %4043 = vmatprep.subr.bf16.mxu0 %v4678_v10  ;;  %v4720_v10 = vld [vmem:[%s6159_s1 + $0xb00] ss:$12 sps:$4 sm:$0xff]  }
 0x139   :  { %4064 = vmatpush3.bf16.msra.mxu1 %v4677_v11  ;;  %v4732_v11 = vld [vmem:[%s6162_s3 + $0x60] sm:$0xff]  }
 0x13a   :  { %4065 = vmatprep.subr.bf16.mxu1 %v4680_v13  ;;  %v4721_v13 = vld [vmem:[%s6159_s1 + $0xae8] ss:$12 sps:$4 sm:$0xff]  }
 0x13b   :  { %4044 = vmatpush3.bf16.msra.mxu0 %v4679_v52  ;;  %v4733_v52 = vld [vmem:[%s6162_s3 + $0x20] sm:$0xff]  }
 0x13c   :  { %4045 = vmatprep.subr.bf16.mxu0 %v4682_v14  ;;  %v4734_v14 = vld [vmem:[%s6162_s3 + $0x58] sm:$0xff]  }
 0x13d   :  { %4066 = vmatpush3.bf16.msra.mxu1 %v4681_v5  ;;  %v4722_v5 = vld [vmem:[%s6159_s1 + $0xad0] ss:$12 sps:$4 sm:$0xff]  }
 0x13e   :  { %4067 = vmatprep.subr.bf16.mxu1 %v4684_v17  ;;  %v4735_v17 = vld [vmem:[%s6162_s3 + $0x18] sm:$0xff]  }
 0x13f   :  { %4046 = vmatpush3.bf16.msra.mxu0 %v4683_v19  ;;  %v4736_v19 = vld [vmem:[%s6162_s3 + $0x50] sm:$0xff]  }
 0x140   :  { %4075 = vmatprep.subr.bf16.mxu0 %v4686_v34  ;;  %v4723_v34 = vld [vmem:[%s6159_s1 + $0xab8] ss:$12 sps:$4 sm:$0xff]  }
 0x141   :  { %4068 = vmatpush3.bf16.msra.mxu1 %v4685_v20  ;;  %v4737_v20 = vld [vmem:[%s6162_s3 + $0x10] sm:$0xff]  }
 0x142   :  { %v2621_v30 = vpop.f32.mrf.mxu0  ;;  %2986 = vmatmul.mubr.bf16.vlgmr.msra.gmra.mxu0 %v5239_v18  ;;  %4097 = vmatprep.subr.bf16.mxu1 %v4688_v22  ;;  %v4694_v18 = vld [vmem:[%s6159_s1 + $0x8c0] ss:$12 sps:$4 sm:$0xff]  }
 0x143   :  { %v2622_v33 = vadd.f32 %v2621_v30, %v5708_v12  ;;  %4076 = vmatpush3.bf16.msra.mxu0 %v4687_v23  ;;  %3065 = vmatprep.mubr.bf16.mxu0 %v5274_v27  ;;  %v2662_v36 = vpop.f32.mrf.mxu1  ;;  %v4693_v12 = vld [vmem:[%s6159_s1 + $0x998] ss:$12 sps:$4 sm:$0xff]   ;;  %v4738_v22 = vld [vmem:[%s6162_s3 + $0x48] sm:$0xff]  }
 0x144   :  { %v2623_v48 = vpop.f32.mrf.mxu0  ;;  %3026 = vmatmul.mubr.bf16.vlgmr.msra.gmra.mxu1 %v5463_v41  ;;  %4077 = vmatprep.subr.bf16.mxu0 %v4690_v28  ;;  %v4696_v41 = vld [vmem:[%s6159_s1 + $0xa40] ss:$12 sps:$4 sm:$0xff]   ;;  %v4725_v30 = vld [vmem:[%s6159_s1 + $0xa88] ss:$12 sps:$4 sm:$0xff]  }
 0x145   :  { %v2624_v40 = vadd.f32 %v2623_v48, %v5717_v16  ;;  %v5914_v42 = vadd.f32 %v2662_v36, %v2622_v33  ;;  %4098 = vmatpush3.bf16.msra.mxu1 %v4689_v29  ;;  %3105 = vmatprep.mubr.bf16.mxu1 %v5473_v44  ;;  %v2664_v43 = vpop.f32.mrf.mxu1  ;;  %v4695_v16 = vld [vmem:[%s6159_s1 + $0x800] ss:$12 sps:$4 sm:$0xff]   ;;  %v4698_v44 = vld [vmem:[%s6159_s1 + $0x8a8] ss:$12 sps:$4 sm:$0xff]  }
 0x146   :  { %v2625_v27 = vpop.f32.mrf.mxu0  ;;  %4099 = vmatprep.subr.bf16.mxu1 %v4692_v31  ;;  %v4724_v23 = vld [vmem:[%s6159_s1 + $0xaa0] ss:$12 sps:$4 sm:$0xff]  }
 0x147   :  { %v5923_v21 = vadd.f32 %v2664_v43, %v2624_v40  ;;  %4078 = vmatpush3.bf16.msra.mxu0 %v4691_v35  ;;  %v2666_v47 = vpop.f32.mrf.mxu1  ;;  %v4739_v28 = vld [vmem:[%s6162_s3 + $0x8] sm:$0xff]   ;;  %v4740_v29 = vld [vmem:[%s6162_s3 + $0x40] sm:$0xff]   ;;  %v4758_v35 = vld [vmem:[%s6160_s0 + $0x38] ss:$0 sps:$4 sm:$0xff]  }
 0x148   :  { %v2626_v46 = vpop.f32.mrf.mxu0  ;;  %4079 = vmatprep.subr.bf16.mxu0 %v4694_v18  ;;  %v4741_v31 = vld [vmem:[%s6162_s3] sm:$0xff]  }
 0x149   :  { %4100 = vmatpush3.bf16.msra.mxu1 %v4693_v12  ;;  %v2667_v50 = vpop.f32.mrf.mxu1 }
 0x14a   :  { %4101 = vmatprep.subr.bf16.mxu1 %v4696_v41  ;;  %v4745_v50 = vld [vmem:[%s6162_s3 + $0xa0] sm:$0xff]  }
 0x14b   :  { %4080 = vmatpush3.bf16.msra.mxu0 %v4695_v16 }
 0x14c   :  { %4081 = vmatprep.subr.bf16.mxu0 %v4698_v44  ;;  %v4742_v44 = vld [vmem:[%s6162_s3 + $0xb8] sm:$0xff]  }
 0x14d   :  { %4102 = vmatpush3.bf16.msra.mxu1 %v4697_v25  ;;  %v4743_v25 = vld [vmem:[%s6162_s3 + $0xb0] sm:$0xff]  }
 0x14e   :  { %4103 = vmatprep.subr.bf16.mxu1 %v4700_v49  ;;  %v4744_v49 = vld [vmem:[%s6162_s3 + $0xa8] sm:$0xff]  }
 0x14f   :  { %4082 = vmatpush3.bf16.msra.mxu0 %v4699_v51  ;;  %v4746_v51 = vld [vmem:[%s6162_s3 + $0x98] sm:$0xff]  }
 0x150   :  { %4083 = vmatprep.subr.bf16.mxu0 %v4702_v53  ;;  %v4747_v53 = vld [vmem:[%s6162_s3 + $0x90] sm:$0xff]  }
 0x151   :  { %4104 = vmatpush3.bf16.msra.mxu1 %v4701_v54 }
 0x152   :  { %4105 = vmatprep.subr.bf16.mxu1 %v4704_v55 }
 0x153   :  { %4084 = vmatpush3.bf16.msra.mxu0 %v4703_v56  ;;  %v4748_v56 = vld [vmem:[%s6162_s3 + $0x88] sm:$0xff]  }
 0x154   :  { %4085 = vmatprep.subr.bf16.mxu0 %v4706_v57 }
 0x155   :  { %4106 = vmatpush3.bf16.msra.mxu1 %v4705_v58 }
 0x156   :  { %4107 = vmatprep.subr.bf16.mxu1 %v4708_v60 }
 0x157   :  { %4086 = vmatpush3.bf16.msra.mxu0 %v4707_v61 }
 0x158   :  { %4087 = vmatprep.subr.bf16.mxu0 %v4710_v63 }
 0x159   :  { %4108 = vmatpush3.bf16.msra.mxu1 %v4709_v0 }
 0x15a   :  { %4109 = vmatprep.subr.bf16.mxu1 %v4712_v8 }
 0x15b   :  { %4088 = vmatpush3.bf16.msra.mxu0 %v4711_v1 }
 0x15c   :  { %4089 = vmatprep.subr.bf16.mxu0 %v4714_v37 }
 0x15d   :  { %4110 = vmatpush3.bf16.msra.mxu1 %v4713_v15 }
 0x15e   :  { %4111 = vmatprep.subr.bf16.mxu1 %v4716_v24 }
 0x15f   :  { %4090 = vmatpush3.bf16.msra.mxu0 %v4715_v2 }
 0x160   :  { %4168 = vmatprep.subr.bf16.mxu0 %v4760_v32 }
 0x161   :  { %4112 = vmatpush3.bf16.msra.mxu1 %v4717_v38 }
 0x162   :  { %3066 = vmatmul.mubr.bf16.vlgmr.msra.gmra.mxu0 %v5477_v45  ;;  %4128 = vmatprep.subr.bf16.mxu1 %v4726_v3  ;;  %v4729_v45 = vld [vmem:[%s6162_s3 + $0x30] sm:$0xff]  }
 0x163   :  { %4169 = vmatpush3.bf16.msra.mxu0 %v4718_v4  ;;  %4184 = vmatprep.mubr.msk.bf16.mxu0 %vm4761_vm0, %v4760_v32 }
 0x164   :  { %3106 = vmatmul.mubr.bf16.vlgmr.msra.gmra.mxu1 %v5676_v62  ;;  %4170 = vmatprep.subr.bf16.mxu0 %v4760_v32  ;;  %v4731_v62 = vld [vmem:[%s6162_s3 + $0x28] sm:$0xff]  }
 0x165   :  { %4129 = vmatpush3.bf16.msra.mxu1 %v4727_v6 }
 0x166   :  { %4130 = vmatprep.subr.bf16.mxu1 %v4728_v7 }
 0x167   :  { %4171 = vmatpush3.bf16.msra.mxu0 %v4719_v39 }
 0x168   :  { %4172 = vmatprep.subr.bf16.mxu0 %v4760_v32 }
 0x169   :  { %4131 = vmatpush3.bf16.msra.mxu1 %v4729_v45  ;;  %v527_v45 = vsub.s32 2, %v5428_v26 }
 0x16a   :  { %4132 = vmatprep.subr.bf16.mxu1 %v4730_v9 }
 0x16b   :  { %4173 = vmatpush3.bf16.msra.mxu0 %v4720_v10  ;;  %v528_v9 = vrot.slane %v5666_v59, %v527_v45 }
 0x16c   :  { %4174 = vmatprep.subr.bf16.mxu0 %v4760_v32 }
 0x16d   :  { %4133 = vmatpush3.bf16.msra.mxu1 %v4731_v62 }
 0x16e   :  { %4134 = vmatprep.subr.bf16.mxu1 %v4732_v11 }
 0x16f   :  { %4175 = vmatpush3.bf16.msra.mxu0 %v4721_v13 }
 0x170   :  { %4176 = vmatprep.subr.bf16.mxu0 %v4760_v32 }
 0x171   :  { %4135 = vmatpush3.bf16.msra.mxu1 %v4733_v52 }
 0x172   :  { %4136 = vmatprep.subr.bf16.mxu1 %v4734_v14 }
 0x173   :  { %4177 = vmatpush3.bf16.msra.mxu0 %v4722_v5 }
 0x174   :  { %4178 = vmatprep.subr.bf16.mxu0 %v4760_v32 }
 0x175   :  { %4137 = vmatpush3.bf16.msra.mxu1 %v4735_v17 }
 0x176   :  { %4138 = vmatprep.subr.bf16.mxu1 %v4736_v19 }
 0x177   :  { %4179 = vmatpush3.bf16.msra.mxu0 %v4723_v34 }
 0x178   :  { %4180 = vmatprep.subr.bf16.mxu0 %v4760_v32 }
 0x179   :  { %4139 = vmatpush3.bf16.msra.mxu1 %v4737_v20 }
 0x17a   :  { %4140 = vmatprep.subr.bf16.mxu1 %v4738_v22 }
 0x17b   :  { %4181 = vmatpush3.bf16.msra.mxu0 %v4724_v23 }
 0x17c   :  { %4182 = vmatprep.subr.bf16.mxu0 %v4760_v32 }
 0x17d   :  { %4141 = vmatpush3.bf16.msra.mxu1 %v4739_v28 }
 0x17e   :  { %4142 = vmatprep.subr.bf16.mxu1 %v4740_v29 }
 0x17f   :  { %4183 = vmatpush3.bf16.msra.mxu0 %v4725_v30 }
 0x180   :  { %4188 = vmatprep.subr.bf16.mxu0 %v4760_v32 }
 0x181   :  { %4143 = vmatpush3.bf16.msra.mxu1 %v4741_v31 }
 0x182   :  { %v2703_v33 = vpop.f32.mrf.mxu0  ;;  %4185 = vmatmul.mubr.bf16.vlgmr.msra.gmra.mxu0 %v4758_v35  ;;  %4208 = vmatprep.subr.bf16.mxu1 %v4760_v32 }
 0x183   :  { %4204 = vmatprep.mubr.msk.bf16.mxu0 %vm4761_vm0, %v4760_v32  ;;  %4189 = vmatpush3.bf16.msra.mxu0 %v4742_v44  ;;  %v2704_v54 = vadd.f32 %v2703_v33, %v5914_v42  ;;  %v4749_v42 = vld [vmem:[%s6162_s3 + $0x80] sm:$0xff]   ;;  %v4755_v44 = vld [vmem:[%s6163_s5 + $0x10] sm:$0xff]  }
 0x184   :  { %v2705_v48 = vpop.f32.mrf.mxu0  ;;  %v2744_v36 = vpop.f32.mrf.mxu1  ;;  %4190 = vmatprep.subr.bf16.mxu0 %v4760_v32 }
 0x185   :  { %v2706_v55 = vadd.f32 %v2705_v48, %v5923_v21  ;;  %v2745_v57 = vadd.f32 %v2744_v36, %v2704_v54  ;;  %v4750_v48 = vld [vmem:[%s6163_s5 + $0x38] sm:$0xff]   ;;  %v4751_v36 = vld [vmem:[%s6163_s5 + $0x30] sm:$0xff]  }
 0x186   :  { %v2707_v18 = vpop.f32.mrf.mxu0  ;;  %v2746_v40 = vpop.f32.mrf.mxu1 }
 0x187   :  { %4191 = vmatpush3.bf16.msra.mxu0 %v4743_v25  ;;  %v2747_v60 = vadd.f32 %v2746_v40, %v2706_v55  ;;  %v4752_v18 = vld [vmem:[%s6163_s5 + $0x28] sm:$0xff]   ;;  %v4753_v40 = vld [vmem:[%s6163_s5 + $0x20] sm:$0xff]  }
 0x188   :  { %v2708_v12 = vpop.f32.mrf.mxu0  ;;  %v2748_v27 = vpop.f32.mrf.mxu1  ;;  %4192 = vmatprep.subr.bf16.mxu0 %v4760_v32 }
 0x189   :  { %v4754_v27 = vld [vmem:[%s6163_s5 + $0x18] sm:$0xff]  }
 0x18a   :  { %v2749_v43 = vpop.f32.mrf.mxu1 }
 0x18b   :  { %4193 = vmatpush3.bf16.msra.mxu0 %v4744_v49 }
 0x18c   :  { %4194 = vmatprep.subr.bf16.mxu0 %v4760_v32 }
 0x18f   :  { %4195 = vmatpush3.bf16.msra.mxu0 %v4745_v50 }
 0x190   :  { %4196 = vmatprep.subr.bf16.mxu0 %v4760_v32 }
 0x193   :  { %4197 = vmatpush3.bf16.msra.mxu0 %v4746_v51 }
 0x194   :  { %4198 = vmatprep.subr.bf16.mxu0 %v4760_v32 }
 0x197   :  { %4199 = vmatpush3.bf16.msra.mxu0 %v4747_v53 }
 0x198   :  { %4200 = vmatprep.subr.bf16.mxu0 %v4760_v32 }
 0x19b   :  { %4201 = vmatpush3.bf16.msra.mxu0 %v4748_v56 }
 0x19c   :  { %4202 = vmatprep.subr.bf16.mxu0 %v4760_v32 }
 0x19f   :  { %4203 = vmatpush3.bf16.msra.mxu0 %v4749_v42 }
 0x1a4   :  { %v2826_v41 = vpop.f32.mrf.mxu1 }
 0x1a6   :  { %v2828_v16 = vpop.f32.mrf.mxu1 }
 0x1a8   :  { %v2830_v46 = vpop.f32.mrf.mxu1 }
 0x1aa   :  { %v2831_v47 = vpop.f32.mrf.mxu1 }
 0x1c2   :  { %v2785_v58 = vpop.f32.mrf.mxu0 }
 0x1c3   :  { %v2786_v61 = vadd.f32 %v2785_v58, %v2745_v57 }
 0x1c4   :  { %v2787_v63 = vpop.f32.mrf.mxu0  ;;  %v3981_v0 = vpop.f32.mrf.mxu1 }
 0x1c5   :  { %v2827_v21 = vadd.f32 %v2826_v41, %v2786_v61  ;;  %v2788_v8 = vadd.f32 %v2787_v63, %v2747_v60 }
 0x1c6   :  { %v2789_v1 = vpop.f32.mrf.mxu0  ;;  %v3982_v37 = vpop.f32.mrf.mxu1 }
 0x1c7   :  { %v2829_v15 = vadd.f32 %v2828_v16, %v2788_v8  ;;  %v3983_v24 = vadd.f32 %v3982_v37, %v3981_v0  ;;  %v3153_v2 = vmax.f32 %v2827_v21, 0.0  ;;  %v4756_v1 = vld [vmem:[%s6163_s5 + $0x8] sm:$0xff]   ;;  %v4757_v37 = vld [vmem:[%s6163_s5] sm:$0xff]  }
 0x1c8   :  { %v2790_v38 = vpop.f32.mrf.mxu0  ;;  %v3984_v3 = vpop.f32.mrf.mxu1 }
 0x1c9   :  { %v3154_v4 = vmax.f32 %v2829_v15, 0.0  ;;  %v3156_v39 = vpack.c.bf16 %v3153_v2, %v3153_v2  ;;  %v2868_v13 = vadd.f32 %v3983_v24, %v528_v9 }
 0x1ca   :  { %v3985_v6 = vpop.f32.mrf.mxu1 }
 0x1cb   :  { %v3157_v7 = vpack.c.bf16 %v3154_v4, %v3154_v4  ;;  %v3931_v4 = vld [vmem:[%s6164_s4] ss:$0 sm:$0xff] }
 0x1cd   :  { %3390 = vmatprep.mubr.bf16.mxu1 %v3157_v7 }
 0x1ce   :  { %3391 = vmatmul.mubr.bf16.vlgmr.msra.gmra.mxu1 %v3156_v39 }
 0x1cf   :  { %4224 = vmatprep.mubr.msk.bf16.mxu1 %vm4761_vm0, %v4760_v32  ;;  %4209 = vmatpush3.bf16.msra.mxu1 %v4750_v48 }
 0x1d0   :  { %4210 = vmatprep.subr.bf16.mxu1 %v4760_v32 }
 0x1d3   :  { %4211 = vmatpush3.bf16.msra.mxu1 %v4751_v36 }
 0x1d4   :  { %4212 = vmatprep.subr.bf16.mxu1 %v4760_v32 }
 0x1d7   :  { %4213 = vmatpush3.bf16.msra.mxu1 %v4752_v18 }
 0x1d8   :  { %4214 = vmatprep.subr.bf16.mxu1 %v4760_v32 }
 0x1db   :  { %4215 = vmatpush3.bf16.msra.mxu1 %v4753_v40 }
 0x1dc   :  { %4216 = vmatprep.subr.bf16.mxu1 %v4760_v32 }
 0x1df   :  { %4217 = vmatpush3.bf16.msra.mxu1 %v4754_v27 }
 0x1e0   :  { %4218 = vmatprep.subr.bf16.mxu1 %v4760_v32 }
 0x1e2   :  { %v4003_v10 = vpop.f32.mrf.mxu0 }
 0x1e3   :  { %4219 = vmatpush3.bf16.msra.mxu1 %v4755_v44 }
 0x1e4   :  { %v4004_v62 = vpop.f32.mrf.mxu0  ;;  %v4025_v11 = vpop.f32.mrf.mxu1  ;;  %4220 = vmatprep.subr.bf16.mxu1 %v4760_v32 }
 0x1e5   :  { %v4005_v52 = vadd.f32 %v4004_v62, %v4003_v10 }
 0x1e6   :  { %v4006_v14 = vpop.f32.mrf.mxu0  ;;  %v4026_v5 = vpop.f32.mrf.mxu1 }
 0x1e7   :  { %v2908_v17 = vadd.f32 %v4005_v52, %v2868_v13  ;;  %v4027_v19 = vadd.f32 %v4026_v5, %v4025_v11  ;;  %4221 = vmatpush3.bf16.msra.mxu1 %v4756_v1  ;;  %v3956_v11 = vld [vmem:[%s6165_s6] ss:$0 sm:$0xff] }
 0x1e8   :  { %v4007_v34 = vpop.f32.mrf.mxu0  ;;  %v4028_v20 = vpop.f32.mrf.mxu1  ;;  %4222 = vmatprep.subr.bf16.mxu1 %v4760_v32 }
 0x1e9   :  { %v2948_v22 = vadd.f32 %v4027_v19, %v2908_v17 }
 0x1ea   :  { %v4029_v23 = vpop.f32.mrf.mxu1 }
 0x1eb   :  { %4223 = vmatpush3.bf16.msra.mxu1 %v4757_v37 }
 0x202   :  { %v4047_v28 = vpop.f32.mrf.mxu0 }
 0x204   :  { %v4048_v29 = vpop.f32.mrf.mxu0  ;;  %v4069_v30 = vpop.f32.mrf.mxu1 }
 0x205   :  { %v4049_v50 = vadd.f32 %v4048_v29, %v4047_v28 }
 0x206   :  { %v4050_v31 = vpop.f32.mrf.mxu0  ;;  %v4070_v26 = vpop.f32.mrf.mxu1 }
 0x207   :  { %v2988_v51 = vadd.f32 %v4049_v50, %v2948_v22  ;;  %v4071_v53 = vadd.f32 %v4070_v26, %v4069_v30 }
 0x208   :  { %v4051_v33 = vpop.f32.mrf.mxu0  ;;  %v4072_v59 = vpop.f32.mrf.mxu1 }
 0x209   :  { %v3028_v55 = vadd.f32 %v4071_v53, %v2988_v51 }
 0x20a   :  { %v4073_v35 = vpop.f32.mrf.mxu1 }
 0x222   :  { %v4091_v12 = vpop.f32.mrf.mxu0 }
 0x224   :  { %v4092_v43 = vpop.f32.mrf.mxu0  ;;  %v4113_v41 = vpop.f32.mrf.mxu1 }
 0x225   :  { %v4093_v54 = vadd.f32 %v4092_v43, %v4091_v12 }
 0x226   :  { %v4094_v16 = vpop.f32.mrf.mxu0  ;;  %v4114_v46 = vpop.f32.mrf.mxu1 }
 0x227   :  { %v3068_v56 = vadd.f32 %v4093_v54, %v3028_v55  ;;  %v4115_v57 = vadd.f32 %v4114_v46, %v4113_v41 }
 0x228   :  { %v4095_v47 = vpop.f32.mrf.mxu0  ;;  %v4116_v25 = vpop.f32.mrf.mxu1 }
 0x229   :  { %v3108_v58 = vadd.f32 %v4115_v57, %v3068_v56 }
 0x22a   :  { %v4117_v49 = vpop.f32.mrf.mxu1 }
 0x242   :  { %v3147_v60 = vpop.f32.mrf.mxu0 }
 0x243   :  { %v3148_v61 = vadd.f32 %v3147_v60, %v3108_v58 }
 0x244   :  { %v4186_v63 = vpop.f32.mrf.mxu0 }
 0x245   :  { %v3155_v0 = vmax.f32 %v3148_v61, 0.0 }
 0x246   :  { %v3150_v42 = vpop.f32.mrf.mxu0 }
 0x247   :  { %v3158_v21 = vpack.c.bf16 %v3155_v0, %v3155_v0 }
 0x248   :  { %v4187_v8 = vpop.f32.mrf.mxu0 }
 0x249   :  { %4205 = vmatmul.mubr.bf16.vlgmr.msra.gmra.mxu0 %v3158_v21 }
 0x28e   :  { %v4144_v15 = vpop.f32.mrf.mxu1 }
 0x290   :  { %v4145_v24 = vpop.f32.mrf.mxu1 }
 0x291   :  { %v4146_v2 = vadd.f32 %v4145_v24, %v4144_v15 }
 0x292   :  { %v4147_v38 = vpop.f32.mrf.mxu1 }
 0x293   :  { %v3393_v6 = vadd.f32 %v4146_v2, %v3931_v4 }
 0x294   :  { %v4148_v3 = vpop.f32.mrf.mxu1 }
 0x309   :  { %v3432_v7 = vpop.f32.mrf.mxu0 }
 0x30a   :  { %v3433_v39 = vadd.f32 %v3432_v7, %v3393_v6 }
 0x30b   :  { %v4206_v45 = vpop.f32.mrf.mxu0 }
 0x30c   :  { %v3438_v9 = vmax.f32 %v3433_v39, 0.0 }
 0x30d   :  { %v3435_v32 = vpop.f32.mrf.mxu0 }
 0x30e   :  { %v3439_v10 = vpack.c.bf16 %v3438_v9, %v3438_v9 }
 0x30f   :  { %v4207_v62 = vpop.f32.mrf.mxu0 }
 0x310   :  { %4225 = vmatmul.mubr.bf16.vlgmr.msra.gmra.mxu1 %v3439_v10 }
 0x3d0   :  { %v3545_v13 = vpop.f32.mrf.mxu1 }
 0x3d1   :  { %v3546_v52 = vadd.f32 %v3956_v11, %v3545_v13 }
 0x3d2   :  { %v4226_v14 = vpop.f32.mrf.mxu1 }
 0x3d3   :  { %3551 = vst [vmem:[%s6166_s7] sm:$0xff] %v3546_v52 }
 0x3d4   :  { %v3548_v5 = vpop.f32.mrf.mxu1 }
 0x3d6   :  { %v4227_v17 = vpop.f32.mrf.mxu1 }

</bundles_post_ra>
